<compile_context>
chip_gen: v7x
topology: tpu7x:2x2x1
jax: 0.10.0
libtpu: 0.0.40
codegen_flags: <defaults>
</compile_context>

<pallas_src>
import functools

import jax
import jax.numpy as jnp
from jax.experimental import pallas as pl
from jax.experimental.pallas import tpu as pltpu


# ----------------------------------------------------------------------------
# Helpers: tile-alignment choices
# ----------------------------------------------------------------------------
def _round_up(x, m):
    return ((x + m - 1) // m) * m


def _num_tensorcores():
    # v7x packs 2 TensorCores per chip; v5e/v6e have 1.  Best-effort detection;
    # defaults to 1 (never split) so unknown chips run the recurrence once.
    try:
        kind = jax.devices()[0].device_kind.lower()
    except Exception:
        return 1
    return 2 if "v7" in kind else 1


def _choose_b_tile(b_pad, b_align):
    # Only shard the batch when there are 2 TensorCores to take the halves;
    # on 1-TC chips the "parallel" axis is a serial loop and splitting would
    # double the serial recurrence work.
    n_tc = _num_tensorcores()
    if n_tc > 1 and b_pad % (n_tc * b_align) == 0:
        return b_pad // n_tc
    return b_pad


def _choose_time_chunk(seq_len, b_tile, h_pad, itemsize):
    # Modest unroll (code size / vreg live ranges); t_chunk may grow to
    # amortize the ~0.35us per-grid-step overhead.  ~4 MiB chunk budget keeps
    # the streamed/scratch chunk buffers comfortably inside v7x's 64 MiB VMEM.
    unroll = 8
    per_step = b_tile * h_pad * (3 * itemsize + 5 * 4)  # x(2buf)+act + out f32(2buf)+gi f32
    cap = max(1, (4 * 1024 * 1024) // per_step)
    t_chunk = max(1, min(seq_len, cap))
    if t_chunk >= unroll:
        t_chunk = (t_chunk // unroll) * unroll
    return t_chunk, min(unroll, t_chunk)


def _pad_gate_weight(w, h, h_pad):
    # (3H, H) -> (3*Hp, Hp), each gate block zero-padded independently.
    w3 = w.reshape(3, h, h)
    w3 = jnp.pad(w3, ((0, 0), (0, h_pad - h), (0, h_pad - h)))
    return w3.reshape(3 * h_pad, h_pad)


def _pad_gate_bias(b, h, h_pad):
    # (3H,) -> (3, Hp) f32, per-gate zero padding.
    return jnp.pad(b.reshape(3, h), ((0, 0), (0, h_pad - h))).astype(jnp.float32)


# ----------------------------------------------------------------------------
# Fused Pallas kernel: all GRU layers, one chunk of timesteps per grid step.
# grid = (batch_tiles ["parallel"], time_chunks ["arbitrary"]).
# Per-layer hidden states live in VMEM scratch carried across time chunks;
# inter-layer activations stay in VMEM (never round-trip to HBM).
# ----------------------------------------------------------------------------
def _stacked_gru_kernel(x_ref, wih_ref, whh_ref, bgi_ref, bhn_ref,
                        out_ref, hn_ref,
                        h_scratch, act_scratch, gi_scratch,
                        *, num_layers, hidden_pad, b_tile, t_chunk, unroll,
                        seq_len, compute_dtype):
    hp = hidden_pad
    bt = b_tile
    t_blk = pl.program_id(1)

    @pl.when(t_blk == 0)
    def _():
        h_scratch[...] = jnp.zeros_like(h_scratch)   # h0 = zeros (PyTorch default)

    # Local index (inside this chunk) of the global timestep seq_len-1, used to
    # capture h_n exactly (padded timesteps t >= seq_len keep evolving the
    # scratch state, which is fine: they only occur in the last chunk and the
    # carried state is never consumed afterwards).
    local_last = (seq_len - 1) - t_blk * t_chunk

    for layer in range(num_layers):
        is_last = layer == num_layers - 1

        # ---- Hoisted input projection for the whole chunk: one big MXU matmul
        #      off the serial chain, f32 accumulation, kept in f32 VMEM scratch.
        if layer == 0:
            a2 = x_ref[0]                                   # (tc*bt, Hp)
        else:
            a2 = act_scratch[...]                           # (tc*bt, Hp)
        gi2 = jnp.dot(a2.astype(compute_dtype), wih_ref[layer],
                      preferred_element_type=jnp.float32)   # (tc*bt, 3Hp)
        # bias = b_ih + b_hh (r,z gates only), folded once per chunk in f32.
        gi_scratch[...] = gi2 + bgi_ref[layer]

        bhn = bhn_ref[layer]                                # (1, Hp) f32: b_hh[n]

        # ---- Serial recurrence over the chunk ------------------------------
        def step(t, h):
            row = pl.multiple_of(t * bt, bt)
            gi_t = gi_scratch[pl.ds(row, bt), :]            # (bt, 3Hp) f32
            # Recurrent matmul: weight read from VMEM ref (not pinned in vregs).
            gh = jnp.dot(h.astype(compute_dtype), whh_ref[layer],
                         preferred_element_type=jnp.float32)
            r = jax.nn.sigmoid(gi_t[:, 0:hp] + gh[:, 0:hp])
            z = jax.nn.sigmoid(gi_t[:, hp:2 * hp] + gh[:, hp:2 * hp])
            # PyTorch GRU: n = tanh(W_in x + b_in + r * (W_hn h + b_hn)); b_hn must
            # stay inside the r*(.) product, so it cannot be folded into gi.
            n = jnp.tanh(gi_t[:, 2 * hp:3 * hp] + r * (gh[:, 2 * hp:3 * hp] + bhn))
            h_new = n + z * (h - n)                         # == (1-z)*n + z*h
            if is_last:
                out_ref[t] = h_new.astype(out_ref.dtype)
            else:
                act_scratch[pl.ds(row, bt), :] = h_new.astype(act_scratch.dtype)
            return h_new

        h_last = jax.lax.fori_loop(0, t_chunk, step, h_scratch[layer],
                                   unroll=unroll)
        h_scratch[layer] = h_last

        # ---- Capture h_n(layer) = h at global t == seq_len-1 ----------------
        @pl.when((local_last >= 0) & (local_last < t_chunk))
        def _():
            if is_last:
                hn_ref[layer] = out_ref[local_last].astype(hn_ref.dtype)
            else:
                row = pl.multiple_of(local_last * bt, bt)
                hn_ref[layer] = act_scratch[pl.ds(row, bt), :].astype(hn_ref.dtype)


def _stacked_gru_pallas(x_blk, w_ihT, w_hhT, bias_gi, bias_hn, *,
                        num_layers, seq_len, t_pad, b_pad, h_pad,
                        b_tile, t_chunk, unroll, compute_dtype):
    n_b = b_pad // b_tile
    n_t = t_pad // t_chunk
    kernel = functools.partial(
        _stacked_gru_kernel, num_layers=num_layers, hidden_pad=h_pad,
        b_tile=b_tile, t_chunk=t_chunk, unroll=unroll, seq_len=seq_len,
        compute_dtype=compute_dtype)
    return pl.pallas_call(
        kernel,
        out_shape=(jax.ShapeDtypeStruct((t_pad, b_pad, h_pad), jnp.float32),
                   jax.ShapeDtypeStruct((num_layers, b_pad, h_pad), jnp.float32)),
        grid_spec=pltpu.PrefetchScalarGridSpec(
            num_scalar_prefetch=0,
            grid=(n_b, n_t),
            in_specs=[
                # Layer-0 input, streamed per (b, t) chunk; pre-laid-out in the
                # wrapper as (n_b, Tp*b_tile, Hp) so the kernel sees a dense 2D
                # slab (no in-kernel reshape).
                pl.BlockSpec((1, t_chunk * b_tile, h_pad), lambda b, t: (b, t, 0)),
                # Resident stacked weights / biases (constant block index).
                # TODO(synk): pipeline_mode=pl.Buffered(1) would single-buffer
                #             these residents and halve their VMEM footprint on v7x.
                pl.BlockSpec((num_layers, h_pad, 3 * h_pad), lambda b, t: (0, 0, 0)),
                pl.BlockSpec((num_layers, h_pad, 3 * h_pad), lambda b, t: (0, 0, 0)),
                pl.BlockSpec((num_layers, 1, 3 * h_pad), lambda b, t: (0, 0, 0)),
                pl.BlockSpec((num_layers, 1, h_pad), lambda b, t: (0, 0, 0)),
            ],
            out_specs=(
                # Last layer's hidden states, streamed back per chunk.
                pl.BlockSpec((t_chunk, b_tile, h_pad), lambda b, t: (t, b, 0)),
                # h_n: resident across the time axis, written once at t==seq-1.
                pl.BlockSpec((num_layers, b_tile, h_pad), lambda b, t: (0, b, 0)),
            ),
            scratch_shapes=[
                pltpu.VMEM((num_layers, b_tile, h_pad), jnp.float32),     # h per layer
                pltpu.VMEM((t_chunk * b_tile, h_pad), compute_dtype),     # inter-layer act
                pltpu.VMEM((t_chunk * b_tile, 3 * h_pad), jnp.float32),   # gi chunk (f32)
            ],
        ),
        compiler_params=pltpu.CompilerParams(
            dimension_semantics=("parallel", "arbitrary"),   # batch ||, time sequential
            vmem_limit_bytes=48 * 1024 * 1024,               # within v7x's 64 MiB VMEM
        ),
    )(x_blk, w_ihT, w_hhT, bias_gi, bias_hn)


# ----------------------------------------------------------------------------
# Full stacked-GRU forward (BaseRNN's self.rnn(...) hot path).
# ----------------------------------------------------------------------------
@functools.partial(jax.jit, static_argnames=("use_bf16",))
def base_rnn_forward(params, x_bth, use_bf16=True):
    """x_bth: (B, T, H) float32 (batch_first). Returns (output (B,T,H), h_n (L,B,H))."""
    compute_dtype = jnp.bfloat16 if use_bf16 else jnp.float32
    itemsize = jnp.dtype(compute_dtype).itemsize
    num_layers = len(params)
    bsz, seq, hid = x_bth.shape

    b_align = 16 if use_bf16 else 8          # bf16 packs two rows per sublane
    b_pad = _round_up(bsz, b_align)
    h_pad = _round_up(hid, 128)              # lane alignment
    b_tile = _choose_b_tile(b_pad, b_align)
    t_chunk, unroll = _choose_time_chunk(seq, b_tile, h_pad, itemsize)
    t_pad = _round_up(seq, t_chunk)
    n_b = b_pad // b_tile

    # input dropout (input_dropout_p): identity in eval mode.
    x = jnp.transpose(x_bth, (1, 0, 2))                                 # (T, B, H)
    x = jnp.pad(x, ((0, t_pad - seq), (0, b_pad - bsz), (0, h_pad - hid)))
    x = x.astype(compute_dtype)
    # Lay out as (n_b, Tp*b_tile, Hp): t-major, batch-minor rows so each grid
    # chunk is one dense 2D slab (free reshape when n_b == 1).
    x_blk = x.reshape(t_pad, n_b, b_tile, h_pad).transpose(1, 0, 2, 3)
    x_blk = x_blk.reshape(n_b, t_pad * b_tile, h_pad)

    gate_mask = jnp.array([1.0, 1.0, 0.0], jnp.float32)[:, None]        # fold b_hh for r,z only
    w_ihT, w_hhT, bias_gi, bias_hn = [], [], [], []
    for (w_ih, w_hh, b_ih, b_hh) in params:
        w_ihT.append(_pad_gate_weight(w_ih, hid, h_pad).T.astype(compute_dtype))  # (Hp, 3Hp)
        w_hhT.append(_pad_gate_weight(w_hh, hid, h_pad).T.astype(compute_dtype))  # (Hp, 3Hp)
        bi = _pad_gate_bias(b_ih, hid, h_pad)                            # (3, Hp) f32
        bh = _pad_gate_bias(b_hh, hid, h_pad)                            # (3, Hp) f32
        bias_gi.append((bi + bh * gate_mask).reshape(1, 3 * h_pad))      # f32 (no double rounding)
        bias_hn.append(bh[2].reshape(1, h_pad))                          # b_hh[n] stays with gh
    w_ihT = jnp.stack(w_ihT)            # (L, Hp, 3Hp)
    w_hhT = jnp.stack(w_hhT)            # (L, Hp, 3Hp)
    bias_gi = jnp.stack(bias_gi)        # (L, 1, 3Hp) f32
    bias_hn = jnp.stack(bias_hn)        # (L, 1, Hp)  f32

    y_pad, hn_pad = _stacked_gru_pallas(
        x_blk, w_ihT, w_hhT, bias_gi, bias_hn,
        num_layers=num_layers, seq_len=seq, t_pad=t_pad, b_pad=b_pad,
        h_pad=h_pad, b_tile=b_tile, t_chunk=t_chunk, unroll=unroll,
        compute_dtype=compute_dtype)

    # inter-layer dropout (dropout_p): identity in eval mode.
    output = jnp.transpose(y_pad[:seq, :bsz, :hid], (1, 0, 2))           # (B, T, H)
    h_n = hn_pad[:, :bsz, :hid]                                          # (L, B, H)
    return output, h_n


# ----------------------------------------------------------------------------
# BaseRNN-equivalent module (rnn_cell='gru'), parameters built deterministically.
# ----------------------------------------------------------------------------
class BaseRNNPallas:
    def __init__(self, max_len, hidden_size, input_dropout_p, dropout_p,
                 n_layers, rnn_cell="gru", key=jax.random.PRNGKey(0)):
        if rnn_cell.lower() != "gru":
            # TODO(synk): LSTM cell variant not implemented in this Pallas port.
            raise ValueError("This Pallas port implements rnn_cell='gru' only.")
        self.max_len = max_len
        self.hidden_size = hidden_size
        self.n_layers = n_layers
        self.input_dropout_p = input_dropout_p
        self.dropout_p = dropout_p

        # PyTorch nn.GRU init: U(-1/sqrt(H), 1/sqrt(H)) for all params.
        bound = 1.0 / float(jnp.sqrt(hidden_size))
        self.params = []
        for _ in range(n_layers):
            key, k1, k2, k3, k4 = jax.random.split(key, 5)
            w_ih = jax.random.uniform(k1, (3 * hidden_size, hidden_size),
                                      jnp.float32, -bound, bound)
            w_hh = jax.random.uniform(k2, (3 * hidden_size, hidden_size),
                                      jnp.float32, -bound, bound)
            b_ih = jax.random.uniform(k3, (3 * hidden_size,), jnp.float32, -bound, bound)
            b_hh = jax.random.uniform(k4, (3 * hidden_size,), jnp.float32, -bound, bound)
            self.params.append((w_ih, w_hh, b_ih, b_hh))

    def forward_rnn(self, x_bth, use_bf16=True):
        return base_rnn_forward(self.params, x_bth, use_bf16=use_bf16)


# ----------------------------------------------------------------------------
# Pure-JAX reference GRU (for correctness check).
# ----------------------------------------------------------------------------
def gru_layer_ref(x_tbh, w_ih, w_hh, b_ih, b_hh):
    _, bsz, hid = x_tbh.shape

    def step(h, x_t):
        gi = x_t @ w_ih.T + b_ih
        gh = h @ w_hh.T + b_hh
        i_r, i_z, i_n = gi[:, :hid], gi[:, hid:2 * hid], gi[:, 2 * hid:]
        h_r, h_z, h_n = gh[:, :hid], gh[:, hid:2 * hid], gh[:, 2 * hid:]
        r = jax.nn.sigmoid(i_r + h_r)
        z = jax.nn.sigmoid(i_z + h_z)
        n = jnp.tanh(i_n + r * h_n)
        h_new = (1.0 - z) * n + z * h
        return h_new, h_new

    h0 = jnp.zeros((bsz, hid), jnp.float32)
    _, ys = jax.lax.scan(step, h0, x_tbh)
    return ys


if __name__ == "__main__":
    B, T, H, n_layers = 2, 8, 32, 2
    key = jax.random.PRNGKey(0)
    key_x, key_p = jax.random.split(key)

    model = BaseRNNPallas(max_len=T, hidden_size=H, input_dropout_p=0.0,
                          dropout_p=0.0, n_layers=n_layers, rnn_cell="gru",
                          key=key_p)
    x = jax.random.normal(key_x, (B, T, H), jnp.float32)   # (batch, seq, hidden)

    # Pure-JAX reference (f32 scan).
    x_ref = jnp.transpose(x, (1, 0, 2))
    finals_ref = []
    for (w_ih, w_hh, b_ih, b_hh) in model.params:
        x_ref = gru_layer_ref(x_ref, w_ih, w_hh, b_ih, b_hh)
        finals_ref.append(x_ref[-1])
    out_ref = jnp.transpose(x_ref, (1, 0, 2))
    hn_ref = jnp.stack(finals_ref, axis=0)

    # Exact-precision mode (f32 everywhere): tight check vs. reference.
    out32, hn32 = model.forward_rnn(x, use_bf16=False)
    out32 = jax.block_until_ready(out32)
    hn32 = jax.block_until_ready(hn32)
    assert out32.shape == (B, T, H) and hn32.shape == (n_layers, B, H)
    assert jnp.allclose(out32, out_ref, atol=1e-4, rtol=1e-4), "f32 output mismatch"
    assert jnp.allclose(hn32, hn_ref, atol=1e-4, rtol=1e-4), "f32 h_n mismatch"

    # Perf mode (bf16 weights/activations, f32 gates + state): loose sanity check.
    out16, hn16 = model.forward_rnn(x)
    out16 = jax.block_until_ready(out16)
    hn16 = jax.block_until_ready(hn16)
    assert out16.shape == (B, T, H) and hn16.shape == (n_layers, B, H)
    assert jnp.allclose(out16, out_ref, atol=1e-1, rtol=1e-1), "bf16 output drift too large"
    assert jnp.allclose(hn16, hn_ref, atol=1e-1, rtol=1e-1), "bf16 h_n drift too large"

    print("KERNEL_OK")
</pallas_src>

<mosaic_0001>
module attributes {stable_mosaic.version = 11 : i64} {
  func.func @_stacked_gru_kernel(%arg0: i32, %arg1: i32, %arg2: memref<1x64x128xf32, #tpu.memory_space<vmem>>, %arg3: memref<2x128x384xf32, #tpu.memory_space<vmem>>, %arg4: memref<2x128x384xf32, #tpu.memory_space<vmem>>, %arg5: memref<2x1x384xf32, #tpu.memory_space<vmem>>, %arg6: memref<2x1x128xf32, #tpu.memory_space<vmem>>, %arg7: memref<8x8x128xf32, #tpu.memory_space<vmem>>, %arg8: memref<2x8x128xf32, #tpu.memory_space<vmem>>, %arg9: memref<2x8x128xf32, #tpu.memory_space<vmem>>, %arg10: memref<64x128xf32, #tpu.memory_space<vmem>>, %arg11: memref<64x384xf32, #tpu.memory_space<vmem>>) attributes {dimension_semantics = [#tpu.dimension_semantics<parallel>, #tpu.dimension_semantics<arbitrary>], iteration_bounds = array<i64: 1, 1>, scalar_prefetch = 0 : i64, scratch_operands = 3 : i64, tpu.core_type = #tpu.core_type<tc>, window_params = [{transform_indices = @transform_0, window_bounds = array<i64: 1, 64, 128>}, {pipeline_mode = #tpu.pipeline_mode<synchronous>, transform_indices = @transform_1, window_bounds = array<i64: 2, 128, 384>}, {pipeline_mode = #tpu.pipeline_mode<synchronous>, transform_indices = @transform_2, window_bounds = array<i64: 2, 128, 384>}, {pipeline_mode = #tpu.pipeline_mode<synchronous>, transform_indices = @transform_3, window_bounds = array<i64: 2, 1, 384>}, {pipeline_mode = #tpu.pipeline_mode<synchronous>, transform_indices = @transform_4, window_bounds = array<i64: 2, 1, 128>}, {transform_indices = @transform_5, window_bounds = array<i64: 8, 8, 128>}, {transform_indices = @transform_6, window_bounds = array<i64: 2, 8, 128>}]} {
    %c0_i32 = arith.constant 0 : i32
    %0 = arith.cmpi eq, %arg1, %c0_i32 : i32
    %1 = arith.extui %0 : i1 to i32
    %c0_i32_0 = arith.constant 0 : i32
    %2 = arith.cmpi ne, %1, %c0_i32_0 : i32
    scf.if %2 {
      %cst_209 = arith.constant 0.000000e+00 : f32
      %624 = vector.broadcast %cst_209 : f32 to vector<2x8x128xf32>
      %c0_210 = arith.constant 0 : index
      %c0_211 = arith.constant 0 : index
      %c0_212 = arith.constant 0 : index
      %625 = vector.load %arg9[%c0_210, %c0_211, %c0_212] : memref<2x8x128xf32, #tpu.memory_space<vmem>>, vector<2x8x128xf32>
      tpu.vector_store %arg9[%c0_210, %c0_211, %c0_212], %624 {strides = array<i32>} : memref<2x8x128xf32, #tpu.memory_space<vmem>>, vector<2x8x128xf32>,
    } else {
    }
    %c8_i32 = arith.constant 8 : i32
    %3 = arith.muli %arg1, %c8_i32 : i32
    %c7_i32 = arith.constant 7 : i32
    %4 = arith.subi %c7_i32, %3 : i32
    %c0 = arith.constant 0 : index
    %c0_1 = arith.constant 0 : index
    %c0_2 = arith.constant 0 : index
    %5 = vector.load %arg2[%c0, %c0_1, %c0_2] : memref<1x64x128xf32, #tpu.memory_space<vmem>>, vector<1x64x128xf32>
    %6 = vector.shape_cast %5 : vector<1x64x128xf32> to vector<64x128xf32>
    %c0_3 = arith.constant 0 : index
    %c0_4 = arith.constant 0 : index
    %c0_5 = arith.constant 0 : index
    %7 = vector.load %arg3[%c0_3, %c0_4, %c0_5] : memref<2x128x384xf32, #tpu.memory_space<vmem>>, vector<1x128x384xf32>
    %8 = vector.shape_cast %7 : vector<1x128x384xf32> to vector<128x384xf32>
    %cst = arith.constant dense<0.000000e+00> : vector<64x384xf32>
    %9 = tpu.matmul %6, %8, %cst {dimension_numbers = #tpu.dot_dimension_numbers<[1], [0], [0], [1], [0, 0, 1, 1], [], []>} : vector<64x128xf32>, vector<128x384xf32>, vector<64x384xf32> -> vector<64x384xf32>
    %c0_6 = arith.constant 0 : index
    %c0_7 = arith.constant 0 : index
    %c0_8 = arith.constant 0 : index
    %10 = vector.load %arg5[%c0_6, %c0_7, %c0_8] : memref<2x1x384xf32, #tpu.memory_space<vmem>>, vector<1x1x384xf32>
    %11 = vector.shape_cast %10 : vector<1x1x384xf32> to vector<1x384xf32>
    %12 = vector.broadcast %11 : vector<1x384xf32> to vector<64x384xf32>
    %13 = arith.addf %9, %12 : vector<64x384xf32>
    %c0_9 = arith.constant 0 : index
    %c0_10 = arith.constant 0 : index
    %14 = vector.load %arg11[%c0_9, %c0_10] : memref<64x384xf32, #tpu.memory_space<vmem>>, vector<64x384xf32>
    tpu.vector_store %arg11[%c0_9, %c0_10], %13 {strides = array<i32>} : memref<64x384xf32, #tpu.memory_space<vmem>>, vector<64x384xf32>,
    %c0_11 = arith.constant 0 : index
    %c0_12 = arith.constant 0 : index
    %c0_13 = arith.constant 0 : index
    %15 = vector.load %arg6[%c0_11, %c0_12, %c0_13] : memref<2x1x128xf32, #tpu.memory_space<vmem>>, vector<1x1x128xf32>
    %16 = vector.shape_cast %15 : vector<1x1x128xf32> to vector<1x128xf32>
    %c0_14 = arith.constant 0 : index
    %c0_15 = arith.constant 0 : index
    %c0_16 = arith.constant 0 : index
    %17 = vector.load %arg9[%c0_14, %c0_15, %c0_16] : memref<2x8x128xf32, #tpu.memory_space<vmem>>, vector<1x8x128xf32>
    %18 = vector.shape_cast %17 : vector<1x8x128xf32> to vector<8x128xf32>
    %c0_i32_17 = arith.constant 0 : i32
    %c8_i32_18 = arith.constant 8 : i32
    %19 = arith.muli %c0_i32_17, %c8_i32_18 : i32
    %20 = tpu.assume_multiple %19, 8 : i32
    %21 = arith.index_cast %20 : i32 to index
    %c0_19 = arith.constant 0 : index
    %22 = vector.load %arg11[%21, %c0_19] : memref<64x384xf32, #tpu.memory_space<vmem>>, vector<8x384xf32>
    %c0_20 = arith.constant 0 : index
    %c0_21 = arith.constant 0 : index
    %c0_22 = arith.constant 0 : index
    %23 = vector.load %arg4[%c0_20, %c0_21, %c0_22] : memref<2x128x384xf32, #tpu.memory_space<vmem>>, vector<1x128x384xf32>
    %24 = vector.shape_cast %23 : vector<1x128x384xf32> to vector<128x384xf32>
    %cst_23 = arith.constant dense<0.000000e+00> : vector<8x384xf32>
    %25 = tpu.matmul %18, %24, %cst_23 {dimension_numbers = #tpu.dot_dimension_numbers<[1], [0], [0], [1], [0, 0, 1, 1], [], []>} : vector<8x128xf32>, vector<128x384xf32>, vector<8x384xf32> -> vector<8x384xf32>
    %26 = vector.extract_strided_slice %22 {offsets = [0, 0], sizes = [8, 128], strides = [1, 1]} : vector<8x384xf32> to vector<8x128xf32>
    %27 = vector.extract_strided_slice %25 {offsets = [0, 0], sizes = [8, 128], strides = [1, 1]} : vector<8x384xf32> to vector<8x128xf32>
    %28 = arith.addf %26, %27 : vector<8x128xf32>
    %29 = arith.negf %28 : vector<8x128xf32>
    %30 = math.exp %29 : vector<8x128xf32>
    %cst_24 = arith.constant 1.000000e+00 : f32
    %31 = vector.broadcast %cst_24 : f32 to vector<8x128xf32>
    %32 = arith.addf %31, %30 : vector<8x128xf32>
    %33 = arith.divf %31, %32 : vector<8x128xf32>
    %34 = vector.extract_strided_slice %22 {offsets = [0, 128], sizes = [8, 128], strides = [1, 1]} : vector<8x384xf32> to vector<8x128xf32>
    %35 = vector.extract_strided_slice %25 {offsets = [0, 128], sizes = [8, 128], strides = [1, 1]} : vector<8x384xf32> to vector<8x128xf32>
    %36 = arith.addf %34, %35 : vector<8x128xf32>
    %37 = arith.negf %36 : vector<8x128xf32>
    %38 = math.exp %37 : vector<8x128xf32>
    %cst_25 = arith.constant 1.000000e+00 : f32
    %39 = vector.broadcast %cst_25 : f32 to vector<8x128xf32>
    %40 = arith.addf %39, %38 : vector<8x128xf32>
    %41 = arith.divf %39, %40 : vector<8x128xf32>
    %42 = vector.extract_strided_slice %22 {offsets = [0, 256], sizes = [8, 128], strides = [1, 1]} : vector<8x384xf32> to vector<8x128xf32>
    %43 = vector.extract_strided_slice %25 {offsets = [0, 256], sizes = [8, 128], strides = [1, 1]} : vector<8x384xf32> to vector<8x128xf32>
    %44 = vector.broadcast %16 : vector<1x128xf32> to vector<8x128xf32>
    %45 = arith.addf %43, %44 : vector<8x128xf32>
    %46 = arith.mulf %33, %45 : vector<8x128xf32>
    %47 = arith.addf %42, %46 : vector<8x128xf32>
    %48 = math.tanh %47 : vector<8x128xf32>
    %49 = arith.subf %18, %48 : vector<8x128xf32>
    %50 = arith.mulf %41, %49 : vector<8x128xf32>
    %51 = arith.addf %48, %50 : vector<8x128xf32>
    %52 = arith.index_cast %20 : i32 to index
    %c0_26 = arith.constant 0 : index
    %53 = vector.load %arg10[%52, %c0_26] : memref<64x128xf32, #tpu.memory_space<vmem>>, vector<8x128xf32>
    tpu.vector_store %arg10[%52, %c0_26], %51 {strides = array<i32>} : memref<64x128xf32, #tpu.memory_space<vmem>>, vector<8x128xf32>,
    %c1_i32 = arith.constant 1 : i32
    %c8_i32_27 = arith.constant 8 : i32
    %54 = arith.muli %c1_i32, %c8_i32_27 : i32
    %55 = tpu.assume_multiple %54, 8 : i32
    %56 = arith.index_cast %55 : i32 to index
    %c0_28 = arith.constant 0 : index
    %57 = vector.load %arg11[%56, %c0_28] : memref<64x384xf32, #tpu.memory_space<vmem>>, vector<8x384xf32>
    %c0_29 = arith.constant 0 : index
    %c0_30 = arith.constant 0 : index
    %c0_31 = arith.constant 0 : index
    %58 = vector.load %arg4[%c0_29, %c0_30, %c0_31] : memref<2x128x384xf32, #tpu.memory_space<vmem>>, vector<1x128x384xf32>
    %59 = vector.shape_cast %58 : vector<1x128x384xf32> to vector<128x384xf32>
    %cst_32 = arith.constant dense<0.000000e+00> : vector<8x384xf32>
    %60 = tpu.matmul %51, %59, %cst_32 {dimension_numbers = #tpu.dot_dimension_numbers<[1], [0], [0], [1], [0, 0, 1, 1], [], []>} : vector<8x128xf32>, vector<128x384xf32>, vector<8x384xf32> -> vector<8x384xf32>
    %61 = vector.extract_strided_slice %57 {offsets = [0, 0], sizes = [8, 128], strides = [1, 1]} : vector<8x384xf32> to vector<8x128xf32>
    %62 = vector.extract_strided_slice %60 {offsets = [0, 0], sizes = [8, 128], strides = [1, 1]} : vector<8x384xf32> to vector<8x128xf32>
    %63 = arith.addf %61, %62 : vector<8x128xf32>
    %64 = arith.negf %63 : vector<8x128xf32>
    %65 = math.exp %64 : vector<8x128xf32>
    %cst_33 = arith.constant 1.000000e+00 : f32
    %66 = vector.broadcast %cst_33 : f32 to vector<8x128xf32>
    %67 = arith.addf %66, %65 : vector<8x128xf32>
    %68 = arith.divf %66, %67 : vector<8x128xf32>
    %69 = vector.extract_strided_slice %57 {offsets = [0, 128], sizes = [8, 128], strides = [1, 1]} : vector<8x384xf32> to vector<8x128xf32>
    %70 = vector.extract_strided_slice %60 {offsets = [0, 128], sizes = [8, 128], strides = [1, 1]} : vector<8x384xf32> to vector<8x128xf32>
    %71 = arith.addf %69, %70 : vector<8x128xf32>
    %72 = arith.negf %71 : vector<8x128xf32>
    %73 = math.exp %72 : vector<8x128xf32>
    %cst_34 = arith.constant 1.000000e+00 : f32
    %74 = vector.broadcast %cst_34 : f32 to vector<8x128xf32>
    %75 = arith.addf %74, %73 : vector<8x128xf32>
    %76 = arith.divf %74, %75 : vector<8x128xf32>
    %77 = vector.extract_strided_slice %57 {offsets = [0, 256], sizes = [8, 128], strides = [1, 1]} : vector<8x384xf32> to vector<8x128xf32>
    %78 = vector.extract_strided_slice %60 {offsets = [0, 256], sizes = [8, 128], strides = [1, 1]} : vector<8x384xf32> to vector<8x128xf32>
    %79 = vector.broadcast %16 : vector<1x128xf32> to vector<8x128xf32>
    %80 = arith.addf %78, %79 : vector<8x128xf32>
    %81 = arith.mulf %68, %80 : vector<8x128xf32>
    %82 = arith.addf %77, %81 : vector<8x128xf32>
    %83 = math.tanh %82 : vector<8x128xf32>
    %84 = arith.subf %51, %83 : vector<8x128xf32>
    %85 = arith.mulf %76, %84 : vector<8x128xf32>
    %86 = arith.addf %83, %85 : vector<8x128xf32>
    %87 = arith.index_cast %55 : i32 to index
    %c0_35 = arith.constant 0 : index
    %88 = vector.load %arg10[%87, %c0_35] : memref<64x128xf32, #tpu.memory_space<vmem>>, vector<8x128xf32>
    tpu.vector_store %arg10[%87, %c0_35], %86 {strides = array<i32>} : memref<64x128xf32, #tpu.memory_space<vmem>>, vector<8x128xf32>,
    %c2_i32 = arith.constant 2 : i32
    %c8_i32_36 = arith.constant 8 : i32
    %89 = arith.muli %c2_i32, %c8_i32_36 : i32
    %90 = tpu.assume_multiple %89, 8 : i32
    %91 = arith.index_cast %90 : i32 to index
    %c0_37 = arith.constant 0 : index
    %92 = vector.load %arg11[%91, %c0_37] : memref<64x384xf32, #tpu.memory_space<vmem>>, vector<8x384xf32>
    %c0_38 = arith.constant 0 : index
    %c0_39 = arith.constant 0 : index
    %c0_40 = arith.constant 0 : index
    %93 = vector.load %arg4[%c0_38, %c0_39, %c0_40] : memref<2x128x384xf32, #tpu.memory_space<vmem>>, vector<1x128x384xf32>
    %94 = vector.shape_cast %93 : vector<1x128x384xf32> to vector<128x384xf32>
    %cst_41 = arith.constant dense<0.000000e+00> : vector<8x384xf32>
    %95 = tpu.matmul %86, %94, %cst_41 {dimension_numbers = #tpu.dot_dimension_numbers<[1], [0], [0], [1], [0, 0, 1, 1], [], []>} : vector<8x128xf32>, vector<128x384xf32>, vector<8x384xf32> -> vector<8x384xf32>
    %96 = vector.extract_strided_slice %92 {offsets = [0, 0], sizes = [8, 128], strides = [1, 1]} : vector<8x384xf32> to vector<8x128xf32>
    %97 = vector.extract_strided_slice %95 {offsets = [0, 0], sizes = [8, 128], strides = [1, 1]} : vector<8x384xf32> to vector<8x128xf32>
    %98 = arith.addf %96, %97 : vector<8x128xf32>
    %99 = arith.negf %98 : vector<8x128xf32>
    %100 = math.exp %99 : vector<8x128xf32>
    %cst_42 = arith.constant 1.000000e+00 : f32
    %101 = vector.broadcast %cst_42 : f32 to vector<8x128xf32>
    %102 = arith.addf %101, %100 : vector<8x128xf32>
    %103 = arith.divf %101, %102 : vector<8x128xf32>
    %104 = vector.extract_strided_slice %92 {offsets = [0, 128], sizes = [8, 128], strides = [1, 1]} : vector<8x384xf32> to vector<8x128xf32>
    %105 = vector.extract_strided_slice %95 {offsets = [0, 128], sizes = [8, 128], strides = [1, 1]} : vector<8x384xf32> to vector<8x128xf32>
    %106 = arith.addf %104, %105 : vector<8x128xf32>
    %107 = arith.negf %106 : vector<8x128xf32>
    %108 = math.exp %107 : vector<8x128xf32>
    %cst_43 = arith.constant 1.000000e+00 : f32
    %109 = vector.broadcast %cst_43 : f32 to vector<8x128xf32>
    %110 = arith.addf %109, %108 : vector<8x128xf32>
    %111 = arith.divf %109, %110 : vector<8x128xf32>
    %112 = vector.extract_strided_slice %92 {offsets = [0, 256], sizes = [8, 128], strides = [1, 1]} : vector<8x384xf32> to vector<8x128xf32>
    %113 = vector.extract_strided_slice %95 {offsets = [0, 256], sizes = [8, 128], strides = [1, 1]} : vector<8x384xf32> to vector<8x128xf32>
    %114 = vector.broadcast %16 : vector<1x128xf32> to vector<8x128xf32>
    %115 = arith.addf %113, %114 : vector<8x128xf32>
    %116 = arith.mulf %103, %115 : vector<8x128xf32>
    %117 = arith.addf %112, %116 : vector<8x128xf32>
    %118 = math.tanh %117 : vector<8x128xf32>
    %119 = arith.subf %86, %118 : vector<8x128xf32>
    %120 = arith.mulf %111, %119 : vector<8x128xf32>
    %121 = arith.addf %118, %120 : vector<8x128xf32>
    %122 = arith.index_cast %90 : i32 to index
    %c0_44 = arith.constant 0 : index
    %123 = vector.load %arg10[%122, %c0_44] : memref<64x128xf32, #tpu.memory_space<vmem>>, vector<8x128xf32>
    tpu.vector_store %arg10[%122, %c0_44], %121 {strides = array<i32>} : memref<64x128xf32, #tpu.memory_space<vmem>>, vector<8x128xf32>,
    %c3_i32 = arith.constant 3 : i32
    %c8_i32_45 = arith.constant 8 : i32
    %124 = arith.muli %c3_i32, %c8_i32_45 : i32
    %125 = tpu.assume_multiple %124, 8 : i32
    %126 = arith.index_cast %125 : i32 to index
    %c0_46 = arith.constant 0 : index
    %127 = vector.load %arg11[%126, %c0_46] : memref<64x384xf32, #tpu.memory_space<vmem>>, vector<8x384xf32>
    %c0_47 = arith.constant 0 : index
    %c0_48 = arith.constant 0 : index
    %c0_49 = arith.constant 0 : index
    %128 = vector.load %arg4[%c0_47, %c0_48, %c0_49] : memref<2x128x384xf32, #tpu.memory_space<vmem>>, vector<1x128x384xf32>
    %129 = vector.shape_cast %128 : vector<1x128x384xf32> to vector<128x384xf32>
    %cst_50 = arith.constant dense<0.000000e+00> : vector<8x384xf32>
    %130 = tpu.matmul %121, %129, %cst_50 {dimension_numbers = #tpu.dot_dimension_numbers<[1], [0], [0], [1], [0, 0, 1, 1], [], []>} : vector<8x128xf32>, vector<128x384xf32>, vector<8x384xf32> -> vector<8x384xf32>
    %131 = vector.extract_strided_slice %127 {offsets = [0, 0], sizes = [8, 128], strides = [1, 1]} : vector<8x384xf32> to vector<8x128xf32>
    %132 = vector.extract_strided_slice %130 {offsets = [0, 0], sizes = [8, 128], strides = [1, 1]} : vector<8x384xf32> to vector<8x128xf32>
    %133 = arith.addf %131, %132 : vector<8x128xf32>
    %134 = arith.negf %133 : vector<8x128xf32>
    %135 = math.exp %134 : vector<8x128xf32>
    %cst_51 = arith.constant 1.000000e+00 : f32
    %136 = vector.broadcast %cst_51 : f32 to vector<8x128xf32>
    %137 = arith.addf %136, %135 : vector<8x128xf32>
    %138 = arith.divf %136, %137 : vector<8x128xf32>
    %139 = vector.extract_strided_slice %127 {offsets = [0, 128], sizes = [8, 128], strides = [1, 1]} : vector<8x384xf32> to vector<8x128xf32>
    %140 = vector.extract_strided_slice %130 {offsets = [0, 128], sizes = [8, 128], strides = [1, 1]} : vector<8x384xf32> to vector<8x128xf32>
    %141 = arith.addf %139, %140 : vector<8x128xf32>
    %142 = arith.negf %141 : vector<8x128xf32>
    %143 = math.exp %142 : vector<8x128xf32>
    %cst_52 = arith.constant 1.000000e+00 : f32
    %144 = vector.broadcast %cst_52 : f32 to vector<8x128xf32>
    %145 = arith.addf %144, %143 : vector<8x128xf32>
    %146 = arith.divf %144, %145 : vector<8x128xf32>
    %147 = vector.extract_strided_slice %127 {offsets = [0, 256], sizes = [8, 128], strides = [1, 1]} : vector<8x384xf32> to vector<8x128xf32>
    %148 = vector.extract_strided_slice %130 {offsets = [0, 256], sizes = [8, 128], strides = [1, 1]} : vector<8x384xf32> to vector<8x128xf32>
    %149 = vector.broadcast %16 : vector<1x128xf32> to vector<8x128xf32>
    %150 = arith.addf %148, %149 : vector<8x128xf32>
    %151 = arith.mulf %138, %150 : vector<8x128xf32>
    %152 = arith.addf %147, %151 : vector<8x128xf32>
    %153 = math.tanh %152 : vector<8x128xf32>
    %154 = arith.subf %121, %153 : vector<8x128xf32>
    %155 = arith.mulf %146, %154 : vector<8x128xf32>
    %156 = arith.addf %153, %155 : vector<8x128xf32>
    %157 = arith.index_cast %125 : i32 to index
    %c0_53 = arith.constant 0 : index
    %158 = vector.load %arg10[%157, %c0_53] : memref<64x128xf32, #tpu.memory_space<vmem>>, vector<8x128xf32>
    tpu.vector_store %arg10[%157, %c0_53], %156 {strides = array<i32>} : memref<64x128xf32, #tpu.memory_space<vmem>>, vector<8x128xf32>,
    %c4_i32 = arith.constant 4 : i32
    %c8_i32_54 = arith.constant 8 : i32
    %159 = arith.muli %c4_i32, %c8_i32_54 : i32
    %160 = tpu.assume_multiple %159, 8 : i32
    %161 = arith.index_cast %160 : i32 to index
    %c0_55 = arith.constant 0 : index
    %162 = vector.load %arg11[%161, %c0_55] : memref<64x384xf32, #tpu.memory_space<vmem>>, vector<8x384xf32>
    %c0_56 = arith.constant 0 : index
    %c0_57 = arith.constant 0 : index
    %c0_58 = arith.constant 0 : index
    %163 = vector.load %arg4[%c0_56, %c0_57, %c0_58] : memref<2x128x384xf32, #tpu.memory_space<vmem>>, vector<1x128x384xf32>
    %164 = vector.shape_cast %163 : vector<1x128x384xf32> to vector<128x384xf32>
    %cst_59 = arith.constant dense<0.000000e+00> : vector<8x384xf32>
    %165 = tpu.matmul %156, %164, %cst_59 {dimension_numbers = #tpu.dot_dimension_numbers<[1], [0], [0], [1], [0, 0, 1, 1], [], []>} : vector<8x128xf32>, vector<128x384xf32>, vector<8x384xf32> -> vector<8x384xf32>
    %166 = vector.extract_strided_slice %162 {offsets = [0, 0], sizes = [8, 128], strides = [1, 1]} : vector<8x384xf32> to vector<8x128xf32>
    %167 = vector.extract_strided_slice %165 {offsets = [0, 0], sizes = [8, 128], strides = [1, 1]} : vector<8x384xf32> to vector<8x128xf32>
    %168 = arith.addf %166, %167 : vector<8x128xf32>
    %169 = arith.negf %168 : vector<8x128xf32>
    %170 = math.exp %169 : vector<8x128xf32>
    %cst_60 = arith.constant 1.000000e+00 : f32
    %171 = vector.broadcast %cst_60 : f32 to vector<8x128xf32>
    %172 = arith.addf %171, %170 : vector<8x128xf32>
    %173 = arith.divf %171, %172 : vector<8x128xf32>
    %174 = vector.extract_strided_slice %162 {offsets = [0, 128], sizes = [8, 128], strides = [1, 1]} : vector<8x384xf32> to vector<8x128xf32>
    %175 = vector.extract_strided_slice %165 {offsets = [0, 128], sizes = [8, 128], strides = [1, 1]} : vector<8x384xf32> to vector<8x128xf32>
    %176 = arith.addf %174, %175 : vector<8x128xf32>
    %177 = arith.negf %176 : vector<8x128xf32>
    %178 = math.exp %177 : vector<8x128xf32>
    %cst_61 = arith.constant 1.000000e+00 : f32
    %179 = vector.broadcast %cst_61 : f32 to vector<8x128xf32>
    %180 = arith.addf %179, %178 : vector<8x128xf32>
    %181 = arith.divf %179, %180 : vector<8x128xf32>
    %182 = vector.extract_strided_slice %162 {offsets = [0, 256], sizes = [8, 128], strides = [1, 1]} : vector<8x384xf32> to vector<8x128xf32>
    %183 = vector.extract_strided_slice %165 {offsets = [0, 256], sizes = [8, 128], strides = [1, 1]} : vector<8x384xf32> to vector<8x128xf32>
    %184 = vector.broadcast %16 : vector<1x128xf32> to vector<8x128xf32>
    %185 = arith.addf %183, %184 : vector<8x128xf32>
    %186 = arith.mulf %173, %185 : vector<8x128xf32>
    %187 = arith.addf %182, %186 : vector<8x128xf32>
    %188 = math.tanh %187 : vector<8x128xf32>
    %189 = arith.subf %156, %188 : vector<8x128xf32>
    %190 = arith.mulf %181, %189 : vector<8x128xf32>
    %191 = arith.addf %188, %190 : vector<8x128xf32>
    %192 = arith.index_cast %160 : i32 to index
    %c0_62 = arith.constant 0 : index
    %193 = vector.load %arg10[%192, %c0_62] : memref<64x128xf32, #tpu.memory_space<vmem>>, vector<8x128xf32>
    tpu.vector_store %arg10[%192, %c0_62], %191 {strides = array<i32>} : memref<64x128xf32, #tpu.memory_space<vmem>>, vector<8x128xf32>,
    %c5_i32 = arith.constant 5 : i32
    %c8_i32_63 = arith.constant 8 : i32
    %194 = arith.muli %c5_i32, %c8_i32_63 : i32
    %195 = tpu.assume_multiple %194, 8 : i32
    %196 = arith.index_cast %195 : i32 to index
    %c0_64 = arith.constant 0 : index
    %197 = vector.load %arg11[%196, %c0_64] : memref<64x384xf32, #tpu.memory_space<vmem>>, vector<8x384xf32>
    %c0_65 = arith.constant 0 : index
    %c0_66 = arith.constant 0 : index
    %c0_67 = arith.constant 0 : index
    %198 = vector.load %arg4[%c0_65, %c0_66, %c0_67] : memref<2x128x384xf32, #tpu.memory_space<vmem>>, vector<1x128x384xf32>
    %199 = vector.shape_cast %198 : vector<1x128x384xf32> to vector<128x384xf32>
    %cst_68 = arith.constant dense<0.000000e+00> : vector<8x384xf32>
    %200 = tpu.matmul %191, %199, %cst_68 {dimension_numbers = #tpu.dot_dimension_numbers<[1], [0], [0], [1], [0, 0, 1, 1], [], []>} : vector<8x128xf32>, vector<128x384xf32>, vector<8x384xf32> -> vector<8x384xf32>
    %201 = vector.extract_strided_slice %197 {offsets = [0, 0], sizes = [8, 128], strides = [1, 1]} : vector<8x384xf32> to vector<8x128xf32>
    %202 = vector.extract_strided_slice %200 {offsets = [0, 0], sizes = [8, 128], strides = [1, 1]} : vector<8x384xf32> to vector<8x128xf32>
    %203 = arith.addf %201, %202 : vector<8x128xf32>
    %204 = arith.negf %203 : vector<8x128xf32>
    %205 = math.exp %204 : vector<8x128xf32>
    %cst_69 = arith.constant 1.000000e+00 : f32
    %206 = vector.broadcast %cst_69 : f32 to vector<8x128xf32>
    %207 = arith.addf %206, %205 : vector<8x128xf32>
    %208 = arith.divf %206, %207 : vector<8x128xf32>
    %209 = vector.extract_strided_slice %197 {offsets = [0, 128], sizes = [8, 128], strides = [1, 1]} : vector<8x384xf32> to vector<8x128xf32>
    %210 = vector.extract_strided_slice %200 {offsets = [0, 128], sizes = [8, 128], strides = [1, 1]} : vector<8x384xf32> to vector<8x128xf32>
    %211 = arith.addf %209, %210 : vector<8x128xf32>
    %212 = arith.negf %211 : vector<8x128xf32>
    %213 = math.exp %212 : vector<8x128xf32>
    %cst_70 = arith.constant 1.000000e+00 : f32
    %214 = vector.broadcast %cst_70 : f32 to vector<8x128xf32>
    %215 = arith.addf %214, %213 : vector<8x128xf32>
    %216 = arith.divf %214, %215 : vector<8x128xf32>
    %217 = vector.extract_strided_slice %197 {offsets = [0, 256], sizes = [8, 128], strides = [1, 1]} : vector<8x384xf32> to vector<8x128xf32>
    %218 = vector.extract_strided_slice %200 {offsets = [0, 256], sizes = [8, 128], strides = [1, 1]} : vector<8x384xf32> to vector<8x128xf32>
    %219 = vector.broadcast %16 : vector<1x128xf32> to vector<8x128xf32>
    %220 = arith.addf %218, %219 : vector<8x128xf32>
    %221 = arith.mulf %208, %220 : vector<8x128xf32>
    %222 = arith.addf %217, %221 : vector<8x128xf32>
    %223 = math.tanh %222 : vector<8x128xf32>
    %224 = arith.subf %191, %223 : vector<8x128xf32>
    %225 = arith.mulf %216, %224 : vector<8x128xf32>
    %226 = arith.addf %223, %225 : vector<8x128xf32>
    %227 = arith.index_cast %195 : i32 to index
    %c0_71 = arith.constant 0 : index
    %228 = vector.load %arg10[%227, %c0_71] : memref<64x128xf32, #tpu.memory_space<vmem>>, vector<8x128xf32>
    tpu.vector_store %arg10[%227, %c0_71], %226 {strides = array<i32>} : memref<64x128xf32, #tpu.memory_space<vmem>>, vector<8x128xf32>,
    %c6_i32 = arith.constant 6 : i32
    %c8_i32_72 = arith.constant 8 : i32
    %229 = arith.muli %c6_i32, %c8_i32_72 : i32
    %230 = tpu.assume_multiple %229, 8 : i32
    %231 = arith.index_cast %230 : i32 to index
    %c0_73 = arith.constant 0 : index
    %232 = vector.load %arg11[%231, %c0_73] : memref<64x384xf32, #tpu.memory_space<vmem>>, vector<8x384xf32>
    %c0_74 = arith.constant 0 : index
    %c0_75 = arith.constant 0 : index
    %c0_76 = arith.constant 0 : index
    %233 = vector.load %arg4[%c0_74, %c0_75, %c0_76] : memref<2x128x384xf32, #tpu.memory_space<vmem>>, vector<1x128x384xf32>
    %234 = vector.shape_cast %233 : vector<1x128x384xf32> to vector<128x384xf32>
    %cst_77 = arith.constant dense<0.000000e+00> : vector<8x384xf32>
    %235 = tpu.matmul %226, %234, %cst_77 {dimension_numbers = #tpu.dot_dimension_numbers<[1], [0], [0], [1], [0, 0, 1, 1], [], []>} : vector<8x128xf32>, vector<128x384xf32>, vector<8x384xf32> -> vector<8x384xf32>
    %236 = vector.extract_strided_slice %232 {offsets = [0, 0], sizes = [8, 128], strides = [1, 1]} : vector<8x384xf32> to vector<8x128xf32>
    %237 = vector.extract_strided_slice %235 {offsets = [0, 0], sizes = [8, 128], strides = [1, 1]} : vector<8x384xf32> to vector<8x128xf32>
    %238 = arith.addf %236, %237 : vector<8x128xf32>
    %239 = arith.negf %238 : vector<8x128xf32>
    %240 = math.exp %239 : vector<8x128xf32>
    %cst_78 = arith.constant 1.000000e+00 : f32
    %241 = vector.broadcast %cst_78 : f32 to vector<8x128xf32>
    %242 = arith.addf %241, %240 : vector<8x128xf32>
    %243 = arith.divf %241, %242 : vector<8x128xf32>
    %244 = vector.extract_strided_slice %232 {offsets = [0, 128], sizes = [8, 128], strides = [1, 1]} : vector<8x384xf32> to vector<8x128xf32>
    %245 = vector.extract_strided_slice %235 {offsets = [0, 128], sizes = [8, 128], strides = [1, 1]} : vector<8x384xf32> to vector<8x128xf32>
    %246 = arith.addf %244, %245 : vector<8x128xf32>
    %247 = arith.negf %246 : vector<8x128xf32>
    %248 = math.exp %247 : vector<8x128xf32>
    %cst_79 = arith.constant 1.000000e+00 : f32
    %249 = vector.broadcast %cst_79 : f32 to vector<8x128xf32>
    %250 = arith.addf %249, %248 : vector<8x128xf32>
    %251 = arith.divf %249, %250 : vector<8x128xf32>
    %252 = vector.extract_strided_slice %232 {offsets = [0, 256], sizes = [8, 128], strides = [1, 1]} : vector<8x384xf32> to vector<8x128xf32>
    %253 = vector.extract_strided_slice %235 {offsets = [0, 256], sizes = [8, 128], strides = [1, 1]} : vector<8x384xf32> to vector<8x128xf32>
    %254 = vector.broadcast %16 : vector<1x128xf32> to vector<8x128xf32>
    %255 = arith.addf %253, %254 : vector<8x128xf32>
    %256 = arith.mulf %243, %255 : vector<8x128xf32>
    %257 = arith.addf %252, %256 : vector<8x128xf32>
    %258 = math.tanh %257 : vector<8x128xf32>
    %259 = arith.subf %226, %258 : vector<8x128xf32>
    %260 = arith.mulf %251, %259 : vector<8x128xf32>
    %261 = arith.addf %258, %260 : vector<8x128xf32>
    %262 = arith.index_cast %230 : i32 to index
    %c0_80 = arith.constant 0 : index
    %263 = vector.load %arg10[%262, %c0_80] : memref<64x128xf32, #tpu.memory_space<vmem>>, vector<8x128xf32>
    tpu.vector_store %arg10[%262, %c0_80], %261 {strides = array<i32>} : memref<64x128xf32, #tpu.memory_space<vmem>>, vector<8x128xf32>,
    %c7_i32_81 = arith.constant 7 : i32
    %c8_i32_82 = arith.constant 8 : i32
    %264 = arith.muli %c7_i32_81, %c8_i32_82 : i32
    %265 = tpu.assume_multiple %264, 8 : i32
    %266 = arith.index_cast %265 : i32 to index
    %c0_83 = arith.constant 0 : index
    %267 = vector.load %arg11[%266, %c0_83] : memref<64x384xf32, #tpu.memory_space<vmem>>, vector<8x384xf32>
    %c0_84 = arith.constant 0 : index
    %c0_85 = arith.constant 0 : index
    %c0_86 = arith.constant 0 : index
    %268 = vector.load %arg4[%c0_84, %c0_85, %c0_86] : memref<2x128x384xf32, #tpu.memory_space<vmem>>, vector<1x128x384xf32>
    %269 = vector.shape_cast %268 : vector<1x128x384xf32> to vector<128x384xf32>
    %cst_87 = arith.constant dense<0.000000e+00> : vector<8x384xf32>
    %270 = tpu.matmul %261, %269, %cst_87 {dimension_numbers = #tpu.dot_dimension_numbers<[1], [0], [0], [1], [0, 0, 1, 1], [], []>} : vector<8x128xf32>, vector<128x384xf32>, vector<8x384xf32> -> vector<8x384xf32>
    %271 = vector.extract_strided_slice %267 {offsets = [0, 0], sizes = [8, 128], strides = [1, 1]} : vector<8x384xf32> to vector<8x128xf32>
    %272 = vector.extract_strided_slice %270 {offsets = [0, 0], sizes = [8, 128], strides = [1, 1]} : vector<8x384xf32> to vector<8x128xf32>
    %273 = arith.addf %271, %272 : vector<8x128xf32>
    %274 = arith.negf %273 : vector<8x128xf32>
    %275 = math.exp %274 : vector<8x128xf32>
    %cst_88 = arith.constant 1.000000e+00 : f32
    %276 = vector.broadcast %cst_88 : f32 to vector<8x128xf32>
    %277 = arith.addf %276, %275 : vector<8x128xf32>
    %278 = arith.divf %276, %277 : vector<8x128xf32>
    %279 = vector.extract_strided_slice %267 {offsets = [0, 128], sizes = [8, 128], strides = [1, 1]} : vector<8x384xf32> to vector<8x128xf32>
    %280 = vector.extract_strided_slice %270 {offsets = [0, 128], sizes = [8, 128], strides = [1, 1]} : vector<8x384xf32> to vector<8x128xf32>
    %281 = arith.addf %279, %280 : vector<8x128xf32>
    %282 = arith.negf %281 : vector<8x128xf32>
    %283 = math.exp %282 : vector<8x128xf32>
    %cst_89 = arith.constant 1.000000e+00 : f32
    %284 = vector.broadcast %cst_89 : f32 to vector<8x128xf32>
    %285 = arith.addf %284, %283 : vector<8x128xf32>
    %286 = arith.divf %284, %285 : vector<8x128xf32>
    %287 = vector.extract_strided_slice %267 {offsets = [0, 256], sizes = [8, 128], strides = [1, 1]} : vector<8x384xf32> to vector<8x128xf32>
    %288 = vector.extract_strided_slice %270 {offsets = [0, 256], sizes = [8, 128], strides = [1, 1]} : vector<8x384xf32> to vector<8x128xf32>
    %289 = vector.broadcast %16 : vector<1x128xf32> to vector<8x128xf32>
    %290 = arith.addf %288, %289 : vector<8x128xf32>
    %291 = arith.mulf %278, %290 : vector<8x128xf32>
    %292 = arith.addf %287, %291 : vector<8x128xf32>
    %293 = math.tanh %292 : vector<8x128xf32>
    %294 = arith.subf %261, %293 : vector<8x128xf32>
    %295 = arith.mulf %286, %294 : vector<8x128xf32>
    %296 = arith.addf %293, %295 : vector<8x128xf32>
    %297 = arith.index_cast %265 : i32 to index
    %c0_90 = arith.constant 0 : index
    %298 = vector.load %arg10[%297, %c0_90] : memref<64x128xf32, #tpu.memory_space<vmem>>, vector<8x128xf32>
    tpu.vector_store %arg10[%297, %c0_90], %296 {strides = array<i32>} : memref<64x128xf32, #tpu.memory_space<vmem>>, vector<8x128xf32>,
    %c8_i32_91 = arith.constant 8 : i32
    %c0_92 = arith.constant 0 : index
    %c0_93 = arith.constant 0 : index
    %c0_94 = arith.constant 0 : index
    %299 = vector.load %arg9[%c0_92, %c0_93, %c0_94] : memref<2x8x128xf32, #tpu.memory_space<vmem>>, vector<1x8x128xf32>
    %300 = vector.shape_cast %299 : vector<1x8x128xf32> to vector<8x128xf32>
    %301 = vector.shape_cast %296 : vector<8x128xf32> to vector<1x8x128xf32>
    tpu.vector_store %arg9[%c0_92, %c0_93, %c0_94], %301 {strides = array<i32>} : memref<2x8x128xf32, #tpu.memory_space<vmem>>, vector<1x8x128xf32>,
    %c0_i32_95 = arith.constant 0 : i32
    %302 = arith.cmpi sge, %4, %c0_i32_95 : i32
    %c8_i32_96 = arith.constant 8 : i32
    %303 = arith.cmpi slt, %4, %c8_i32_96 : i32
    %304 = arith.andi %302, %303 : i1
    %305 = arith.extui %304 : i1 to i32
    %c0_i32_97 = arith.constant 0 : i32
    %306 = arith.cmpi ne, %305, %c0_i32_97 : i32
    scf.if %306 {
      %c8_i32_209 = arith.constant 8 : i32
      %624 = arith.muli %4, %c8_i32_209 : i32
      %625 = tpu.assume_multiple %624, 8 : i32
      %626 = arith.index_cast %625 : i32 to index
      %c0_210 = arith.constant 0 : index
      %627 = vector.load %arg10[%626, %c0_210] : memref<64x128xf32, #tpu.memory_space<vmem>>, vector<8x128xf32>
      %c0_211 = arith.constant 0 : index
      %c0_212 = arith.constant 0 : index
      %c0_213 = arith.constant 0 : index
      %628 = vector.load %arg8[%c0_211, %c0_212, %c0_213] : memref<2x8x128xf32, #tpu.memory_space<vmem>>, vector<1x8x128xf32>
      %629 = vector.shape_cast %628 : vector<1x8x128xf32> to vector<8x128xf32>
      %630 = vector.shape_cast %627 : vector<8x128xf32> to vector<1x8x128xf32>
      tpu.vector_store %arg8[%c0_211, %c0_212, %c0_213], %630 {strides = array<i32>} : memref<2x8x128xf32, #tpu.memory_space<vmem>>, vector<1x8x128xf32>,
    } else {
    }
    %c0_98 = arith.constant 0 : index
    %c0_99 = arith.constant 0 : index
    %307 = vector.load %arg10[%c0_98, %c0_99] : memref<64x128xf32, #tpu.memory_space<vmem>>, vector<64x128xf32>
    %c1 = arith.constant 1 : index
    %c0_100 = arith.constant 0 : index
    %c0_101 = arith.constant 0 : index
    %308 = vector.load %arg3[%c1, %c0_100, %c0_101] : memref<2x128x384xf32, #tpu.memory_space<vmem>>, vector<1x128x384xf32>
    %309 = vector.shape_cast %308 : vector<1x128x384xf32> to vector<128x384xf32>
    %cst_102 = arith.constant dense<0.000000e+00> : vector<64x384xf32>
    %310 = tpu.matmul %307, %309, %cst_102 {dimension_numbers = #tpu.dot_dimension_numbers<[1], [0], [0], [1], [0, 0, 1, 1], [], []>} : vector<64x128xf32>, vector<128x384xf32>, vector<64x384xf32> -> vector<64x384xf32>
    %c1_103 = arith.constant 1 : index
    %c0_104 = arith.constant 0 : index
    %c0_105 = arith.constant 0 : index
    %311 = vector.load %arg5[%c1_103, %c0_104, %c0_105] : memref<2x1x384xf32, #tpu.memory_space<vmem>>, vector<1x1x384xf32>
    %312 = vector.shape_cast %311 : vector<1x1x384xf32> to vector<1x384xf32>
    %313 = vector.broadcast %312 : vector<1x384xf32> to vector<64x384xf32>
    %314 = arith.addf %310, %313 : vector<64x384xf32>
    %c0_106 = arith.constant 0 : index
    %c0_107 = arith.constant 0 : index
    %315 = vector.load %arg11[%c0_106, %c0_107] : memref<64x384xf32, #tpu.memory_space<vmem>>, vector<64x384xf32>
    tpu.vector_store %arg11[%c0_106, %c0_107], %314 {strides = array<i32>} : memref<64x384xf32, #tpu.memory_space<vmem>>, vector<64x384xf32>,
    %c1_108 = arith.constant 1 : index
    %c0_109 = arith.constant 0 : index
    %c0_110 = arith.constant 0 : index
    %316 = vector.load %arg6[%c1_108, %c0_109, %c0_110] : memref<2x1x128xf32, #tpu.memory_space<vmem>>, vector<1x1x128xf32>
    %317 = vector.shape_cast %316 : vector<1x1x128xf32> to vector<1x128xf32>
    %c1_111 = arith.constant 1 : index
    %c0_112 = arith.constant 0 : index
    %c0_113 = arith.constant 0 : index
    %318 = vector.load %arg9[%c1_111, %c0_112, %c0_113] : memref<2x8x128xf32, #tpu.memory_space<vmem>>, vector<1x8x128xf32>
    %319 = vector.shape_cast %318 : vector<1x8x128xf32> to vector<8x128xf32>
    %c0_i32_114 = arith.constant 0 : i32
    %c8_i32_115 = arith.constant 8 : i32
    %320 = arith.muli %c0_i32_114, %c8_i32_115 : i32
    %321 = tpu.assume_multiple %320, 8 : i32
    %322 = arith.index_cast %321 : i32 to index
    %c0_116 = arith.constant 0 : index
    %323 = vector.load %arg11[%322, %c0_116] : memref<64x384xf32, #tpu.memory_space<vmem>>, vector<8x384xf32>
    %c1_117 = arith.constant 1 : index
    %c0_118 = arith.constant 0 : index
    %c0_119 = arith.constant 0 : index
    %324 = vector.load %arg4[%c1_117, %c0_118, %c0_119] : memref<2x128x384xf32, #tpu.memory_space<vmem>>, vector<1x128x384xf32>
    %325 = vector.shape_cast %324 : vector<1x128x384xf32> to vector<128x384xf32>
    %cst_120 = arith.constant dense<0.000000e+00> : vector<8x384xf32>
    %326 = tpu.matmul %319, %325, %cst_120 {dimension_numbers = #tpu.dot_dimension_numbers<[1], [0], [0], [1], [0, 0, 1, 1], [], []>} : vector<8x128xf32>, vector<128x384xf32>, vector<8x384xf32> -> vector<8x384xf32>
    %327 = vector.extract_strided_slice %323 {offsets = [0, 0], sizes = [8, 128], strides = [1, 1]} : vector<8x384xf32> to vector<8x128xf32>
    %328 = vector.extract_strided_slice %326 {offsets = [0, 0], sizes = [8, 128], strides = [1, 1]} : vector<8x384xf32> to vector<8x128xf32>
    %329 = arith.addf %327, %328 : vector<8x128xf32>
    %330 = arith.negf %329 : vector<8x128xf32>
    %331 = math.exp %330 : vector<8x128xf32>
    %cst_121 = arith.constant 1.000000e+00 : f32
    %332 = vector.broadcast %cst_121 : f32 to vector<8x128xf32>
    %333 = arith.addf %332, %331 : vector<8x128xf32>
    %334 = arith.divf %332, %333 : vector<8x128xf32>
    %335 = vector.extract_strided_slice %323 {offsets = [0, 128], sizes = [8, 128], strides = [1, 1]} : vector<8x384xf32> to vector<8x128xf32>
    %336 = vector.extract_strided_slice %326 {offsets = [0, 128], sizes = [8, 128], strides = [1, 1]} : vector<8x384xf32> to vector<8x128xf32>
    %337 = arith.addf %335, %336 : vector<8x128xf32>
    %338 = arith.negf %337 : vector<8x128xf32>
    %339 = math.exp %338 : vector<8x128xf32>
    %cst_122 = arith.constant 1.000000e+00 : f32
    %340 = vector.broadcast %cst_122 : f32 to vector<8x128xf32>
    %341 = arith.addf %340, %339 : vector<8x128xf32>
    %342 = arith.divf %340, %341 : vector<8x128xf32>
    %343 = vector.extract_strided_slice %323 {offsets = [0, 256], sizes = [8, 128], strides = [1, 1]} : vector<8x384xf32> to vector<8x128xf32>
    %344 = vector.extract_strided_slice %326 {offsets = [0, 256], sizes = [8, 128], strides = [1, 1]} : vector<8x384xf32> to vector<8x128xf32>
    %345 = vector.broadcast %317 : vector<1x128xf32> to vector<8x128xf32>
    %346 = arith.addf %344, %345 : vector<8x128xf32>
    %347 = arith.mulf %334, %346 : vector<8x128xf32>
    %348 = arith.addf %343, %347 : vector<8x128xf32>
    %349 = math.tanh %348 : vector<8x128xf32>
    %350 = arith.subf %319, %349 : vector<8x128xf32>
    %351 = arith.mulf %342, %350 : vector<8x128xf32>
    %352 = arith.addf %349, %351 : vector<8x128xf32>
    %353 = arith.index_cast %c0_i32_114 : i32 to index
    %c0_123 = arith.constant 0 : index
    %c0_124 = arith.constant 0 : index
    %354 = vector.load %arg7[%353, %c0_123, %c0_124] : memref<8x8x128xf32, #tpu.memory_space<vmem>>, vector<1x8x128xf32>
    %355 = vector.shape_cast %354 : vector<1x8x128xf32> to vector<8x128xf32>
    %356 = vector.shape_cast %352 : vector<8x128xf32> to vector<1x8x128xf32>
    tpu.vector_store %arg7[%353, %c0_123, %c0_124], %356 {strides = array<i32>} : memref<8x8x128xf32, #tpu.memory_space<vmem>>, vector<1x8x128xf32>,
    %c1_i32_125 = arith.constant 1 : i32
    %c8_i32_126 = arith.constant 8 : i32
    %357 = arith.muli %c1_i32_125, %c8_i32_126 : i32
    %358 = tpu.assume_multiple %357, 8 : i32
    %359 = arith.index_cast %358 : i32 to index
    %c0_127 = arith.constant 0 : index
    %360 = vector.load %arg11[%359, %c0_127] : memref<64x384xf32, #tpu.memory_space<vmem>>, vector<8x384xf32>
    %c1_128 = arith.constant 1 : index
    %c0_129 = arith.constant 0 : index
    %c0_130 = arith.constant 0 : index
    %361 = vector.load %arg4[%c1_128, %c0_129, %c0_130] : memref<2x128x384xf32, #tpu.memory_space<vmem>>, vector<1x128x384xf32>
    %362 = vector.shape_cast %361 : vector<1x128x384xf32> to vector<128x384xf32>
    %cst_131 = arith.constant dense<0.000000e+00> : vector<8x384xf32>
    %363 = tpu.matmul %352, %362, %cst_131 {dimension_numbers = #tpu.dot_dimension_numbers<[1], [0], [0], [1], [0, 0, 1, 1], [], []>} : vector<8x128xf32>, vector<128x384xf32>, vector<8x384xf32> -> vector<8x384xf32>
    %364 = vector.extract_strided_slice %360 {offsets = [0, 0], sizes = [8, 128], strides = [1, 1]} : vector<8x384xf32> to vector<8x128xf32>
    %365 = vector.extract_strided_slice %363 {offsets = [0, 0], sizes = [8, 128], strides = [1, 1]} : vector<8x384xf32> to vector<8x128xf32>
    %366 = arith.addf %364, %365 : vector<8x128xf32>
    %367 = arith.negf %366 : vector<8x128xf32>
    %368 = math.exp %367 : vector<8x128xf32>
    %cst_132 = arith.constant 1.000000e+00 : f32
    %369 = vector.broadcast %cst_132 : f32 to vector<8x128xf32>
    %370 = arith.addf %369, %368 : vector<8x128xf32>
    %371 = arith.divf %369, %370 : vector<8x128xf32>
    %372 = vector.extract_strided_slice %360 {offsets = [0, 128], sizes = [8, 128], strides = [1, 1]} : vector<8x384xf32> to vector<8x128xf32>
    %373 = vector.extract_strided_slice %363 {offsets = [0, 128], sizes = [8, 128], strides = [1, 1]} : vector<8x384xf32> to vector<8x128xf32>
    %374 = arith.addf %372, %373 : vector<8x128xf32>
    %375 = arith.negf %374 : vector<8x128xf32>
    %376 = math.exp %375 : vector<8x128xf32>
    %cst_133 = arith.constant 1.000000e+00 : f32
    %377 = vector.broadcast %cst_133 : f32 to vector<8x128xf32>
    %378 = arith.addf %377, %376 : vector<8x128xf32>
    %379 = arith.divf %377, %378 : vector<8x128xf32>
    %380 = vector.extract_strided_slice %360 {offsets = [0, 256], sizes = [8, 128], strides = [1, 1]} : vector<8x384xf32> to vector<8x128xf32>
    %381 = vector.extract_strided_slice %363 {offsets = [0, 256], sizes = [8, 128], strides = [1, 1]} : vector<8x384xf32> to vector<8x128xf32>
    %382 = vector.broadcast %317 : vector<1x128xf32> to vector<8x128xf32>
    %383 = arith.addf %381, %382 : vector<8x128xf32>
    %384 = arith.mulf %371, %383 : vector<8x128xf32>
    %385 = arith.addf %380, %384 : vector<8x128xf32>
    %386 = math.tanh %385 : vector<8x128xf32>
    %387 = arith.subf %352, %386 : vector<8x128xf32>
    %388 = arith.mulf %379, %387 : vector<8x128xf32>
    %389 = arith.addf %386, %388 : vector<8x128xf32>
    %390 = arith.index_cast %c1_i32_125 : i32 to index
    %c0_134 = arith.constant 0 : index
    %c0_135 = arith.constant 0 : index
    %391 = vector.load %arg7[%390, %c0_134, %c0_135] : memref<8x8x128xf32, #tpu.memory_space<vmem>>, vector<1x8x128xf32>
    %392 = vector.shape_cast %391 : vector<1x8x128xf32> to vector<8x128xf32>
    %393 = vector.shape_cast %389 : vector<8x128xf32> to vector<1x8x128xf32>
    tpu.vector_store %arg7[%390, %c0_134, %c0_135], %393 {strides = array<i32>} : memref<8x8x128xf32, #tpu.memory_space<vmem>>, vector<1x8x128xf32>,
    %c2_i32_136 = arith.constant 2 : i32
    %c8_i32_137 = arith.constant 8 : i32
    %394 = arith.muli %c2_i32_136, %c8_i32_137 : i32
    %395 = tpu.assume_multiple %394, 8 : i32
    %396 = arith.index_cast %395 : i32 to index
    %c0_138 = arith.constant 0 : index
    %397 = vector.load %arg11[%396, %c0_138] : memref<64x384xf32, #tpu.memory_space<vmem>>, vector<8x384xf32>
    %c1_139 = arith.constant 1 : index
    %c0_140 = arith.constant 0 : index
    %c0_141 = arith.constant 0 : index
    %398 = vector.load %arg4[%c1_139, %c0_140, %c0_141] : memref<2x128x384xf32, #tpu.memory_space<vmem>>, vector<1x128x384xf32>
    %399 = vector.shape_cast %398 : vector<1x128x384xf32> to vector<128x384xf32>
    %cst_142 = arith.constant dense<0.000000e+00> : vector<8x384xf32>
    %400 = tpu.matmul %389, %399, %cst_142 {dimension_numbers = #tpu.dot_dimension_numbers<[1], [0], [0], [1], [0, 0, 1, 1], [], []>} : vector<8x128xf32>, vector<128x384xf32>, vector<8x384xf32> -> vector<8x384xf32>
    %401 = vector.extract_strided_slice %397 {offsets = [0, 0], sizes = [8, 128], strides = [1, 1]} : vector<8x384xf32> to vector<8x128xf32>
    %402 = vector.extract_strided_slice %400 {offsets = [0, 0], sizes = [8, 128], strides = [1, 1]} : vector<8x384xf32> to vector<8x128xf32>
    %403 = arith.addf %401, %402 : vector<8x128xf32>
    %404 = arith.negf %403 : vector<8x128xf32>
    %405 = math.exp %404 : vector<8x128xf32>
    %cst_143 = arith.constant 1.000000e+00 : f32
    %406 = vector.broadcast %cst_143 : f32 to vector<8x128xf32>
    %407 = arith.addf %406, %405 : vector<8x128xf32>
    %408 = arith.divf %406, %407 : vector<8x128xf32>
    %409 = vector.extract_strided_slice %397 {offsets = [0, 128], sizes = [8, 128], strides = [1, 1]} : vector<8x384xf32> to vector<8x128xf32>
    %410 = vector.extract_strided_slice %400 {offsets = [0, 128], sizes = [8, 128], strides = [1, 1]} : vector<8x384xf32> to vector<8x128xf32>
    %411 = arith.addf %409, %410 : vector<8x128xf32>
    %412 = arith.negf %411 : vector<8x128xf32>
    %413 = math.exp %412 : vector<8x128xf32>
    %cst_144 = arith.constant 1.000000e+00 : f32
    %414 = vector.broadcast %cst_144 : f32 to vector<8x128xf32>
    %415 = arith.addf %414, %413 : vector<8x128xf32>
    %416 = arith.divf %414, %415 : vector<8x128xf32>
    %417 = vector.extract_strided_slice %397 {offsets = [0, 256], sizes = [8, 128], strides = [1, 1]} : vector<8x384xf32> to vector<8x128xf32>
    %418 = vector.extract_strided_slice %400 {offsets = [0, 256], sizes = [8, 128], strides = [1, 1]} : vector<8x384xf32> to vector<8x128xf32>
    %419 = vector.broadcast %317 : vector<1x128xf32> to vector<8x128xf32>
    %420 = arith.addf %418, %419 : vector<8x128xf32>
    %421 = arith.mulf %408, %420 : vector<8x128xf32>
    %422 = arith.addf %417, %421 : vector<8x128xf32>
    %423 = math.tanh %422 : vector<8x128xf32>
    %424 = arith.subf %389, %423 : vector<8x128xf32>
    %425 = arith.mulf %416, %424 : vector<8x128xf32>
    %426 = arith.addf %423, %425 : vector<8x128xf32>
    %427 = arith.index_cast %c2_i32_136 : i32 to index
    %c0_145 = arith.constant 0 : index
    %c0_146 = arith.constant 0 : index
    %428 = vector.load %arg7[%427, %c0_145, %c0_146] : memref<8x8x128xf32, #tpu.memory_space<vmem>>, vector<1x8x128xf32>
    %429 = vector.shape_cast %428 : vector<1x8x128xf32> to vector<8x128xf32>
    %430 = vector.shape_cast %426 : vector<8x128xf32> to vector<1x8x128xf32>
    tpu.vector_store %arg7[%427, %c0_145, %c0_146], %430 {strides = array<i32>} : memref<8x8x128xf32, #tpu.memory_space<vmem>>, vector<1x8x128xf32>,
    %c3_i32_147 = arith.constant 3 : i32
    %c8_i32_148 = arith.constant 8 : i32
    %431 = arith.muli %c3_i32_147, %c8_i32_148 : i32
    %432 = tpu.assume_multiple %431, 8 : i32
    %433 = arith.index_cast %432 : i32 to index
    %c0_149 = arith.constant 0 : index
    %434 = vector.load %arg11[%433, %c0_149] : memref<64x384xf32, #tpu.memory_space<vmem>>, vector<8x384xf32>
    %c1_150 = arith.constant 1 : index
    %c0_151 = arith.constant 0 : index
    %c0_152 = arith.constant 0 : index
    %435 = vector.load %arg4[%c1_150, %c0_151, %c0_152] : memref<2x128x384xf32, #tpu.memory_space<vmem>>, vector<1x128x384xf32>
    %436 = vector.shape_cast %435 : vector<1x128x384xf32> to vector<128x384xf32>
    %cst_153 = arith.constant dense<0.000000e+00> : vector<8x384xf32>
    %437 = tpu.matmul %426, %436, %cst_153 {dimension_numbers = #tpu.dot_dimension_numbers<[1], [0], [0], [1], [0, 0, 1, 1], [], []>} : vector<8x128xf32>, vector<128x384xf32>, vector<8x384xf32> -> vector<8x384xf32>
    %438 = vector.extract_strided_slice %434 {offsets = [0, 0], sizes = [8, 128], strides = [1, 1]} : vector<8x384xf32> to vector<8x128xf32>
    %439 = vector.extract_strided_slice %437 {offsets = [0, 0], sizes = [8, 128], strides = [1, 1]} : vector<8x384xf32> to vector<8x128xf32>
    %440 = arith.addf %438, %439 : vector<8x128xf32>
    %441 = arith.negf %440 : vector<8x128xf32>
    %442 = math.exp %441 : vector<8x128xf32>
    %cst_154 = arith.constant 1.000000e+00 : f32
    %443 = vector.broadcast %cst_154 : f32 to vector<8x128xf32>
    %444 = arith.addf %443, %442 : vector<8x128xf32>
    %445 = arith.divf %443, %444 : vector<8x128xf32>
    %446 = vector.extract_strided_slice %434 {offsets = [0, 128], sizes = [8, 128], strides = [1, 1]} : vector<8x384xf32> to vector<8x128xf32>
    %447 = vector.extract_strided_slice %437 {offsets = [0, 128], sizes = [8, 128], strides = [1, 1]} : vector<8x384xf32> to vector<8x128xf32>
    %448 = arith.addf %446, %447 : vector<8x128xf32>
    %449 = arith.negf %448 : vector<8x128xf32>
    %450 = math.exp %449 : vector<8x128xf32>
    %cst_155 = arith.constant 1.000000e+00 : f32
    %451 = vector.broadcast %cst_155 : f32 to vector<8x128xf32>
    %452 = arith.addf %451, %450 : vector<8x128xf32>
    %453 = arith.divf %451, %452 : vector<8x128xf32>
    %454 = vector.extract_strided_slice %434 {offsets = [0, 256], sizes = [8, 128], strides = [1, 1]} : vector<8x384xf32> to vector<8x128xf32>
    %455 = vector.extract_strided_slice %437 {offsets = [0, 256], sizes = [8, 128], strides = [1, 1]} : vector<8x384xf32> to vector<8x128xf32>
    %456 = vector.broadcast %317 : vector<1x128xf32> to vector<8x128xf32>
    %457 = arith.addf %455, %456 : vector<8x128xf32>
    %458 = arith.mulf %445, %457 : vector<8x128xf32>
    %459 = arith.addf %454, %458 : vector<8x128xf32>
    %460 = math.tanh %459 : vector<8x128xf32>
    %461 = arith.subf %426, %460 : vector<8x128xf32>
    %462 = arith.mulf %453, %461 : vector<8x128xf32>
    %463 = arith.addf %460, %462 : vector<8x128xf32>
    %464 = arith.index_cast %c3_i32_147 : i32 to index
    %c0_156 = arith.constant 0 : index
    %c0_157 = arith.constant 0 : index
    %465 = vector.load %arg7[%464, %c0_156, %c0_157] : memref<8x8x128xf32, #tpu.memory_space<vmem>>, vector<1x8x128xf32>
    %466 = vector.shape_cast %465 : vector<1x8x128xf32> to vector<8x128xf32>
    %467 = vector.shape_cast %463 : vector<8x128xf32> to vector<1x8x128xf32>
    tpu.vector_store %arg7[%464, %c0_156, %c0_157], %467 {strides = array<i32>} : memref<8x8x128xf32, #tpu.memory_space<vmem>>, vector<1x8x128xf32>,
    %c4_i32_158 = arith.constant 4 : i32
    %c8_i32_159 = arith.constant 8 : i32
    %468 = arith.muli %c4_i32_158, %c8_i32_159 : i32
    %469 = tpu.assume_multiple %468, 8 : i32
    %470 = arith.index_cast %469 : i32 to index
    %c0_160 = arith.constant 0 : index
    %471 = vector.load %arg11[%470, %c0_160] : memref<64x384xf32, #tpu.memory_space<vmem>>, vector<8x384xf32>
    %c1_161 = arith.constant 1 : index
    %c0_162 = arith.constant 0 : index
    %c0_163 = arith.constant 0 : index
    %472 = vector.load %arg4[%c1_161, %c0_162, %c0_163] : memref<2x128x384xf32, #tpu.memory_space<vmem>>, vector<1x128x384xf32>
    %473 = vector.shape_cast %472 : vector<1x128x384xf32> to vector<128x384xf32>
    %cst_164 = arith.constant dense<0.000000e+00> : vector<8x384xf32>
    %474 = tpu.matmul %463, %473, %cst_164 {dimension_numbers = #tpu.dot_dimension_numbers<[1], [0], [0], [1], [0, 0, 1, 1], [], []>} : vector<8x128xf32>, vector<128x384xf32>, vector<8x384xf32> -> vector<8x384xf32>
    %475 = vector.extract_strided_slice %471 {offsets = [0, 0], sizes = [8, 128], strides = [1, 1]} : vector<8x384xf32> to vector<8x128xf32>
    %476 = vector.extract_strided_slice %474 {offsets = [0, 0], sizes = [8, 128], strides = [1, 1]} : vector<8x384xf32> to vector<8x128xf32>
    %477 = arith.addf %475, %476 : vector<8x128xf32>
    %478 = arith.negf %477 : vector<8x128xf32>
    %479 = math.exp %478 : vector<8x128xf32>
    %cst_165 = arith.constant 1.000000e+00 : f32
    %480 = vector.broadcast %cst_165 : f32 to vector<8x128xf32>
    %481 = arith.addf %480, %479 : vector<8x128xf32>
    %482 = arith.divf %480, %481 : vector<8x128xf32>
    %483 = vector.extract_strided_slice %471 {offsets = [0, 128], sizes = [8, 128], strides = [1, 1]} : vector<8x384xf32> to vector<8x128xf32>
    %484 = vector.extract_strided_slice %474 {offsets = [0, 128], sizes = [8, 128], strides = [1, 1]} : vector<8x384xf32> to vector<8x128xf32>
    %485 = arith.addf %483, %484 : vector<8x128xf32>
    %486 = arith.negf %485 : vector<8x128xf32>
    %487 = math.exp %486 : vector<8x128xf32>
    %cst_166 = arith.constant 1.000000e+00 : f32
    %488 = vector.broadcast %cst_166 : f32 to vector<8x128xf32>
    %489 = arith.addf %488, %487 : vector<8x128xf32>
    %490 = arith.divf %488, %489 : vector<8x128xf32>
    %491 = vector.extract_strided_slice %471 {offsets = [0, 256], sizes = [8, 128], strides = [1, 1]} : vector<8x384xf32> to vector<8x128xf32>
    %492 = vector.extract_strided_slice %474 {offsets = [0, 256], sizes = [8, 128], strides = [1, 1]} : vector<8x384xf32> to vector<8x128xf32>
    %493 = vector.broadcast %317 : vector<1x128xf32> to vector<8x128xf32>
    %494 = arith.addf %492, %493 : vector<8x128xf32>
    %495 = arith.mulf %482, %494 : vector<8x128xf32>
    %496 = arith.addf %491, %495 : vector<8x128xf32>
    %497 = math.tanh %496 : vector<8x128xf32>
    %498 = arith.subf %463, %497 : vector<8x128xf32>
    %499 = arith.mulf %490, %498 : vector<8x128xf32>
    %500 = arith.addf %497, %499 : vector<8x128xf32>
    %501 = arith.index_cast %c4_i32_158 : i32 to index
    %c0_167 = arith.constant 0 : index
    %c0_168 = arith.constant 0 : index
    %502 = vector.load %arg7[%501, %c0_167, %c0_168] : memref<8x8x128xf32, #tpu.memory_space<vmem>>, vector<1x8x128xf32>
    %503 = vector.shape_cast %502 : vector<1x8x128xf32> to vector<8x128xf32>
    %504 = vector.shape_cast %500 : vector<8x128xf32> to vector<1x8x128xf32>
    tpu.vector_store %arg7[%501, %c0_167, %c0_168], %504 {strides = array<i32>} : memref<8x8x128xf32, #tpu.memory_space<vmem>>, vector<1x8x128xf32>,
    %c5_i32_169 = arith.constant 5 : i32
    %c8_i32_170 = arith.constant 8 : i32
    %505 = arith.muli %c5_i32_169, %c8_i32_170 : i32
    %506 = tpu.assume_multiple %505, 8 : i32
    %507 = arith.index_cast %506 : i32 to index
    %c0_171 = arith.constant 0 : index
    %508 = vector.load %arg11[%507, %c0_171] : memref<64x384xf32, #tpu.memory_space<vmem>>, vector<8x384xf32>
    %c1_172 = arith.constant 1 : index
    %c0_173 = arith.constant 0 : index
    %c0_174 = arith.constant 0 : index
    %509 = vector.load %arg4[%c1_172, %c0_173, %c0_174] : memref<2x128x384xf32, #tpu.memory_space<vmem>>, vector<1x128x384xf32>
    %510 = vector.shape_cast %509 : vector<1x128x384xf32> to vector<128x384xf32>
    %cst_175 = arith.constant dense<0.000000e+00> : vector<8x384xf32>
    %511 = tpu.matmul %500, %510, %cst_175 {dimension_numbers = #tpu.dot_dimension_numbers<[1], [0], [0], [1], [0, 0, 1, 1], [], []>} : vector<8x128xf32>, vector<128x384xf32>, vector<8x384xf32> -> vector<8x384xf32>
    %512 = vector.extract_strided_slice %508 {offsets = [0, 0], sizes = [8, 128], strides = [1, 1]} : vector<8x384xf32> to vector<8x128xf32>
    %513 = vector.extract_strided_slice %511 {offsets = [0, 0], sizes = [8, 128], strides = [1, 1]} : vector<8x384xf32> to vector<8x128xf32>
    %514 = arith.addf %512, %513 : vector<8x128xf32>
    %515 = arith.negf %514 : vector<8x128xf32>
    %516 = math.exp %515 : vector<8x128xf32>
    %cst_176 = arith.constant 1.000000e+00 : f32
    %517 = vector.broadcast %cst_176 : f32 to vector<8x128xf32>
    %518 = arith.addf %517, %516 : vector<8x128xf32>
    %519 = arith.divf %517, %518 : vector<8x128xf32>
    %520 = vector.extract_strided_slice %508 {offsets = [0, 128], sizes = [8, 128], strides = [1, 1]} : vector<8x384xf32> to vector<8x128xf32>
    %521 = vector.extract_strided_slice %511 {offsets = [0, 128], sizes = [8, 128], strides = [1, 1]} : vector<8x384xf32> to vector<8x128xf32>
    %522 = arith.addf %520, %521 : vector<8x128xf32>
    %523 = arith.negf %522 : vector<8x128xf32>
    %524 = math.exp %523 : vector<8x128xf32>
    %cst_177 = arith.constant 1.000000e+00 : f32
    %525 = vector.broadcast %cst_177 : f32 to vector<8x128xf32>
    %526 = arith.addf %525, %524 : vector<8x128xf32>
    %527 = arith.divf %525, %526 : vector<8x128xf32>
    %528 = vector.extract_strided_slice %508 {offsets = [0, 256], sizes = [8, 128], strides = [1, 1]} : vector<8x384xf32> to vector<8x128xf32>
    %529 = vector.extract_strided_slice %511 {offsets = [0, 256], sizes = [8, 128], strides = [1, 1]} : vector<8x384xf32> to vector<8x128xf32>
    %530 = vector.broadcast %317 : vector<1x128xf32> to vector<8x128xf32>
    %531 = arith.addf %529, %530 : vector<8x128xf32>
    %532 = arith.mulf %519, %531 : vector<8x128xf32>
    %533 = arith.addf %528, %532 : vector<8x128xf32>
    %534 = math.tanh %533 : vector<8x128xf32>
    %535 = arith.subf %500, %534 : vector<8x128xf32>
    %536 = arith.mulf %527, %535 : vector<8x128xf32>
    %537 = arith.addf %534, %536 : vector<8x128xf32>
    %538 = arith.index_cast %c5_i32_169 : i32 to index
    %c0_178 = arith.constant 0 : index
    %c0_179 = arith.constant 0 : index
    %539 = vector.load %arg7[%538, %c0_178, %c0_179] : memref<8x8x128xf32, #tpu.memory_space<vmem>>, vector<1x8x128xf32>
    %540 = vector.shape_cast %539 : vector<1x8x128xf32> to vector<8x128xf32>
    %541 = vector.shape_cast %537 : vector<8x128xf32> to vector<1x8x128xf32>
    tpu.vector_store %arg7[%538, %c0_178, %c0_179], %541 {strides = array<i32>} : memref<8x8x128xf32, #tpu.memory_space<vmem>>, vector<1x8x128xf32>,
    %c6_i32_180 = arith.constant 6 : i32
    %c8_i32_181 = arith.constant 8 : i32
    %542 = arith.muli %c6_i32_180, %c8_i32_181 : i32
    %543 = tpu.assume_multiple %542, 8 : i32
    %544 = arith.index_cast %543 : i32 to index
    %c0_182 = arith.constant 0 : index
    %545 = vector.load %arg11[%544, %c0_182] : memref<64x384xf32, #tpu.memory_space<vmem>>, vector<8x384xf32>
    %c1_183 = arith.constant 1 : index
    %c0_184 = arith.constant 0 : index
    %c0_185 = arith.constant 0 : index
    %546 = vector.load %arg4[%c1_183, %c0_184, %c0_185] : memref<2x128x384xf32, #tpu.memory_space<vmem>>, vector<1x128x384xf32>
    %547 = vector.shape_cast %546 : vector<1x128x384xf32> to vector<128x384xf32>
    %cst_186 = arith.constant dense<0.000000e+00> : vector<8x384xf32>
    %548 = tpu.matmul %537, %547, %cst_186 {dimension_numbers = #tpu.dot_dimension_numbers<[1], [0], [0], [1], [0, 0, 1, 1], [], []>} : vector<8x128xf32>, vector<128x384xf32>, vector<8x384xf32> -> vector<8x384xf32>
    %549 = vector.extract_strided_slice %545 {offsets = [0, 0], sizes = [8, 128], strides = [1, 1]} : vector<8x384xf32> to vector<8x128xf32>
    %550 = vector.extract_strided_slice %548 {offsets = [0, 0], sizes = [8, 128], strides = [1, 1]} : vector<8x384xf32> to vector<8x128xf32>
    %551 = arith.addf %549, %550 : vector<8x128xf32>
    %552 = arith.negf %551 : vector<8x128xf32>
    %553 = math.exp %552 : vector<8x128xf32>
    %cst_187 = arith.constant 1.000000e+00 : f32
    %554 = vector.broadcast %cst_187 : f32 to vector<8x128xf32>
    %555 = arith.addf %554, %553 : vector<8x128xf32>
    %556 = arith.divf %554, %555 : vector<8x128xf32>
    %557 = vector.extract_strided_slice %545 {offsets = [0, 128], sizes = [8, 128], strides = [1, 1]} : vector<8x384xf32> to vector<8x128xf32>
    %558 = vector.extract_strided_slice %548 {offsets = [0, 128], sizes = [8, 128], strides = [1, 1]} : vector<8x384xf32> to vector<8x128xf32>
    %559 = arith.addf %557, %558 : vector<8x128xf32>
    %560 = arith.negf %559 : vector<8x128xf32>
    %561 = math.exp %560 : vector<8x128xf32>
    %cst_188 = arith.constant 1.000000e+00 : f32
    %562 = vector.broadcast %cst_188 : f32 to vector<8x128xf32>
    %563 = arith.addf %562, %561 : vector<8x128xf32>
    %564 = arith.divf %562, %563 : vector<8x128xf32>
    %565 = vector.extract_strided_slice %545 {offsets = [0, 256], sizes = [8, 128], strides = [1, 1]} : vector<8x384xf32> to vector<8x128xf32>
    %566 = vector.extract_strided_slice %548 {offsets = [0, 256], sizes = [8, 128], strides = [1, 1]} : vector<8x384xf32> to vector<8x128xf32>
    %567 = vector.broadcast %317 : vector<1x128xf32> to vector<8x128xf32>
    %568 = arith.addf %566, %567 : vector<8x128xf32>
    %569 = arith.mulf %556, %568 : vector<8x128xf32>
    %570 = arith.addf %565, %569 : vector<8x128xf32>
    %571 = math.tanh %570 : vector<8x128xf32>
    %572 = arith.subf %537, %571 : vector<8x128xf32>
    %573 = arith.mulf %564, %572 : vector<8x128xf32>
    %574 = arith.addf %571, %573 : vector<8x128xf32>
    %575 = arith.index_cast %c6_i32_180 : i32 to index
    %c0_189 = arith.constant 0 : index
    %c0_190 = arith.constant 0 : index
    %576 = vector.load %arg7[%575, %c0_189, %c0_190] : memref<8x8x128xf32, #tpu.memory_space<vmem>>, vector<1x8x128xf32>
    %577 = vector.shape_cast %576 : vector<1x8x128xf32> to vector<8x128xf32>
    %578 = vector.shape_cast %574 : vector<8x128xf32> to vector<1x8x128xf32>
    tpu.vector_store %arg7[%575, %c0_189, %c0_190], %578 {strides = array<i32>} : memref<8x8x128xf32, #tpu.memory_space<vmem>>, vector<1x8x128xf32>,
    %c7_i32_191 = arith.constant 7 : i32
    %c8_i32_192 = arith.constant 8 : i32
    %579 = arith.muli %c7_i32_191, %c8_i32_192 : i32
    %580 = tpu.assume_multiple %579, 8 : i32
    %581 = arith.index_cast %580 : i32 to index
    %c0_193 = arith.constant 0 : index
    %582 = vector.load %arg11[%581, %c0_193] : memref<64x384xf32, #tpu.memory_space<vmem>>, vector<8x384xf32>
    %c1_194 = arith.constant 1 : index
    %c0_195 = arith.constant 0 : index
    %c0_196 = arith.constant 0 : index
    %583 = vector.load %arg4[%c1_194, %c0_195, %c0_196] : memref<2x128x384xf32, #tpu.memory_space<vmem>>, vector<1x128x384xf32>
    %584 = vector.shape_cast %583 : vector<1x128x384xf32> to vector<128x384xf32>
    %cst_197 = arith.constant dense<0.000000e+00> : vector<8x384xf32>
    %585 = tpu.matmul %574, %584, %cst_197 {dimension_numbers = #tpu.dot_dimension_numbers<[1], [0], [0], [1], [0, 0, 1, 1], [], []>} : vector<8x128xf32>, vector<128x384xf32>, vector<8x384xf32> -> vector<8x384xf32>
    %586 = vector.extract_strided_slice %582 {offsets = [0, 0], sizes = [8, 128], strides = [1, 1]} : vector<8x384xf32> to vector<8x128xf32>
    %587 = vector.extract_strided_slice %585 {offsets = [0, 0], sizes = [8, 128], strides = [1, 1]} : vector<8x384xf32> to vector<8x128xf32>
    %588 = arith.addf %586, %587 : vector<8x128xf32>
    %589 = arith.negf %588 : vector<8x128xf32>
    %590 = math.exp %589 : vector<8x128xf32>
    %cst_198 = arith.constant 1.000000e+00 : f32
    %591 = vector.broadcast %cst_198 : f32 to vector<8x128xf32>
    %592 = arith.addf %591, %590 : vector<8x128xf32>
    %593 = arith.divf %591, %592 : vector<8x128xf32>
    %594 = vector.extract_strided_slice %582 {offsets = [0, 128], sizes = [8, 128], strides = [1, 1]} : vector<8x384xf32> to vector<8x128xf32>
    %595 = vector.extract_strided_slice %585 {offsets = [0, 128], sizes = [8, 128], strides = [1, 1]} : vector<8x384xf32> to vector<8x128xf32>
    %596 = arith.addf %594, %595 : vector<8x128xf32>
    %597 = arith.negf %596 : vector<8x128xf32>
    %598 = math.exp %597 : vector<8x128xf32>
    %cst_199 = arith.constant 1.000000e+00 : f32
    %599 = vector.broadcast %cst_199 : f32 to vector<8x128xf32>
    %600 = arith.addf %599, %598 : vector<8x128xf32>
    %601 = arith.divf %599, %600 : vector<8x128xf32>
    %602 = vector.extract_strided_slice %582 {offsets = [0, 256], sizes = [8, 128], strides = [1, 1]} : vector<8x384xf32> to vector<8x128xf32>
    %603 = vector.extract_strided_slice %585 {offsets = [0, 256], sizes = [8, 128], strides = [1, 1]} : vector<8x384xf32> to vector<8x128xf32>
    %604 = vector.broadcast %317 : vector<1x128xf32> to vector<8x128xf32>
    %605 = arith.addf %603, %604 : vector<8x128xf32>
    %606 = arith.mulf %593, %605 : vector<8x128xf32>
    %607 = arith.addf %602, %606 : vector<8x128xf32>
    %608 = math.tanh %607 : vector<8x128xf32>
    %609 = arith.subf %574, %608 : vector<8x128xf32>
    %610 = arith.mulf %601, %609 : vector<8x128xf32>
    %611 = arith.addf %608, %610 : vector<8x128xf32>
    %612 = arith.index_cast %c7_i32_191 : i32 to index
    %c0_200 = arith.constant 0 : index
    %c0_201 = arith.constant 0 : index
    %613 = vector.load %arg7[%612, %c0_200, %c0_201] : memref<8x8x128xf32, #tpu.memory_space<vmem>>, vector<1x8x128xf32>
    %614 = vector.shape_cast %613 : vector<1x8x128xf32> to vector<8x128xf32>
    %615 = vector.shape_cast %611 : vector<8x128xf32> to vector<1x8x128xf32>
    tpu.vector_store %arg7[%612, %c0_200, %c0_201], %615 {strides = array<i32>} : memref<8x8x128xf32, #tpu.memory_space<vmem>>, vector<1x8x128xf32>,
    %c8_i32_202 = arith.constant 8 : i32
    %c1_203 = arith.constant 1 : index
    %c0_204 = arith.constant 0 : index
    %c0_205 = arith.constant 0 : index
    %616 = vector.load %arg9[%c1_203, %c0_204, %c0_205] : memref<2x8x128xf32, #tpu.memory_space<vmem>>, vector<1x8x128xf32>
    %617 = vector.shape_cast %616 : vector<1x8x128xf32> to vector<8x128xf32>
    %618 = vector.shape_cast %611 : vector<8x128xf32> to vector<1x8x128xf32>
    tpu.vector_store %arg9[%c1_203, %c0_204, %c0_205], %618 {strides = array<i32>} : memref<2x8x128xf32, #tpu.memory_space<vmem>>, vector<1x8x128xf32>,
    %c0_i32_206 = arith.constant 0 : i32
    %619 = arith.cmpi sge, %4, %c0_i32_206 : i32
    %c8_i32_207 = arith.constant 8 : i32
    %620 = arith.cmpi slt, %4, %c8_i32_207 : i32
    %621 = arith.andi %619, %620 : i1
    %622 = arith.extui %621 : i1 to i32
    %c0_i32_208 = arith.constant 0 : i32
    %623 = arith.cmpi ne, %622, %c0_i32_208 : i32
    scf.if %623 {
      %624 = arith.index_cast %4 : i32 to index
      %c0_209 = arith.constant 0 : index
      %c0_210 = arith.constant 0 : index
      %625 = vector.load %arg7[%624, %c0_209, %c0_210] : memref<8x8x128xf32, #tpu.memory_space<vmem>>, vector<1x8x128xf32>
      %626 = vector.shape_cast %625 : vector<1x8x128xf32> to vector<8x128xf32>
      %c1_211 = arith.constant 1 : index
      %c0_212 = arith.constant 0 : index
      %c0_213 = arith.constant 0 : index
      %627 = vector.load %arg8[%c1_211, %c0_212, %c0_213] : memref<2x8x128xf32, #tpu.memory_space<vmem>>, vector<1x8x128xf32>
      %628 = vector.shape_cast %627 : vector<1x8x128xf32> to vector<8x128xf32>
      %629 = vector.shape_cast %626 : vector<8x128xf32> to vector<1x8x128xf32>
      tpu.vector_store %arg8[%c1_211, %c0_212, %c0_213], %629 {strides = array<i32>} : memref<2x8x128xf32, #tpu.memory_space<vmem>>, vector<1x8x128xf32>,
    } else {
    }
    return
  }
  func.func @transform_0(%arg0: i32, %arg1: i32) -> (i32, i32, i32) {
    %c0_i32 = arith.constant 0 : i32
    %c0_i32_0 = arith.constant 0 : i32
    return %arg0, %arg1, %c0_i32 : i32, i32, i32
  }
  func.func @transform_1(%arg0: i32, %arg1: i32) -> (i32, i32, i32) {
    %c0_i32 = arith.constant 0 : i32
    %c0_i32_0 = arith.constant 0 : i32
    %c0_i32_1 = arith.constant 0 : i32
    %c0_i32_2 = arith.constant 0 : i32
    return %c0_i32, %c0_i32_0, %c0_i32_1 : i32, i32, i32
  }
  func.func @transform_2(%arg0: i32, %arg1: i32) -> (i32, i32, i32) {
    %c0_i32 = arith.constant 0 : i32
    %c0_i32_0 = arith.constant 0 : i32
    %c0_i32_1 = arith.constant 0 : i32
    %c0_i32_2 = arith.constant 0 : i32
    return %c0_i32, %c0_i32_0, %c0_i32_1 : i32, i32, i32
  }
  func.func @transform_3(%arg0: i32, %arg1: i32) -> (i32, i32, i32) {
    %c0_i32 = arith.constant 0 : i32
    %c0_i32_0 = arith.constant 0 : i32
    %c0_i32_1 = arith.constant 0 : i32
    %c0_i32_2 = arith.constant 0 : i32
    return %c0_i32, %c0_i32_0, %c0_i32_1 : i32, i32, i32
  }
  func.func @transform_4(%arg0: i32, %arg1: i32) -> (i32, i32, i32) {
    %c0_i32 = arith.constant 0 : i32
    %c0_i32_0 = arith.constant 0 : i32
    %c0_i32_1 = arith.constant 0 : i32
    %c0_i32_2 = arith.constant 0 : i32
    return %c0_i32, %c0_i32_0, %c0_i32_1 : i32, i32, i32
  }
  func.func @transform_5(%arg0: i32, %arg1: i32) -> (i32, i32, i32) {
    %c0_i32 = arith.constant 0 : i32
    %c0_i32_0 = arith.constant 0 : i32
    return %arg1, %arg0, %c0_i32 : i32, i32, i32
  }
  func.func @transform_6(%arg0: i32, %arg1: i32) -> (i32, i32, i32) {
    %c0_i32 = arith.constant 0 : i32
    %c0_i32_0 = arith.constant 0 : i32
    %c0_i32_1 = arith.constant 0 : i32
    return %c0_i32, %arg0, %c0_i32_0 : i32, i32, i32
  }
}

</mosaic_0001>

<bundles_post_ra>
// kernel: base_rnn_forward.1
= control target key start
LH: loop header
LB: loop body
LE: loop exit
PB: predicated region body
PF: predicated region fallthrough
CT: control target
= control target key end

     0   :  { %v6878_v3 = vmov 0.0   ;;  %vm6880_vm0 = vmmov 0   ;;  %s8835_s1 = inlined_call_operand.vmem [shape: f32[2,128,384], index: 1, kind: input, shape index: {}]   ;;  %s8836_s0 = inlined_call_operand.vmem [shape: f32[1,64,128], index: 0, kind: input, shape index: {}]   ;;  %s8837_s2 = inlined_call_operand.vmem [shape: f32[2,128,384], index: 2, kind: input, shape index: {}]   ;;  %s8838_s3 = inlined_call_operand.vmem [shape: f32[2,1,384], index: 3, kind: input, shape index: {}]   ;;  %s8839_s4 = inlined_call_operand.vmem [shape: f32[2,1,128], index: 4, kind: input, shape index: {}]   ;;  %s8840_s6 = inlined_call_operand.vmem [shape: f32[2,8,128], index: 6, kind: output, shape index: {1}]   ;;  %s8841_s5 = inlined_call_operand.vmem [shape: f32[8,8,128], index: 5, kind: output, shape index: {0}]  }
   0x1   :  { %v39_v0 = vld [vmem:[%s8835_s1 + $0x8] sm:$0xff]  ;;  %v42_v1 = vld [vmem:[%s8835_s1 + $0x20] sm:$0xff]  ;;  %167 = vmatprep.mubr.f32.mxu0 %v6878_v3  ;;  %v41_v5 = vld [vmem:[%s8835_s1 + $0x18] sm:$0xff] }
   0x2   :  { %v38_v2 = vld [vmem:[%s8835_s1] sm:$0xff]  ;;  %v5626_v4 = vpack.c.bf16 %v42_v1, %v39_v0  ;;  %v45_v6 = vld [vmem:[%s8835_s1 + $0x38] sm:$0xff]  ;;  %v48_v7 = vld [vmem:[%s8835_s1 + $0x50] sm:$0xff] }
   0x3   :  { %v5628_v8 = vpack.c.bf16 %v41_v5, %v38_v2  ;;  %v5630_v9 = vpack.c.bf16 %v48_v7, %v45_v6  ;;  %v44_v10 = vld [vmem:[%s8835_s1 + $0x30] sm:$0xff]  ;;  %v47_v11 = vld [vmem:[%s8835_s1 + $0x48] sm:$0xff]  ;;  %v54_v13 = vld [vmem:[%s8835_s1 + $0x80] sm:$0xff] }
   0x4   :  { %v51_v12 = vld [vmem:[%s8835_s1 + $0x68] sm:$0xff]  ;;  %5627 = vmatprep.subr.bf16.mxu0 %v5626_v4  ;;  %v5632_v14 = vpack.c.bf16 %v47_v11, %v44_v10  ;;  %v50_v16 = vld [vmem:[%s8835_s1 + $0x60] sm:$0xff]  ;;  %v53_v17 = vld [vmem:[%s8835_s1 + $0x78] sm:$0xff] }
   0x5   :  { %5629 = vmatpush1.bf16.msra.mxu0 %v5628_v8  ;;  %v5634_v15 = vpack.c.bf16 %v54_v13, %v51_v12  ;;  %v57_v18 = vld [vmem:[%s8835_s1 + $0x98] sm:$0xff]  ;;  %v60_v19 = vld [vmem:[%s8835_s1 + $0xb0] sm:$0xff]  ;;  %v5636_v20 = vpack.c.bf16 %v53_v17, %v50_v16  ;;  %v59_v23 = vld [vmem:[%s8835_s1 + $0xa8] sm:$0xff] }
   0x6   :  { %5631 = vmatprep.subr.bf16.mxu0 %v5630_v9  ;;  %v56_v21 = vld [vmem:[%s8835_s1 + $0x90] sm:$0xff]  ;;  %v5638_v22 = vpack.c.bf16 %v60_v19, %v57_v18  ;;  %v43_v25 = vld [vmem:[%s8835_s1 + $0x28] sm:$0xff]  ;;  %v66_v27 = vld [vmem:[%s8835_s1 + $0xe0] sm:$0xff] }
   0x7   :  { %v40_v24 = vld [vmem:[%s8835_s1 + $0x10] sm:$0xff]  ;;  %v63_v26 = vld [vmem:[%s8835_s1 + $0xc8] sm:$0xff]  ;;  %v46_v29 = vld [vmem:[%s8835_s1 + $0x40] sm:$0xff]  ;;  %v5640_v31 = vpack.c.bf16 %v59_v23, %v56_v21 }
   0x8   :  { %v5658_v28 = vpack.c.bf16 %v43_v25, %v40_v24  ;;  %v49_v30 = vld [vmem:[%s8835_s1 + $0x58] sm:$0xff]  ;;  %v62_v32 = vld [vmem:[%s8835_s1 + $0xc0] sm:$0xff]  ;;  %v5642_v34 = vpack.c.bf16 %v66_v27, %v63_v26  ;;  %v52_v37 = vld [vmem:[%s8835_s1 + $0x70] sm:$0xff] }
   0x9   :  { %5633 = vmatpush1.bf16.msra.mxu0 %v5632_v14  ;;  %v5662_v33 = vpack.c.bf16 %v49_v30, %v46_v29  ;;  %v65_v35 = vld [vmem:[%s8835_s1 + $0xd8] sm:$0xff]  ;;  %v6992_v36 = vld [vmem:[%s8836_s0] sm:$0xff]  ;;  %v72_v39 = vld [vmem:[%s8835_s1 + $0x110] sm:$0xff] }
   0xa   :  { %5635 = vmatprep.subr.bf16.mxu0 %v5634_v15  ;;  %5659 = vmatprep.subr.bf16.mxu1 %v5658_v28  ;;  %v69_v38 = vld [vmem:[%s8835_s1 + $0xf8] sm:$0xff]  ;;  %v55_v40 = vld [vmem:[%s8835_s1 + $0x88] sm:$0xff]  ;;  %v5644_v42 = vpack.c.bf16 %v65_v35, %v62_v32  ;;  %v58_v43 = vld [vmem:[%s8835_s1 + $0xa0] sm:$0xff] }
   0xb   :  { %5661 = vmatpush3.bf16.msra.mxu1 %v5658_v28  ;;  %5010 = vmatprep.mubr.f32.mxu1 %v6992_v36  ;;  %v5666_v41 = vpack.c.bf16 %v55_v40, %v52_v37  ;;  %v61_v44 = vld [vmem:[%s8835_s1 + $0xb8] sm:$0xff]  ;;  %v5646_v45 = vpack.c.bf16 %v72_v39, %v69_v38  ;;  %v68_v46 = vld [vmem:[%s8835_s1 + $0xf0] sm:$0xff]  ;;  %v71_v47 = vld [vmem:[%s8835_s1 + $0x108] sm:$0xff]  ;;  %v6879_v40 = vmov 0.0|0.0  }
   0xc   :  { %5663 = vmatprep.subr.bf16.mxu1 %v5662_v33  ;;  %v75_v48 = vld [vmem:[%s8835_s1 + $0x128] sm:$0xff]  ;;  %v78_v49 = vld [vmem:[%s8835_s1 + $0x140] sm:$0xff]  ;;  %v5670_v50 = vpack.c.bf16 %v61_v44, %v58_v43  ;;  %v64_v51 = vld [vmem:[%s8835_s1 + $0xd0] sm:$0xff]  ;;  %v5648_v53 = vpack.c.bf16 %v71_v47, %v68_v46 }
   0xd   :  { %5637 = vmatpush1.bf16.msra.mxu0 %v5636_v20  ;;  %v67_v52 = vld [vmem:[%s8835_s1 + $0xe8] sm:$0xff]  ;;  %v5650_v54 = vpack.c.bf16 %v78_v49, %v75_v48  ;;  %v74_v55 = vld [vmem:[%s8835_s1 + $0x120] sm:$0xff]  ;;  %v77_v56 = vld [vmem:[%s8835_s1 + $0x138] sm:$0xff] }
   0xe   :  { %5639 = vmatprep.subr.bf16.mxu0 %v5638_v22  ;;  %v81_v57 = vld [vmem:[%s8835_s1 + $0x158] sm:$0xff]  ;;  %v84_v58 = vld [vmem:[%s8835_s1 + $0x170] sm:$0xff]  ;;  %v5674_v59 = vpack.c.bf16 %v67_v52, %v64_v51  ;;  %v70_v60 = vld [vmem:[%s8835_s1 + $0x100] sm:$0xff]  ;;  %v5652_v62 = vpack.c.bf16 %v77_v56, %v74_v55 }
   0xf   :  { %5665 = vmatpush3.bf16.msra.mxu1 %v5662_v33  ;;  %v73_v61 = vld [vmem:[%s8835_s1 + $0x118] sm:$0xff]  ;;  %v5654_v63 = vpack.c.bf16 %v84_v58, %v81_v57  ;;  %v80_v0 = vld [vmem:[%s8835_s1 + $0x150] sm:$0xff]  ;;  %v83_v1 = vld [vmem:[%s8835_s1 + $0x168] sm:$0xff] }
  0x10   :  { %5667 = vmatprep.subr.bf16.mxu1 %v5666_v41  ;;  %v354_v2 = vld [vmem:[%s8837_s2 + $0x8] sm:$0xff]  ;;  %v357_v4 = vld [vmem:[%s8837_s2 + $0x20] sm:$0xff]  ;;  %v5678_v5 = vpack.c.bf16 %v73_v61, %v70_v60  ;;  %v76_v6 = vld [vmem:[%s8835_s1 + $0x130] sm:$0xff]  ;;  %v5656_v8 = vpack.c.bf16 %v83_v1, %v80_v0 }
  0x11   :  { %5641 = vmatpush1.bf16.msra.mxu0 %v5640_v31  ;;  %v79_v7 = vld [vmem:[%s8835_s1 + $0x148] sm:$0xff]  ;;  %v7067_v9 = vpack.c.bf16 %v357_v4, %v354_v2  ;;  %v353_v10 = vld [vmem:[%s8837_s2] sm:$0xff]  ;;  %v356_v11 = vld [vmem:[%s8837_s2 + $0x18] sm:$0xff] }
  0x12   :  { %5643 = vmatprep.subr.bf16.mxu0 %v5642_v34  ;;  %v360_v12 = vld [vmem:[%s8837_s2 + $0x38] sm:$0xff]  ;;  %v363_v13 = vld [vmem:[%s8837_s2 + $0x50] sm:$0xff]  ;;  %v5682_v14 = vpack.c.bf16 %v79_v7, %v76_v6  ;;  %v82_v15 = vld [vmem:[%s8835_s1 + $0x160] sm:$0xff]  ;;  %v7087_v17 = vpack.c.bf16 %v356_v11, %v353_v10 }
  0x13   :  { %5669 = vmatpush3.bf16.msra.mxu1 %v5666_v41  ;;  %v85_v16 = vld [vmem:[%s8835_s1 + $0x178] sm:$0xff]  ;;  %v7090_v18 = vpack.c.bf16 %v363_v13, %v360_v12  ;;  %v359_v19 = vld [vmem:[%s8837_s2 + $0x30] sm:$0xff]  ;;  %v362_v20 = vld [vmem:[%s8837_s2 + $0x48] sm:$0xff] }
  0x14   :  { %5671 = vmatprep.subr.bf16.mxu1 %v5670_v50  ;;  %v366_v21 = vld [vmem:[%s8837_s2 + $0x68] sm:$0xff]  ;;  %v369_v22 = vld [vmem:[%s8837_s2 + $0x80] sm:$0xff]  ;;  %v5686_v23 = vpack.c.bf16 %v85_v16, %v82_v15  ;;  %v7110_v25 = vpack.c.bf16 %v362_v20, %v359_v19  ;;  %v368_v28 = vld [vmem:[%s8837_s2 + $0x78] sm:$0xff] }
  0x15   :  { %5645 = vmatpush1.bf16.msra.mxu0 %v5644_v42  ;;  %v31_v24 = vld [vmem:[%s8836_s0 + $0x8] sm:$0xff]  ;;  %v7113_v26 = vpack.c.bf16 %v369_v22, %v366_v21  ;;  %v365_v27 = vld [vmem:[%s8837_s2 + $0x60] sm:$0xff]  ;;  %v372_v29 = vld [vmem:[%s8837_s2 + $0x98] sm:$0xff] }
  0x16   :  { %5647 = vmatprep.subr.bf16.mxu0 %v5646_v45  ;;  %v375_v30 = vld [vmem:[%s8837_s2 + $0xb0] sm:$0xff]  ;;  %v358_v32 = vld [vmem:[%s8837_s2 + $0x28] sm:$0xff]  ;;  %v7138_v34 = vpack.c.bf16 %v368_v28, %v365_v27  ;;  %v381_v39 = vld [vmem:[%s8837_s2 + $0xe0] sm:$0xff] }
  0x17   :  { %5673 = vmatpush3.bf16.msra.mxu1 %v5670_v50  ;;  %v355_v31 = vld [vmem:[%s8837_s2 + $0x10] sm:$0xff]  ;;  %v7141_v35 = vpack.c.bf16 %v375_v30, %v372_v29  ;;  %v374_v37 = vld [vmem:[%s8837_s2 + $0xa8] sm:$0xff]  ;;  %v361_v42 = vld [vmem:[%s8837_s2 + $0x40] sm:$0xff] }
  0x18   :  { %5675 = vmatprep.subr.bf16.mxu1 %v5674_v59  ;;  %v32_v33 = vld [vmem:[%s8836_s0 + $0x10] sm:$0xff]  ;;  %v378_v38 = vld [vmem:[%s8837_s2 + $0xc8] sm:$0xff]  ;;  %v7156_v41 = vpack.c.bf16 %v358_v32, %v355_v31  ;;  %v364_v43 = vld [vmem:[%s8837_s2 + $0x58] sm:$0xff] }
  0x19   :  { %5649 = vmatpush1.bf16.msra.mxu0 %v5648_v53  ;;  %v33_v44 = vld [vmem:[%s8836_s0 + $0x18] sm:$0xff]  ;;  %v7172_v46 = vpack.c.bf16 %v381_v39, %v378_v38  ;;  %v377_v47 = vld [vmem:[%s8837_s2 + $0xc0] sm:$0xff]  ;;  %v387_v50 = vld [vmem:[%s8837_s2 + $0x110] sm:$0xff]  ;;  %v7187_v51 = vpack.c.bf16 %v364_v43, %v361_v42 }
  0x1a   :  { %5651 = vmatprep.subr.bf16.mxu0 %v5650_v54  ;;  %v380_v48 = vld [vmem:[%s8837_s2 + $0xd8] sm:$0xff]  ;;  %v367_v52 = vld [vmem:[%s8837_s2 + $0x70] sm:$0xff]  ;;  %v370_v53 = vld [vmem:[%s8837_s2 + $0x88] sm:$0xff] }
  0x1b   :  { %5677 = vmatpush3.bf16.msra.mxu1 %v5674_v59  ;;  %v384_v49 = vld [vmem:[%s8837_s2 + $0xf8] sm:$0xff]  ;;  %v34_v54 = vld [vmem:[%s8836_s0 + $0x20] sm:$0xff]  ;;  %v7201_v55 = vpack.c.bf16 %v380_v48, %v377_v47  ;;  %v383_v57 = vld [vmem:[%s8837_s2 + $0xf0] sm:$0xff]  ;;  %v7219_v61 = vpack.c.bf16 %v370_v53, %v367_v52 }
  0x1c   :  { %5679 = vmatprep.subr.bf16.mxu1 %v5678_v5  ;;  %v7204_v56 = vpack.c.bf16 %v387_v50, %v384_v49  ;;  %v386_v58 = vld [vmem:[%s8837_s2 + $0x108] sm:$0xff]  ;;  %v393_v60 = vld [vmem:[%s8837_s2 + $0x140] sm:$0xff]  ;;  %v36_v2 = vld [vmem:[%s8836_s0 + $0x30] sm:$0xff] }
  0x1d   :  { %5653 = vmatpush1.bf16.msra.mxu0 %v5652_v62  ;;  %v390_v59 = vld [vmem:[%s8837_s2 + $0x128] sm:$0xff]  ;;  %v373_v62 = vld [vmem:[%s8837_s2 + $0xa0] sm:$0xff]  ;;  %v7233_v1 = vpack.c.bf16 %v386_v58, %v383_v57  ;;  %v392_v6 = vld [vmem:[%s8837_s2 + $0x138] sm:$0xff] }
  0x1e   :  { %5655 = vmatprep.subr.bf16.mxu0 %v5654_v63  ;;  %v376_v63 = vld [vmem:[%s8837_s2 + $0xb8] sm:$0xff]  ;;  %v35_v0 = vld [vmem:[%s8836_s0 + $0x28] sm:$0xff]  ;;  %v7239_v4 = vpack.c.bf16 %v393_v60, %v390_v59  ;;  %v379_v11 = vld [vmem:[%s8837_s2 + $0xd0] sm:$0xff] }
  0x1f   :  { %5681 = vmatpush3.bf16.msra.mxu1 %v5678_v5  ;;  %v389_v5 = vld [vmem:[%s8837_s2 + $0x120] sm:$0xff]  ;;  %v396_v7 = vld [vmem:[%s8837_s2 + $0x158] sm:$0xff]  ;;  %v7254_v10 = vpack.c.bf16 %v376_v63, %v373_v62  ;;  %v382_v12 = vld [vmem:[%s8837_s2 + $0xe8] sm:$0xff] }
  0x20   :  { %5683 = vmatprep.subr.bf16.mxu1 %v5682_v14  ;;  %v7265_v13 = vpack.c.bf16 %v392_v6, %v389_v5  ;;  %v395_v16 = vld [vmem:[%s8837_s2 + $0x150] sm:$0xff]  ;;  %v398_v19 = vld [vmem:[%s8837_s2 + $0x168] sm:$0xff]  ;;  %v7280_v20 = vpack.c.bf16 %v382_v12, %v379_v11  ;;  %v385_v21 = vld [vmem:[%s8837_s2 + $0x100] sm:$0xff] }
  0x21   :  { %5657 = vmatpush1.bf16.msra.mxu0 %v5656_v8  ;;  %v399_v8 = vld [vmem:[%s8837_s2 + $0x170] sm:$0xff]  ;;  %v388_v22 = vld [vmem:[%s8837_s2 + $0x118] sm:$0xff]  ;;  %v394_v28 = vld [vmem:[%s8837_s2 + $0x148] sm:$0xff] }
  0x22   :  { %5691 = vmatprep.subr.bf16.mxu0 %v7067_v9  ;;  %v7271_v15 = vpack.c.bf16 %v399_v8, %v396_v7  ;;  %v391_v27 = vld [vmem:[%s8837_s2 + $0x130] sm:$0xff]  ;;  %v397_v30 = vld [vmem:[%s8837_s2 + $0x160] sm:$0xff]  ;;  %v400_v31 = vld [vmem:[%s8837_s2 + $0x178] sm:$0xff] }
  0x23   :  { %5685 = vmatpush3.bf16.msra.mxu1 %v5682_v14  ;;  %v37_v14 = vld [vmem:[%s8836_s0 + $0x38] sm:$0xff]  ;;  %v7310_v29 = vpack.c.bf16 %v394_v28, %v391_v27  ;;  %v7324_v32 = vpack.c.bf16 %v400_v31, %v397_v30  ;;  %v86_v38 = vld [vmem:[%s8838_s3] sm:$0x7] }
  0x24   :  { %168 = vmatmul.mubr.f32.vlgmr.msra.gmra.mrb[0].mxu0 %v6992_v36  ;;  %5687 = vmatprep.subr.bf16.mxu1 %v5686_v23  ;;  %v371_v36 = vld [vmem:[%s8837_s2 + $0x90] sm:$0xff]  ;;  %v7399_v27 = vld [vmem:[%s8839_s4] ss:$0 sm:$0xff] }
  0x25   :  { %5693 = vmatpush1.bf16.msra.mxu0 %v7087_v17  ;;  %173 = vmatprep.mubr.f32.mxu0 %v6878_v3  ;;  %v7169_v45 = vpack.c.bf16 %v374_v37, %v371_v36 }
  0x26   :  { %5695 = vmatprep.subr.bf16.mxu0 %v7090_v18 }
  0x27   :  { %5689 = vmatpush3.bf16.msra.mxu1 %v5686_v23  ;;  %v7293_v23 = vpack.c.bf16 %v398_v19, %v395_v16 }
  0x28   :  { %174 = vmatmul.mubr.f32.gmra.mrb[2].mxu0 %v31_v24  ;;  %5722 = vmatprep.subr.bf16.mxu1 %v6879_v40 }
  0x29   :  { %5697 = vmatpush1.bf16.msra.mxu0 %v7110_v25  ;;  %179 = vmatprep.mubr.f32.mxu0 %v6878_v3 }
  0x2a   :  { %5699 = vmatprep.subr.bf16.mxu0 %v7113_v26  ;;  %5011 = vmatmul.mubr.f32.vlgmr.msra.gmra.mrb[0].mxu1 %v31_v24  ;;  %v7297_v24 = vpack.c.bf16 %v388_v22, %v385_v21 }
  0x2b   :  { %5724 = vmatpush3.bf16.msra.mxu1 %v7156_v41  ;;  %5013 = vmatprep.mubr.f32.mxu1 %v32_v33 }
  0x2c   :  { %180 = vmatmul.mubr.f32.gmra.mrb[4].mxu0 %v32_v33  ;;  %5725 = vmatprep.subr.bf16.mxu1 %v6879_v40  ;;  %v88_v33 = vlaneseq }
  0x2d   :  { %5701 = vmatpush1.bf16.msra.mxu0 %v7138_v34  ;;  %185 = vmatprep.mubr.f32.mxu0 %v6878_v3 }
  0x2e   :  { %5703 = vmatprep.subr.bf16.mxu0 %v7141_v35  ;;  %5014 = vmatmul.mubr.f32.gmra.mrb[2].mxu1 %v33_v44  ;;  %v7362_v36 = vshrl.u32 %v88_v33, 7 }
  0x2f   :  { %5727 = vmatpush3.bf16.msra.mxu1 %v7187_v51  ;;  %5016 = vmatprep.mubr.f32.mxu1 %v34_v54 }
  0x30   :  { %186 = vmatmul.mubr.f32.gmra.mrb[6].mxu0 %v33_v44  ;;  %5728 = vmatprep.subr.bf16.mxu1 %v6879_v40  ;;  %v98_v37 = vsub.s32 2, %v7362_v36  ;;  %v90_v63 = vsub.s32 0, %v7362_v36  ;;  %v94_v6 = vsub.s32 1, %v7362_v36 }
  0x31   :  { %5705 = vmatpush1.bf16.msra.mxu0 %v7169_v45  ;;  %191 = vmatprep.mubr.f32.mxu0 %v6878_v3 }
  0x32   :  { %5707 = vmatprep.subr.bf16.mxu0 %v7172_v46  ;;  %5017 = vmatmul.mubr.f32.gmra.mrb[4].mxu1 %v35_v0  ;;  %v99_v39 = vrot.slane %v86_v38, %v98_v37  ;;  %v7393_v11 = vrot.slane %v86_v38, %v94_v6 }
  0x33   :  { %5730 = vmatpush3.bf16.msra.mxu1 %v7219_v61  ;;  %5019 = vmatprep.mubr.f32.mxu1 %v36_v2 }
  0x34   :  { %192 = vmatmul.mubr.f32.gmra.mrb[8].mxu0 %v34_v54  ;;  %5731 = vmatprep.subr.bf16.mxu1 %v6879_v40 }
  0x35   :  { %5709 = vmatpush1.bf16.msra.mxu0 %v7201_v55  ;;  %197 = vmatprep.mubr.f32.mxu0 %v6878_v3 }
  0x36   :  { %5711 = vmatprep.subr.bf16.mxu0 %v7204_v56  ;;  %5020 = vmatmul.mubr.f32.gmra.mrb[6].mxu1 %v37_v14 }
  0x37   :  { %5733 = vmatpush3.bf16.msra.mxu1 %v7254_v10  ;;  %5054 = vmatprep.mubr.msk.f32.mxu1 %vm6880_vm0, %v6878_v3 }
  0x38   :  { %198 = vmatmul.mubr.f32.gmra.mrb[10].mxu0 %v35_v0  ;;  %5734 = vmatprep.subr.bf16.mxu1 %v6879_v40  ;;  %v7387_v0 = vrot.slane %v86_v38, %v90_v63 }
  0x39   :  { %5713 = vmatpush1.bf16.msra.mxu0 %v7233_v1  ;;  %203 = vmatprep.mubr.f32.mxu0 %v6878_v3 }
  0x3a   :  { %5715 = vmatprep.subr.bf16.mxu0 %v7239_v4 }
  0x3b   :  { %5736 = vmatpush3.bf16.msra.mxu1 %v7280_v20 }
  0x3c   :  { %204 = vmatmul.mubr.f32.gmra.mrb[12].mxu0 %v36_v2  ;;  %5737 = vmatprep.subr.bf16.mxu1 %v6879_v40 }
  0x3d   :  { %5717 = vmatpush1.bf16.msra.mxu0 %v7265_v13  ;;  %209 = vmatprep.mubr.f32.mxu0 %v6878_v3 }
  0x3e   :  { %5719 = vmatprep.subr.bf16.mxu0 %v7271_v15 }
  0x3f   :  { %5739 = vmatpush3.bf16.msra.mxu1 %v7297_v24 }
  0x40   :  { %210 = vmatmul.mubr.f32.gmra.mrb[14].mxu0 %v37_v14  ;;  %5740 = vmatprep.subr.bf16.mxu1 %v6879_v40 }
  0x41   :  { %5721 = vmatpush1.bf16.msra.mxu0 %v7293_v23  ;;  %465 = vmatprep.mubr.f32.mxu0 %v6878_v3 }
  0x42   :  { %5747 = vmatprep.subr.bf16.mxu0 %v7067_v9 }
  0x43   :  { %5742 = vmatpush3.bf16.msra.mxu1 %v7310_v29 }
  0x44   :  { %466 = vmatmul.mubr.f32.vlgmr.msra.gmra.mrb[0].mxu0 %v6878_v3  ;;  %5743 = vmatprep.subr.bf16.mxu1 %v6879_v40 }
  0x45   :  { %5749 = vmatpush1.bf16.msra.mxu0 %v7087_v17  ;;  %688 = vmatprep.mubr.f32.mxu0 %v6878_v3 }
  0x46   :  { %5751 = vmatprep.subr.bf16.mxu0 %v7090_v18 }
  0x47   :  { %5745 = vmatpush3.bf16.msra.mxu1 %v7324_v32 }
  0x48   :  { %5778 = vmatprep.subr.bf16.mxu1 %v6879_v40 }
  0x49   :  { %5753 = vmatpush1.bf16.msra.mxu0 %v7110_v25 }
  0x4a   :  { %5755 = vmatprep.subr.bf16.mxu0 %v7113_v26  ;;  %5055 = vmatmul.mubr.f32.vlgmr.msra.gmra.mrb[8].mxu1 %v6878_v3 }
  0x4b   :  { %5780 = vmatpush3.bf16.msra.mxu1 %v7156_v41  ;;  %5089 = vmatprep.mubr.msk.f32.mxu1 %vm6880_vm0, %v6878_v3 }
  0x4c   :  { %5781 = vmatprep.subr.bf16.mxu1 %v6879_v40 }
  0x4d   :  { %5757 = vmatpush1.bf16.msra.mxu0 %v7138_v34 }
  0x4e   :  { %5759 = vmatprep.subr.bf16.mxu0 %v7141_v35 }
  0x4f   :  { %5783 = vmatpush3.bf16.msra.mxu1 %v7187_v51 }
  0x50   :  { %5784 = vmatprep.subr.bf16.mxu1 %v6879_v40 }
  0x51   :  { %5761 = vmatpush1.bf16.msra.mxu0 %v7169_v45 }
  0x52   :  { %5763 = vmatprep.subr.bf16.mxu0 %v7172_v46 }
  0x53   :  { %5786 = vmatpush3.bf16.msra.mxu1 %v7219_v61 }
  0x54   :  { %5787 = vmatprep.subr.bf16.mxu1 %v6879_v40 }
  0x55   :  { %5765 = vmatpush1.bf16.msra.mxu0 %v7201_v55 }
  0x56   :  { %5767 = vmatprep.subr.bf16.mxu0 %v7204_v56 }
  0x57   :  { %5789 = vmatpush3.bf16.msra.mxu1 %v7254_v10 }
  0x58   :  { %5790 = vmatprep.subr.bf16.mxu1 %v6879_v40 }
  0x59   :  { %5769 = vmatpush1.bf16.msra.mxu0 %v7233_v1 }
  0x5a   :  { %5771 = vmatprep.subr.bf16.mxu0 %v7239_v4 }
  0x5b   :  { %5792 = vmatpush3.bf16.msra.mxu1 %v7280_v20 }
  0x5c   :  { %5793 = vmatprep.subr.bf16.mxu1 %v6879_v40 }
  0x5d   :  { %5773 = vmatpush1.bf16.msra.mxu0 %v7265_v13 }
  0x5e   :  { %5775 = vmatprep.subr.bf16.mxu0 %v7271_v15 }
  0x5f   :  { %5795 = vmatpush3.bf16.msra.mxu1 %v7297_v24 }
  0x60   :  { %5796 = vmatprep.subr.bf16.mxu1 %v6879_v40 }
  0x61   :  { %5777 = vmatpush1.bf16.msra.mxu0 %v7293_v23 }
  0x62   :  { %5803 = vmatprep.subr.bf16.mxu0 %v7067_v9 }
  0x63   :  { %5798 = vmatpush3.bf16.msra.mxu1 %v7310_v29 }
  0x64   :  { %5799 = vmatprep.subr.bf16.mxu1 %v6879_v40 }
  0x67   :  { %5801 = vmatpush3.bf16.msra.mxu1 %v7324_v32 }
  0x68   :  { %5834 = vmatprep.subr.bf16.mxu1 %v6879_v40 }
  0xfd   :  { %v5012_v42 = vpop.f32.mrb[0].mxu1 }
  0xfe   :  { %v7370_v43 = vadd.f32 %v5012_v42, %v99_v39  ;;  %v282_v44 = vpop.f32.mrb[1].mxu1 }
  0xff   :  { %v283_v33 = vadd.f32 %v282_v44, %v99_v39 }
 0x101   :  { %v5015_v47 = vpop.f32.mrb[2].mxu1 }
 0x102   :  { %v7372_v48 = vadd.f32 %v5015_v47, %v99_v39  ;;  %v292_v49 = vpop.f32.mrb[3].mxu1 }
 0x103   :  { %v7374_v50 = vadd.f32 %v292_v49, %v99_v39 }
 0x105   :  { %v5018_v52 = vpop.f32.mrb[4].mxu1 }
 0x106   :  { %v7376_v53 = vadd.f32 %v5018_v52, %v99_v39  ;;  %v302_v54 = vpop.f32.mrb[5].mxu1 }
 0x107   :  { %v7378_v57 = vadd.f32 %v302_v54, %v99_v39 }
 0x109   :  { %v5021_v58 = vpop.f32.mrb[6].mxu1 }
 0x10a   :  { %v7380_v59 = vadd.f32 %v5021_v58, %v99_v39  ;;  %v312_v60 = vpop.f32.mrb[7].mxu1 }
 0x10b   :  { %v7382_v62 = vadd.f32 %v312_v60, %v99_v39 }
 0x117   :  { %v467_v2 = vpop.f32.mrb[0].mxu0 }
 0x118   :  { %v6650_v5 = vadd.f32 %v467_v2, %v7387_v0  ;;  %v469_v7 = vpop.f32.mrb[1].mxu0 }
 0x119   :  { %v6651_v12 = vadd.f32 %v469_v7, %v7393_v11 }
 0x11a   :  { %v4181_v8 = vmul.f32 -1.442695, %v6650_v5 }
 0x11b   :  { %v4182_v19 = vmul.f32 -1.442695, %v6651_v12 }
 0x11c   :  { %6717 = vpow2.f32 %v4181_v8 }
 0x11d   :  { %v538_v14 = vpop.f32.mrb[8].mxu1  ;;  %6719 = vpow2.f32 %v4182_v19 }
 0x11e   :  { %v5056_v16 = vpop.f32.mrb[9].mxu1  ;;  %v562_v28 = vadd.f32 %v7399_v27, %v538_v14 }
 0x126   :  { %v6718_v21 = vpop.eup %6717 }
 0x127   :  { %v546_v22 = vadd.f32 1.0, %v6718_v21  ;;  %v6720_v30 = vpop.eup %6719 }
 0x128   :  { %v553_v42 = vadd.f32 1.0, %v6720_v30 }
 0x129   :  { %6721 = vrcp.f32 %v546_v22 }
 0x133   :  { %v6722_v31 = vpop.eup %6721 }
 0x134   :  { %v563_v38 = vmul.f32 %v6722_v31, %v562_v28 }
 0x136   :  { %v564_v47 = vadd.f32 %v563_v38, %v283_v33 }
 0x138   :  { %6723 = vtanh.f32 %v564_v47 }
 0x139   :  { %6725 = vrcp.f32 %v553_v42 }
 0x142   :  { %v6724_v49 = vpop.eup %6723 }
 0x143   :  { %v566_v52 = vsub.f32 0.0, %v6724_v49  ;;  %v6726_v54 = vpop.eup %6725 }
 0x145   :  { %v567_v58 = vmul.f32 %v6726_v54, %v566_v52 }
 0x147   :  { %v7402_v60 = vadd.f32 %v6724_v49, %v567_v58  ;;  %v1237_v58 = vld [vmem:[%s8837_s2 + $0x38] sm:$0xff] }
 0x149   :  { %689 = vmatmul.mubr.f32.vlgmr.msra.gmra.mrb[2].mxu0 %v7402_v60  ;;  %5090 = vmatmul.mubr.f32.vlgmr.msra.gmra.mrb[10].mxu1 %v7402_v60 }
 0x14a   :  { %5805 = vmatpush1.bf16.msra.mxu0 %v7087_v17  ;;  %5836 = vmatpush3.bf16.msra.mxu1 %v7156_v41 }
 0x14b   :  { %5807 = vmatprep.subr.bf16.mxu0 %v7090_v18  ;;  %5837 = vmatprep.subr.bf16.mxu1 %v6879_v40 }
 0x14c   :  { %906 = vmatprep.mubr.f32.mxu0 %v6878_v3  ;;  %5124 = vmatprep.mubr.msk.f32.mxu1 %vm6880_vm0, %v6878_v3 }
 0x14e   :  { %5809 = vmatpush1.bf16.msra.mxu0 %v7110_v25  ;;  %5839 = vmatpush3.bf16.msra.mxu1 %v7187_v51 }
 0x14f   :  { %5811 = vmatprep.subr.bf16.mxu0 %v7113_v26  ;;  %5840 = vmatprep.subr.bf16.mxu1 %v6879_v40 }
 0x152   :  { %5813 = vmatpush1.bf16.msra.mxu0 %v7138_v34  ;;  %5842 = vmatpush3.bf16.msra.mxu1 %v7219_v61 }
 0x153   :  { %5815 = vmatprep.subr.bf16.mxu0 %v7141_v35  ;;  %5843 = vmatprep.subr.bf16.mxu1 %v6879_v40 }
 0x156   :  { %5817 = vmatpush1.bf16.msra.mxu0 %v7169_v45  ;;  %5845 = vmatpush3.bf16.msra.mxu1 %v7254_v10 }
 0x157   :  { %5819 = vmatprep.subr.bf16.mxu0 %v7172_v46  ;;  %5846 = vmatprep.subr.bf16.mxu1 %v6879_v40 }
 0x15a   :  { %5821 = vmatpush1.bf16.msra.mxu0 %v7201_v55  ;;  %5848 = vmatpush3.bf16.msra.mxu1 %v7280_v20 }
 0x15b   :  { %5823 = vmatprep.subr.bf16.mxu0 %v7204_v56  ;;  %5849 = vmatprep.subr.bf16.mxu1 %v6879_v40 }
 0x15e   :  { %5825 = vmatpush1.bf16.msra.mxu0 %v7233_v1  ;;  %5851 = vmatpush3.bf16.msra.mxu1 %v7297_v24 }
 0x15f   :  { %5827 = vmatprep.subr.bf16.mxu0 %v7239_v4  ;;  %5852 = vmatprep.subr.bf16.mxu1 %v6879_v40 }
 0x162   :  { %5829 = vmatpush1.bf16.msra.mxu0 %v7265_v13  ;;  %5854 = vmatpush3.bf16.msra.mxu1 %v7310_v29 }
 0x163   :  { %5831 = vmatprep.subr.bf16.mxu0 %v7271_v15  ;;  %5855 = vmatprep.subr.bf16.mxu1 %v6879_v40 }
 0x166   :  { %5833 = vmatpush1.bf16.msra.mxu0 %v7293_v23  ;;  %5857 = vmatpush3.bf16.msra.mxu1 %v7324_v32 }
 0x167   :  { %5859 = vmatprep.subr.bf16.mxu0 %v7067_v9  ;;  %5890 = vmatprep.subr.bf16.mxu1 %v6879_v40 }
 0x21c   :  { %v690_v39 = vpop.f32.mrb[2].mxu0  ;;  %v761_v44 = vpop.f32.mrb[10].mxu1 }
 0x21d   :  { %v6652_v2 = vadd.f32 %v690_v39, %v7387_v0  ;;  %v692_v5 = vpop.f32.mrb[3].mxu0  ;;  %v5091_v7 = vpop.f32.mrb[11].mxu1  ;;  %v779_v9 = vadd.f32 %v7399_v27, %v761_v44  ;;  %v1240_v39 = vld [vmem:[%s8837_s2 + $0x50] sm:$0xff] }
 0x21e   :  { %v6653_v12 = vadd.f32 %v692_v5, %v7393_v11  ;;  %v7526_v44 = vpack.c.bf16 %v1240_v39, %v1237_v58  ;;  %v1239_v5 = vld [vmem:[%s8837_s2 + $0x48] sm:$0xff]  ;;  %v1273_v39 = vld [vmem:[%s8837_s2 + $0x158] sm:$0xff] }
 0x21f   :  { %v4184_v8 = vmul.f32 -1.442695, %v6652_v2  ;;  %v1236_v2 = vld [vmem:[%s8837_s2 + $0x30] sm:$0xff]  ;;  %v1271_v58 = vld [vmem:[%s8837_s2 + $0x148] sm:$0xff] }
 0x220   :  { %v4185_v14 = vmul.f32 -1.442695, %v6653_v12  ;;  %v7534_v7 = vpack.c.bf16 %v1239_v5, %v1236_v2  ;;  %v1246_v12 = vld [vmem:[%s8837_s2 + $0x80] sm:$0xff]  ;;  %v1276_v2 = vld [vmem:[%s8837_s2 + $0x170] sm:$0xff] }
 0x221   :  { %6727 = vpow2.f32 %v4184_v8  ;;  %v1243_v8 = vld [vmem:[%s8837_s2 + $0x68] sm:$0xff] }
 0x222   :  { %6729 = vpow2.f32 %v4185_v14  ;;  %v7544_v14 = vpack.c.bf16 %v1246_v12, %v1243_v8  ;;  %v7670_v12 = vpack.c.bf16 %v1276_v2, %v1273_v39  ;;  %v1453_v2 = vld [vmem:[%s8837_s2 + $0x28] sm:$0xff] }
 0x22b   :  { %v6728_v16 = vpop.eup %6727 }
 0x22c   :  { %v769_v19 = vadd.f32 1.0, %v6728_v16  ;;  %v6730_v21 = vpop.eup %6729  ;;  %v1242_v16 = vld [vmem:[%s8837_s2 + $0x60] sm:$0xff] }
 0x22d   :  { %v776_v31 = vadd.f32 1.0, %v6730_v21 }
 0x22e   :  { %6731 = vrcp.f32 %v769_v19  ;;  %v1245_v19 = vld [vmem:[%s8837_s2 + $0x78] sm:$0xff] }
 0x22f   :  { %v7552_v21 = vpack.c.bf16 %v1245_v19, %v1242_v16  ;;  %v1272_v16 = vld [vmem:[%s8837_s2 + $0x150] sm:$0xff]  ;;  %v1275_v19 = vld [vmem:[%s8837_s2 + $0x168] sm:$0xff] }
 0x238   :  { %v6732_v22 = vpop.eup %6731 }
 0x239   :  { %v780_v28 = vmul.f32 %v6732_v22, %v779_v9  ;;  %v1249_v9 = vld [vmem:[%s8837_s2 + $0x98] sm:$0xff]  ;;  %v1252_v22 = vld [vmem:[%s8837_s2 + $0xb0] sm:$0xff] }
 0x23b   :  { %v781_v30 = vadd.f32 %v780_v28, %v7370_v43  ;;  %v7562_v28 = vpack.c.bf16 %v1252_v22, %v1249_v9  ;;  %v1274_v9 = vld [vmem:[%s8837_s2 + $0x160] sm:$0xff]  ;;  %v1277_v22 = vld [vmem:[%s8837_s2 + $0x178] sm:$0xff] }
 0x23d   :  { %6733 = vtanh.f32 %v781_v30  ;;  %v1248_v30 = vld [vmem:[%s8837_s2 + $0x90] sm:$0xff] }
 0x23e   :  { %6735 = vrcp.f32 %v776_v31  ;;  %v1251_v31 = vld [vmem:[%s8837_s2 + $0xa8] sm:$0xff] }
 0x247   :  { %v6734_v33 = vpop.eup %6733 }
 0x248   :  { %v783_v38 = vsub.f32 %v7402_v60, %v6734_v33  ;;  %v6736_v42 = vpop.eup %6735 }
 0x24a   :  { %v784_v47 = vmul.f32 %v6736_v42, %v783_v38  ;;  %v7573_v38 = vpack.c.bf16 %v1251_v31, %v1248_v30  ;;  %v1253_v42 = vld [vmem:[%s8837_s2 + $0xb8] sm:$0xff]  ;;  %v7686_v30 = vpack.c.bf16 %v1275_v19, %v1272_v16  ;;  %v7690_v31 = vpack.c.bf16 %v1277_v22, %v1274_v9  ;;  %v1456_v19 = vld [vmem:[%s8837_s2 + $0x40] sm:$0xff] }
 0x24b   :  { %v1459_v9 = vld [vmem:[%s8837_s2 + $0x58] sm:$0xff] }
 0x24c   :  { %v7446_v49 = vadd.f32 %v6734_v33, %v784_v47  ;;  %v1250_v33 = vld [vmem:[%s8837_s2 + $0xa0] sm:$0xff]  ;;  %v7741_v22 = vpack.c.bf16 %v1459_v9, %v1456_v19 }
 0x24d   :  { %v7579_v47 = vpack.c.bf16 %v1253_v42, %v1250_v33 }
 0x24e   :  { %907 = vmatmul.mubr.f32.vlgmr.msra.gmra.mrb[4].mxu0 %v7446_v49  ;;  %5125 = vmatmul.mubr.f32.vlgmr.msra.gmra.mrb[12].mxu1 %v7446_v49 }
 0x24f   :  { %5861 = vmatpush1.bf16.msra.mxu0 %v7087_v17  ;;  %5892 = vmatpush3.bf16.msra.mxu1 %v7156_v41 }
 0x250   :  { %5863 = vmatprep.subr.bf16.mxu0 %v7090_v18  ;;  %5893 = vmatprep.subr.bf16.mxu1 %v6879_v40 }
 0x251   :  { %1124 = vmatprep.mubr.f32.mxu0 %v6878_v3  ;;  %5159 = vmatprep.mubr.msk.f32.mxu1 %vm6880_vm0, %v6878_v3 }
 0x253   :  { %5865 = vmatpush1.bf16.msra.mxu0 %v7110_v25  ;;  %5895 = vmatpush3.bf16.msra.mxu1 %v7187_v51 }
 0x254   :  { %5867 = vmatprep.subr.bf16.mxu0 %v7113_v26  ;;  %5896 = vmatprep.subr.bf16.mxu1 %v6879_v40 }
 0x257   :  { %5869 = vmatpush1.bf16.msra.mxu0 %v7138_v34  ;;  %5898 = vmatpush3.bf16.msra.mxu1 %v7219_v61 }
 0x258   :  { %5871 = vmatprep.subr.bf16.mxu0 %v7141_v35  ;;  %5899 = vmatprep.subr.bf16.mxu1 %v6879_v40 }
 0x25b   :  { %5873 = vmatpush1.bf16.msra.mxu0 %v7169_v45  ;;  %5901 = vmatpush3.bf16.msra.mxu1 %v7254_v10 }
 0x25c   :  { %5875 = vmatprep.subr.bf16.mxu0 %v7172_v46  ;;  %5902 = vmatprep.subr.bf16.mxu1 %v6879_v40 }
 0x25f   :  { %5877 = vmatpush1.bf16.msra.mxu0 %v7201_v55  ;;  %5904 = vmatpush3.bf16.msra.mxu1 %v7280_v20 }
 0x260   :  { %5879 = vmatprep.subr.bf16.mxu0 %v7204_v56  ;;  %5905 = vmatprep.subr.bf16.mxu1 %v6879_v40 }
 0x263   :  { %5881 = vmatpush1.bf16.msra.mxu0 %v7233_v1  ;;  %5907 = vmatpush3.bf16.msra.mxu1 %v7297_v24 }
 0x264   :  { %5883 = vmatprep.subr.bf16.mxu0 %v7239_v4  ;;  %5908 = vmatprep.subr.bf16.mxu1 %v6879_v40 }
 0x267   :  { %5885 = vmatpush1.bf16.msra.mxu0 %v7265_v13  ;;  %5910 = vmatpush3.bf16.msra.mxu1 %v7310_v29 }
 0x268   :  { %5887 = vmatprep.subr.bf16.mxu0 %v7271_v15  ;;  %5911 = vmatprep.subr.bf16.mxu1 %v6879_v40 }
 0x26b   :  { %5889 = vmatpush1.bf16.msra.mxu0 %v7293_v23  ;;  %5913 = vmatpush3.bf16.msra.mxu1 %v7324_v32 }
 0x26c   :  { %5946 = vmatprep.subr.bf16.mxu1 %v6879_v40 }
 0x321   :  { %v908_v17 = vpop.f32.mrb[4].mxu0  ;;  %v979_v18 = vpop.f32.mrb[12].mxu1 }
 0x322   :  { %v6654_v25 = vadd.f32 %v908_v17, %v7387_v0  ;;  %v910_v26 = vpop.f32.mrb[5].mxu0  ;;  %v5126_v34 = vpop.f32.mrb[13].mxu1  ;;  %v997_v4 = vadd.f32 %v7399_v27, %v979_v18  ;;  %v1255_v17 = vld [vmem:[%s8837_s2 + $0xc8] sm:$0xff]  ;;  %v1258_v18 = vld [vmem:[%s8837_s2 + $0xe0] sm:$0xff] }
 0x323   :  { %v6655_v45 = vadd.f32 %v910_v26, %v7393_v11  ;;  %v1254_v26 = vld [vmem:[%s8837_s2 + $0xc0] sm:$0xff]  ;;  %v1257_v34 = vld [vmem:[%s8837_s2 + $0xd8] sm:$0xff] }
 0x324   :  { %v4186_v35 = vmul.f32 -1.442695, %v6654_v25  ;;  %v7589_v25 = vpack.c.bf16 %v1258_v18, %v1255_v17 }
 0x325   :  { %v4187_v46 = vmul.f32 -1.442695, %v6655_v45  ;;  %v7601_v45 = vpack.c.bf16 %v1257_v34, %v1254_v26 }
 0x326   :  { %6737 = vpow2.f32 %v4186_v35  ;;  %v1256_v35 = vld [vmem:[%s8837_s2 + $0xd0] sm:$0xff] }
 0x327   :  { %6739 = vpow2.f32 %v4187_v46  ;;  %v1259_v46 = vld [vmem:[%s8837_s2 + $0xe8] sm:$0xff] }
 0x330   :  { %v6738_v55 = vpop.eup %6737 }
 0x331   :  { %v987_v56 = vadd.f32 1.0, %v6738_v55  ;;  %v6740_v1 = vpop.eup %6739  ;;  %v1261_v55 = vld [vmem:[%s8837_s2 + $0xf8] sm:$0xff] }
 0x332   :  { %v994_v20 = vadd.f32 1.0, %v6740_v1  ;;  %v7613_v1 = vpack.c.bf16 %v1259_v46, %v1256_v35 }
 0x333   :  { %6741 = vrcp.f32 %v987_v56  ;;  %v1264_v56 = vld [vmem:[%s8837_s2 + $0x110] sm:$0xff] }
 0x33d   :  { %v6742_v10 = vpop.eup %6741 }
 0x33e   :  { %v998_v13 = vmul.f32 %v6742_v10, %v997_v4  ;;  %v7615_v4 = vpack.c.bf16 %v1264_v56, %v1261_v55  ;;  %v1260_v10 = vld [vmem:[%s8837_s2 + $0xf0] sm:$0xff] }
 0x340   :  { %v999_v15 = vadd.f32 %v998_v13, %v7374_v50  ;;  %v1231_v50 = vld [vmem:[%s8837_s2 + $0x8] sm:$0xff] }
 0x341   :  { %v1263_v13 = vld [vmem:[%s8837_s2 + $0x108] sm:$0xff] }
 0x342   :  { %6743 = vtanh.f32 %v999_v15  ;;  %v1262_v15 = vld [vmem:[%s8837_s2 + $0x100] sm:$0xff] }
 0x343   :  { %6745 = vrcp.f32 %v994_v20  ;;  %v7627_v20 = vpack.c.bf16 %v1263_v13, %v1260_v10 }
 0x34c   :  { %v6744_v23 = vpop.eup %6743 }
 0x34d   :  { %v1001_v24 = vsub.f32 %v7446_v49, %v6744_v23  ;;  %v6746_v29 = vpop.eup %6745 }
 0x34f   :  { %v1002_v32 = vmul.f32 %v6746_v29, %v1001_v24  ;;  %v1267_v24 = vld [vmem:[%s8837_s2 + $0x128] sm:$0xff]  ;;  %v1270_v29 = vld [vmem:[%s8837_s2 + $0x140] sm:$0xff] }
 0x351   :  { %v7489_v43 = vadd.f32 %v6744_v23, %v1002_v32  ;;  %v1265_v23 = vld [vmem:[%s8837_s2 + $0x118] sm:$0xff] }
 0x352   :  { %v7640_v32 = vpack.c.bf16 %v1265_v23, %v1262_v15 }
 0x353   :  { %1125 = vmatmul.mubr.f32.vlgmr.msra.gmra.mrb[6].mxu0 %v7489_v43  ;;  %5160 = vmatmul.mubr.f32.vlgmr.msra.gmra.mrb[14].mxu1 %v7489_v43 }
 0x354   :  { %5948 = vmatpush3.bf16.msra.mxu1 %v7156_v41  ;;  %1342 = vmatprep.mubr.f32.mxu0 %v6878_v3  ;;  %v1234_v41 = vld [vmem:[%s8837_s2 + $0x20] sm:$0xff] }
 0x355   :  { %5949 = vmatprep.subr.bf16.mxu1 %v6879_v40  ;;  %5194 = vmatprep.mubr.msk.f32.mxu1 %vm6880_vm0, %v6878_v3  ;;  %v7508_v52 = vpack.c.bf16 %v1234_v41, %v1231_v50  ;;  %v7642_v50 = vpack.c.bf16 %v1270_v29, %v1267_v24  ;;  %v1266_v41 = vld [vmem:[%s8837_s2 + $0x120] sm:$0xff] }
 0x357   :  { %5915 = vmatprep.subr.bf16.mxu0 %v7508_v52 }
 0x358   :  { %5951 = vmatpush3.bf16.msra.mxu1 %v7187_v51  ;;  %v1230_v51 = vld [vmem:[%s8837_s2] sm:$0xff] }
 0x359   :  { %5952 = vmatprep.subr.bf16.mxu1 %v6879_v40 }
 0x35c   :  { %5954 = vmatpush3.bf16.msra.mxu1 %v7219_v61  ;;  %v1233_v61 = vld [vmem:[%s8837_s2 + $0x18] sm:$0xff] }
 0x35d   :  { %5955 = vmatprep.subr.bf16.mxu1 %v6879_v40  ;;  %v7516_v54 = vpack.c.bf16 %v1233_v61, %v1230_v51  ;;  %v1269_v51 = vld [vmem:[%s8837_s2 + $0x138] sm:$0xff]  ;;  %v1268_v61 = vld [vmem:[%s8837_s2 + $0x130] sm:$0xff] }
 0x35e   :  { %v7664_v5 = vpack.c.bf16 %v1269_v51, %v1266_v41  ;;  %v7668_v8 = vpack.c.bf16 %v1271_v58, %v1268_v61 }
 0x35f   :  { %5917 = vmatpush1.bf16.msra.mxu0 %v7516_v54 }
 0x360   :  { %5919 = vmatprep.subr.bf16.mxu0 %v7526_v44  ;;  %5957 = vmatpush3.bf16.msra.mxu1 %v7579_v47 }
 0x361   :  { %5958 = vmatprep.subr.bf16.mxu1 %v6879_v40 }
 0x363   :  { %5921 = vmatpush1.bf16.msra.mxu0 %v7534_v7 }
 0x364   :  { %5923 = vmatprep.subr.bf16.mxu0 %v7544_v14  ;;  %5960 = vmatpush3.bf16.msra.mxu1 %v7613_v1 }
 0x365   :  { %5961 = vmatprep.subr.bf16.mxu1 %v6879_v40 }
 0x367   :  { %5925 = vmatpush1.bf16.msra.mxu0 %v7552_v21 }
 0x368   :  { %5927 = vmatprep.subr.bf16.mxu0 %v7562_v28  ;;  %5963 = vmatpush3.bf16.msra.mxu1 %v7640_v32 }
 0x369   :  { %5964 = vmatprep.subr.bf16.mxu1 %v6879_v40 }
 0x36b   :  { %5929 = vmatpush1.bf16.msra.mxu0 %v7573_v38 }
 0x36c   :  { %5931 = vmatprep.subr.bf16.mxu0 %v7589_v25  ;;  %5966 = vmatpush3.bf16.msra.mxu1 %v7668_v8 }
 0x36d   :  { %5967 = vmatprep.subr.bf16.mxu1 %v6879_v40 }
 0x36f   :  { %5933 = vmatpush1.bf16.msra.mxu0 %v7601_v45 }
 0x370   :  { %5935 = vmatprep.subr.bf16.mxu0 %v7615_v4  ;;  %5969 = vmatpush3.bf16.msra.mxu1 %v7690_v31 }
 0x371   :  { %6002 = vmatprep.subr.bf16.mxu1 %v6879_v40 }
 0x373   :  { %5937 = vmatpush1.bf16.msra.mxu0 %v7627_v20 }
 0x374   :  { %5939 = vmatprep.subr.bf16.mxu0 %v7642_v50 }
 0x377   :  { %5941 = vmatpush1.bf16.msra.mxu0 %v7664_v5 }
 0x378   :  { %5943 = vmatprep.subr.bf16.mxu0 %v7670_v12 }
 0x37b   :  { %5945 = vmatpush1.bf16.msra.mxu0 %v7686_v30 }
 0x37c   :  { %5971 = vmatprep.subr.bf16.mxu0 %v7508_v52 }
 0x426   :  { %v1126_v33 = vpop.f32.mrb[6].mxu0  ;;  %v1197_v42 = vpop.f32.mrb[14].mxu1 }
 0x427   :  { %v6656_v17 = vadd.f32 %v1126_v33, %v7387_v0  ;;  %v1128_v18 = vpop.f32.mrb[7].mxu0  ;;  %v5161_v26 = vpop.f32.mrb[15].mxu1  ;;  %v1215_v13 = vadd.f32 %v7399_v27, %v1197_v42  ;;  %v1462_v33 = vld [vmem:[%s8837_s2 + $0x70] sm:$0xff]  ;;  %v1465_v42 = vld [vmem:[%s8837_s2 + $0x88] sm:$0xff] }
 0x428   :  { %v6657_v35 = vadd.f32 %v1128_v18, %v7393_v11 }
 0x429   :  { %v4188_v34 = vmul.f32 -1.442695, %v6656_v17  ;;  %v7751_v17 = vpack.c.bf16 %v1465_v42, %v1462_v33 }
 0x42a   :  { %v4189_v46 = vmul.f32 -1.442695, %v6657_v35 }
 0x42b   :  { %6747 = vpow2.f32 %v4188_v34 }
 0x42c   :  { %6749 = vpow2.f32 %v4189_v46 }
 0x435   :  { %v6748_v55 = vpop.eup %6747 }
 0x436   :  { %v1205_v56 = vadd.f32 1.0, %v6748_v55  ;;  %v6750_v10 = vpop.eup %6749 }
 0x437   :  { %v1212_v29 = vadd.f32 1.0, %v6750_v10 }
 0x438   :  { %6751 = vrcp.f32 %v1205_v56 }
 0x442   :  { %v6752_v15 = vpop.eup %6751 }
 0x443   :  { %v1216_v23 = vmul.f32 %v6752_v15, %v1215_v13 }
 0x445   :  { %v1217_v24 = vadd.f32 %v1216_v23, %v7372_v48  ;;  %v1450_v48 = vld [vmem:[%s8837_s2 + $0x10] sm:$0xff] }
 0x446   :  { %v7731_v16 = vpack.c.bf16 %v1453_v2, %v1450_v48 }
 0x447   :  { %6753 = vtanh.f32 %v1217_v24 }
 0x448   :  { %6755 = vrcp.f32 %v1212_v29 }
 0x451   :  { %v6754_v41 = vpop.eup %6753 }
 0x452   :  { %v1219_v51 = vsub.f32 %v7489_v43, %v6754_v41  ;;  %v6756_v61 = vpop.eup %6755 }
 0x454   :  { %v1220_v58 = vmul.f32 %v6756_v61, %v1219_v51 }
 0x456   :  { %v7702_v39 = vadd.f32 %v6754_v41, %v1220_v58 }
 0x458   :  { %1343 = vmatmul.mubr.f32.vlgmr.msra.gmra.mrb[8].mxu0 %v7702_v39  ;;  %5195 = vmatmul.mubr.f32.vlgmr.msra.gmra.mrb[16].mxu1 %v7702_v39 }
 0x459   :  { %5973 = vmatpush1.bf16.msra.mxu0 %v7516_v54  ;;  %1560 = vmatprep.mubr.f32.mxu0 %v6878_v3 }
 0x45a   :  { %5975 = vmatprep.subr.bf16.mxu0 %v7526_v44  ;;  %5229 = vmatprep.mubr.msk.f32.mxu1 %vm6880_vm0, %v6878_v3 }
 0x45b   :  { %6004 = vmatpush3.bf16.msra.mxu1 %v7731_v16 }
 0x45c   :  { %6005 = vmatprep.subr.bf16.mxu1 %v6879_v40 }
 0x45d   :  { %5977 = vmatpush1.bf16.msra.mxu0 %v7534_v7 }
 0x45e   :  { %5979 = vmatprep.subr.bf16.mxu0 %v7544_v14 }
 0x45f   :  { %6007 = vmatpush3.bf16.msra.mxu1 %v7741_v22 }
 0x460   :  { %6008 = vmatprep.subr.bf16.mxu1 %v6879_v40 }
 0x461   :  { %5981 = vmatpush1.bf16.msra.mxu0 %v7552_v21 }
 0x462   :  { %5983 = vmatprep.subr.bf16.mxu0 %v7562_v28 }
 0x463   :  { %6010 = vmatpush3.bf16.msra.mxu1 %v7751_v17 }
 0x464   :  { %6011 = vmatprep.subr.bf16.mxu1 %v6879_v40 }
 0x465   :  { %5985 = vmatpush1.bf16.msra.mxu0 %v7573_v38 }
 0x466   :  { %5987 = vmatprep.subr.bf16.mxu0 %v7589_v25 }
 0x467   :  { %6013 = vmatpush3.bf16.msra.mxu1 %v7579_v47 }
 0x468   :  { %6014 = vmatprep.subr.bf16.mxu1 %v6879_v40 }
 0x469   :  { %5989 = vmatpush1.bf16.msra.mxu0 %v7601_v45 }
 0x46a   :  { %5991 = vmatprep.subr.bf16.mxu0 %v7615_v4 }
 0x46b   :  { %6016 = vmatpush3.bf16.msra.mxu1 %v7613_v1 }
 0x46c   :  { %6017 = vmatprep.subr.bf16.mxu1 %v6879_v40 }
 0x46d   :  { %5993 = vmatpush1.bf16.msra.mxu0 %v7627_v20 }
 0x46e   :  { %5995 = vmatprep.subr.bf16.mxu0 %v7642_v50 }
 0x46f   :  { %6019 = vmatpush3.bf16.msra.mxu1 %v7640_v32 }
 0x470   :  { %6020 = vmatprep.subr.bf16.mxu1 %v6879_v40 }
 0x471   :  { %5997 = vmatpush1.bf16.msra.mxu0 %v7664_v5 }
 0x472   :  { %5999 = vmatprep.subr.bf16.mxu0 %v7670_v12 }
 0x473   :  { %6022 = vmatpush3.bf16.msra.mxu1 %v7668_v8 }
 0x474   :  { %6023 = vmatprep.subr.bf16.mxu1 %v6879_v40 }
 0x475   :  { %6001 = vmatpush1.bf16.msra.mxu0 %v7686_v30 }
 0x476   :  { %6027 = vmatprep.subr.bf16.mxu0 %v7508_v52 }
 0x477   :  { %6025 = vmatpush3.bf16.msra.mxu1 %v7690_v31 }
 0x478   :  { %6058 = vmatprep.subr.bf16.mxu1 %v6879_v40 }
 0x52b   :  { %v1344_v18 = vpop.f32.mrb[8].mxu0  ;;  %v1415_v26 = vpop.f32.mrb[16].mxu1 }
 0x52c   :  { %v6658_v34 = vadd.f32 %v1344_v18, %v7387_v0  ;;  %v1346_v35 = vpop.f32.mrb[9].mxu0  ;;  %v5196_v46 = vpop.f32.mrb[17].mxu1  ;;  %v1433_v24 = vadd.f32 %v7399_v27, %v1415_v26 }
 0x52d   :  { %v6659_v56 = vadd.f32 %v1346_v35, %v7393_v11 }
 0x52e   :  { %v4190_v55 = vmul.f32 -1.442695, %v6658_v34 }
 0x52f   :  { %v4191_v10 = vmul.f32 -1.442695, %v6659_v56 }
 0x530   :  { %6757 = vpow2.f32 %v4190_v55 }
 0x531   :  { %6759 = vpow2.f32 %v4191_v10 }
 0x53a   :  { %v6758_v13 = vpop.eup %6757 }
 0x53b   :  { %v1423_v15 = vadd.f32 1.0, %v6758_v13  ;;  %v6760_v23 = vpop.eup %6759 }
 0x53c   :  { %v1430_v61 = vadd.f32 1.0, %v6760_v23 }
 0x53d   :  { %6761 = vrcp.f32 %v1423_v15 }
 0x547   :  { %v6762_v29 = vpop.eup %6761 }
 0x548   :  { %v1434_v41 = vmul.f32 %v6762_v29, %v1433_v24 }
 0x54a   :  { %v1435_v51 = vadd.f32 %v1434_v41, %v7378_v57 }
 0x54c   :  { %6763 = vtanh.f32 %v1435_v51 }
 0x54d   :  { %6765 = vrcp.f32 %v1430_v61 }
 0x556   :  { %v6764_v58 = vpop.eup %6763 }
 0x557   :  { %v1437_v48 = vsub.f32 %v7702_v39, %v6764_v58  ;;  %v6766_v2 = vpop.eup %6765 }
 0x559   :  { %v1438_v19 = vmul.f32 %v6766_v2, %v1437_v48  ;;  %v4198_v48 = vld [vmem:[%s8835_s1 + $0x180] sm:$0xff]  ;;  %v4201_v2 = vld [vmem:[%s8835_s1 + $0x198] sm:$0xff] }
 0x55b   :  { %v7770_v9 = vadd.f32 %v6764_v58, %v1438_v19 }
 0x55d   :  { %1561 = vmatmul.mubr.f32.vlgmr.msra.gmra.mrb[10].mxu0 %v7770_v9  ;;  %5230 = vmatmul.mubr.f32.vlgmr.msra.gmra.mrb[18].mxu1 %v7770_v9 }
 0x55e   :  { %6029 = vmatpush1.bf16.msra.mxu0 %v7516_v54  ;;  %6060 = vmatpush3.bf16.msra.mxu1 %v7731_v16 }
 0x55f   :  { %6031 = vmatprep.subr.bf16.mxu0 %v7526_v44  ;;  %6061 = vmatprep.subr.bf16.mxu1 %v6879_v40 }
 0x560   :  { %1778 = vmatprep.mubr.f32.mxu0 %v6878_v3  ;;  %5264 = vmatprep.mubr.msk.f32.mxu1 %vm6880_vm0, %v6878_v3 }
 0x562   :  { %6033 = vmatpush1.bf16.msra.mxu0 %v7534_v7  ;;  %6063 = vmatpush3.bf16.msra.mxu1 %v7741_v22 }
 0x563   :  { %6035 = vmatprep.subr.bf16.mxu0 %v7544_v14  ;;  %6064 = vmatprep.subr.bf16.mxu1 %v6879_v40 }
 0x566   :  { %6037 = vmatpush1.bf16.msra.mxu0 %v7552_v21  ;;  %6066 = vmatpush3.bf16.msra.mxu1 %v7751_v17 }
 0x567   :  { %6039 = vmatprep.subr.bf16.mxu0 %v7562_v28  ;;  %6067 = vmatprep.subr.bf16.mxu1 %v6879_v40 }
 0x56a   :  { %6041 = vmatpush1.bf16.msra.mxu0 %v7573_v38  ;;  %6069 = vmatpush3.bf16.msra.mxu1 %v7579_v47 }
 0x56b   :  { %6043 = vmatprep.subr.bf16.mxu0 %v7589_v25  ;;  %6070 = vmatprep.subr.bf16.mxu1 %v6879_v40 }
 0x56e   :  { %6045 = vmatpush1.bf16.msra.mxu0 %v7601_v45  ;;  %6072 = vmatpush3.bf16.msra.mxu1 %v7613_v1 }
 0x56f   :  { %6047 = vmatprep.subr.bf16.mxu0 %v7615_v4  ;;  %6073 = vmatprep.subr.bf16.mxu1 %v6879_v40 }
 0x572   :  { %6049 = vmatpush1.bf16.msra.mxu0 %v7627_v20  ;;  %6075 = vmatpush3.bf16.msra.mxu1 %v7640_v32 }
 0x573   :  { %6051 = vmatprep.subr.bf16.mxu0 %v7642_v50  ;;  %6076 = vmatprep.subr.bf16.mxu1 %v6879_v40 }
 0x576   :  { %6053 = vmatpush1.bf16.msra.mxu0 %v7664_v5  ;;  %6078 = vmatpush3.bf16.msra.mxu1 %v7668_v8 }
 0x577   :  { %6055 = vmatprep.subr.bf16.mxu0 %v7670_v12  ;;  %6079 = vmatprep.subr.bf16.mxu1 %v6879_v40 }
 0x57a   :  { %6057 = vmatpush1.bf16.msra.mxu0 %v7686_v30  ;;  %6081 = vmatpush3.bf16.msra.mxu1 %v7690_v31 }
 0x57b   :  { %6083 = vmatprep.subr.bf16.mxu0 %v7508_v52  ;;  %6114 = vmatprep.subr.bf16.mxu1 %v6879_v40 }
 0x630   :  { %v1562_v57 = vpop.f32.mrb[10].mxu0  ;;  %v1633_v33 = vpop.f32.mrb[18].mxu1 }
 0x631   :  { %v6660_v42 = vadd.f32 %v1562_v57, %v7387_v0  ;;  %v1564_v18 = vpop.f32.mrb[11].mxu0  ;;  %v5231_v26 = vpop.f32.mrb[19].mxu1  ;;  %v1651_v52 = vadd.f32 %v7399_v27, %v1633_v33  ;;  %v4206_v33 = vld [vmem:[%s8835_s1 + $0x1c0] sm:$0xff] }
 0x632   :  { %v6661_v35 = vadd.f32 %v1564_v18, %v7393_v11  ;;  %v6140_v18 = vpack.c.bf16 %v4201_v2, %v4198_v48  ;;  %v4231_v48 = vld [vmem:[%s8835_s1 + $0x288] sm:$0xff] }
 0x633   :  { %v4192_v34 = vmul.f32 -1.442695, %v6660_v42  ;;  %v4209_v42 = vld [vmem:[%s8835_s1 + $0x1d8] sm:$0xff]  ;;  %v4235_v2 = vld [vmem:[%s8835_s1 + $0x2a8] sm:$0xff] }
 0x634   :  { %v4193_v46 = vmul.f32 -1.442695, %v6661_v35  ;;  %v4204_v35 = vld [vmem:[%s8835_s1 + $0x1b0] sm:$0xff] }
 0x635   :  { %6767 = vpow2.f32 %v4192_v34 }
 0x636   :  { %6769 = vpow2.f32 %v4193_v46  ;;  %v4207_v46 = vld [vmem:[%s8835_s1 + $0x1c8] sm:$0xff] }
 0x63f   :  { %v6768_v55 = vpop.eup %6767 }
 0x640   :  { %v1641_v56 = vadd.f32 1.0, %v6768_v55  ;;  %v6770_v10 = vpop.eup %6769  ;;  %v4211_v55 = vld [vmem:[%s8835_s1 + $0x1e8] sm:$0xff] }
 0x641   :  { %v1648_v24 = vadd.f32 1.0, %v6770_v10  ;;  %v4214_v10 = vld [vmem:[%s8835_s1 + $0x200] sm:$0xff] }
 0x642   :  { %6771 = vrcp.f32 %v1641_v56  ;;  %v6174_v56 = vpack.c.bf16 %v4209_v42, %v4206_v33 }
 0x64c   :  { %v6772_v13 = vpop.eup %6771 }
 0x64d   :  { %v1652_v15 = vmul.f32 %v6772_v13, %v1651_v52  ;;  %v4212_v52 = vld [vmem:[%s8835_s1 + $0x1f0] sm:$0xff]  ;;  %v4215_v13 = vld [vmem:[%s8835_s1 + $0x208] sm:$0xff] }
 0x64f   :  { %v1653_v23 = vadd.f32 %v1652_v15, %v7376_v53  ;;  %v4199_v53 = vld [vmem:[%s8835_s1 + $0x188] sm:$0xff]  ;;  %v6144_v15 = vpack.c.bf16 %v4207_v46, %v4204_v35  ;;  %v4241_v35 = vld [vmem:[%s8835_s1 + $0x2d8] sm:$0xff]  ;;  %v4244_v46 = vld [vmem:[%s8835_s1 + $0x2f0] sm:$0xff] }
 0x651   :  { %6773 = vtanh.f32 %v1653_v23  ;;  %v6146_v23 = vpack.c.bf16 %v4214_v10, %v4211_v55  ;;  %v4242_v55 = vld [vmem:[%s8835_s1 + $0x2e0] sm:$0xff] }
 0x652   :  { %6775 = vrcp.f32 %v1648_v24  ;;  %v6178_v24 = vpack.c.bf16 %v4215_v13, %v4212_v52  ;;  %v6166_v52 = vpack.c.bf16 %v4244_v46, %v4241_v35  ;;  %v4291_v46 = vld [vmem:[%s8837_s2 + $0x2d8] sm:$0xff] }
 0x65b   :  { %v6774_v29 = vpop.eup %6773 }
 0x65c   :  { %v1655_v41 = vsub.f32 %v7770_v9, %v6774_v29  ;;  %v6776_v51 = vpop.eup %6775 }
 0x65e   :  { %v1656_v61 = vmul.f32 %v6776_v51, %v1655_v41  ;;  %v4213_v41 = vld [vmem:[%s8835_s1 + $0x1f8] sm:$0xff] }
 0x65f   :  { %v4217_v51 = vld [vmem:[%s8835_s1 + $0x218] sm:$0xff] }
 0x660   :  { %v7814_v58 = vadd.f32 %v6774_v29, %v1656_v61  ;;  %v4210_v29 = vld [vmem:[%s8835_s1 + $0x1e0] sm:$0xff]  ;;  %v4220_v61 = vld [vmem:[%s8835_s1 + $0x230] sm:$0xff] }
 0x662   :  { %1779 = vmatmul.mubr.f32.vlgmr.msra.gmra.mrb[12].mxu0 %v7814_v58  ;;  %5265 = vmatmul.mubr.f32.vlgmr.msra.gmra.mrb[20].mxu1 %v7814_v58 }
 0x663   :  { %6085 = vmatpush1.bf16.msra.mxu0 %v7516_v54  ;;  %6116 = vmatpush3.bf16.msra.mxu1 %v7731_v16  ;;  %v4202_v54 = vld [vmem:[%s8835_s1 + $0x1a0] sm:$0xff] }
 0x664   :  { %6087 = vmatprep.subr.bf16.mxu0 %v7526_v44  ;;  %6117 = vmatprep.subr.bf16.mxu1 %v6879_v40  ;;  %v4200_v44 = vld [vmem:[%s8835_s1 + $0x190] sm:$0xff] }
 0x665   :  { %1996 = vmatprep.mubr.f32.mxu0 %v6878_v3  ;;  %5299 = vmatprep.mubr.msk.f32.mxu1 %vm6880_vm0, %v6878_v3 }
 0x667   :  { %6089 = vmatpush1.bf16.msra.mxu0 %v7534_v7  ;;  %6119 = vmatpush3.bf16.msra.mxu1 %v7741_v22  ;;  %v6138_v7 = vpack.c.bf16 %v4202_v54, %v4199_v53  ;;  %v4218_v53 = vld [vmem:[%s8835_s1 + $0x220] sm:$0xff]  ;;  %v4221_v54 = vld [vmem:[%s8835_s1 + $0x238] sm:$0xff] }
 0x668   :  { %6091 = vmatprep.subr.bf16.mxu0 %v7544_v14  ;;  %6120 = vmatprep.subr.bf16.mxu1 %v6879_v40  ;;  %v4203_v14 = vld [vmem:[%s8835_s1 + $0x1a8] sm:$0xff] }
 0x66b   :  { %6093 = vmatpush1.bf16.msra.mxu0 %v7552_v21  ;;  %6122 = vmatpush3.bf16.msra.mxu1 %v7751_v17  ;;  %v6170_v21 = vpack.c.bf16 %v4203_v14, %v4200_v44  ;;  %v6148_v44 = vpack.c.bf16 %v4213_v41, %v4210_v29  ;;  %v6182_v14 = vpack.c.bf16 %v4221_v54, %v4218_v53  ;;  %v4255_v29 = vld [vmem:[%s8837_s2 + $0x1b8] sm:$0xff]  ;;  %v4258_v41 = vld [vmem:[%s8837_s2 + $0x1d0] sm:$0xff]  ;;  %v4257_v53 = vld [vmem:[%s8837_s2 + $0x1c8] sm:$0xff] }
 0x66c   :  { %6095 = vmatprep.subr.bf16.mxu0 %v7562_v28  ;;  %6123 = vmatprep.subr.bf16.mxu1 %v6879_v40 }
 0x66f   :  { %6097 = vmatpush1.bf16.msra.mxu0 %v7573_v38  ;;  %6125 = vmatpush3.bf16.msra.mxu1 %v7579_v47 }
 0x670   :  { %6099 = vmatprep.subr.bf16.mxu0 %v7589_v25  ;;  %6126 = vmatprep.subr.bf16.mxu1 %v6879_v40 }
 0x673   :  { %6101 = vmatpush1.bf16.msra.mxu0 %v7601_v45  ;;  %6128 = vmatpush3.bf16.msra.mxu1 %v7613_v1 }
 0x674   :  { %6103 = vmatprep.subr.bf16.mxu0 %v7615_v4  ;;  %6129 = vmatprep.subr.bf16.mxu1 %v6879_v40 }
 0x677   :  { %6105 = vmatpush1.bf16.msra.mxu0 %v7627_v20  ;;  %6131 = vmatpush3.bf16.msra.mxu1 %v7640_v32 }
 0x678   :  { %6107 = vmatprep.subr.bf16.mxu0 %v7642_v50  ;;  %6132 = vmatprep.subr.bf16.mxu1 %v6879_v40 }
 0x67b   :  { %6109 = vmatpush1.bf16.msra.mxu0 %v7664_v5  ;;  %6134 = vmatpush3.bf16.msra.mxu1 %v7668_v8 }
 0x67c   :  { %6111 = vmatprep.subr.bf16.mxu0 %v7670_v12  ;;  %6135 = vmatprep.subr.bf16.mxu1 %v6879_v40 }
 0x67f   :  { %6113 = vmatpush1.bf16.msra.mxu0 %v7686_v30  ;;  %6137 = vmatpush3.bf16.msra.mxu1 %v7690_v31 }
 0x680   :  { %6139 = vmatprep.subr.bf16.mxu0 %v6138_v7  ;;  %6171 = vmatprep.subr.bf16.mxu1 %v6170_v21  ;;  %v6150_v7 = vpack.c.bf16 %v4220_v61, %v4217_v51  ;;  %v8051_v51 = vpack.c.bf16 %v4258_v41, %v4255_v29  ;;  %v4254_v61 = vld [vmem:[%s8837_s2 + $0x1b0] sm:$0xff]  ;;  %v4271_v29 = vld [vmem:[%s8837_s2 + $0x238] sm:$0xff] }
 0x681   :  { %v8059_v54 = vpack.c.bf16 %v4257_v53, %v4254_v61  ;;  %v4274_v61 = vld [vmem:[%s8837_s2 + $0x250] sm:$0xff]  ;;  %v4277_v53 = vld [vmem:[%s8837_s2 + $0x268] sm:$0xff] }
 0x735   :  { %v1780_v28 = vpop.f32.mrb[12].mxu0  ;;  %v1851_v38 = vpop.f32.mrb[20].mxu1 }
 0x736   :  { %v6662_v47 = vadd.f32 %v1780_v28, %v7387_v0  ;;  %v1782_v25 = vpop.f32.mrb[13].mxu0  ;;  %v5266_v45 = vpop.f32.mrb[21].mxu1  ;;  %v1869_v8 = vadd.f32 %v7399_v27, %v1851_v38  ;;  %v4205_v27 = vld [vmem:[%s8835_s1 + $0x1b8] sm:$0xff]  ;;  %v4219_v28 = vld [vmem:[%s8835_s1 + $0x228] sm:$0xff] }
 0x737   :  { %v6663_v4 = vadd.f32 %v1782_v25, %v7393_v11  ;;  %v4223_v38 = vld [vmem:[%s8835_s1 + $0x248] sm:$0xff]  ;;  %v4224_v25 = vld [vmem:[%s8835_s1 + $0x250] sm:$0xff] }
 0x738   :  { %v4194_v1 = vmul.f32 -1.442695, %v6662_v47  ;;  %v4226_v47 = vld [vmem:[%s8835_s1 + $0x260] sm:$0xff]  ;;  %v4227_v45 = vld [vmem:[%s8835_s1 + $0x268] sm:$0xff] }
 0x739   :  { %v4195_v20 = vmul.f32 -1.442695, %v6663_v4  ;;  %v6154_v4 = vpack.c.bf16 %v4226_v47, %v4223_v38  ;;  %v4267_v47 = vld [vmem:[%s8837_s2 + $0x218] sm:$0xff] }
 0x73a   :  { %6777 = vpow2.f32 %v4194_v1 }
 0x73b   :  { %6779 = vpow2.f32 %v4195_v20  ;;  %v6186_v20 = vpack.c.bf16 %v4227_v45, %v4224_v25  ;;  %v4270_v25 = vld [vmem:[%s8837_s2 + $0x230] sm:$0xff] }
 0x73c   :  { %v8087_v45 = vpack.c.bf16 %v4270_v25, %v4267_v47  ;;  %v4286_v47 = vld [vmem:[%s8837_s2 + $0x2b0] sm:$0xff]  ;;  %v4289_v25 = vld [vmem:[%s8837_s2 + $0x2c8] sm:$0xff] }
 0x744   :  { %v6778_v32 = vpop.eup %6777 }
 0x745   :  { %v1859_v50 = vadd.f32 1.0, %v6778_v32  ;;  %v6780_v5 = vpop.eup %6779  ;;  %v4222_v32 = vld [vmem:[%s8835_s1 + $0x240] sm:$0xff] }
 0x746   :  { %v1866_v16 = vadd.f32 1.0, %v6780_v5  ;;  %v4229_v5 = vld [vmem:[%s8835_s1 + $0x278] sm:$0xff] }
 0x747   :  { %6781 = vrcp.f32 %v1859_v50  ;;  %v4225_v50 = vld [vmem:[%s8835_s1 + $0x258] sm:$0xff] }
 0x751   :  { %v6782_v12 = vpop.eup %6781 }
 0x752   :  { %v1870_v30 = vmul.f32 %v6782_v12, %v1869_v8  ;;  %v4232_v8 = vld [vmem:[%s8835_s1 + $0x290] sm:$0xff]  ;;  %v4230_v12 = vld [vmem:[%s8835_s1 + $0x280] sm:$0xff] }
 0x754   :  { %v1871_v31 = vadd.f32 %v1870_v30, %v7382_v62  ;;  %v4208_v62 = vld [vmem:[%s8835_s1 + $0x1d0] sm:$0xff]  ;;  %v4233_v30 = vld [vmem:[%s8835_s1 + $0x298] sm:$0xff] }
 0x755   :  { %v6142_v34 = vpack.c.bf16 %v4208_v62, %v4205_v27  ;;  %v4236_v27 = vld [vmem:[%s8835_s1 + $0x2b0] sm:$0xff]  ;;  %v4239_v62 = vld [vmem:[%s8835_s1 + $0x2c8] sm:$0xff] }
 0x756   :  { %6783 = vtanh.f32 %v1871_v31  ;;  %v6156_v31 = vpack.c.bf16 %v4225_v50, %v4222_v32  ;;  %v6194_v42 = vpack.c.bf16 %v4239_v62, %v4236_v27  ;;  %v4273_v32 = vld [vmem:[%s8837_s2 + $0x248] sm:$0xff]  ;;  %v4276_v50 = vld [vmem:[%s8837_s2 + $0x260] sm:$0xff] }
 0x757   :  { %6785 = vrcp.f32 %v1866_v16  ;;  %v6158_v16 = vpack.c.bf16 %v4232_v8, %v4229_v5  ;;  %v8105_v5 = vpack.c.bf16 %v4276_v50, %v4273_v32  ;;  %v4272_v8 = vld [vmem:[%s8837_s2 + $0x240] sm:$0xff]  ;;  %v4295_v32 = vld [vmem:[%s8837_s2 + $0x2f8] sm:$0xff] }
 0x758   :  { %v4288_v27 = vld [vmem:[%s8837_s2 + $0x2c0] sm:$0xff] }
 0x759   :  { %v4284_v62 = vld [vmem:[%s8837_s2 + $0x2a0] sm:$0xff] }
 0x760   :  { %v6784_v22 = vpop.eup %6783 }
 0x761   :  { %v1873_v17 = vsub.f32 %v7814_v58, %v6784_v22  ;;  %v6786_v19 = vpop.eup %6785 }
 0x763   :  { %v1874_v57 = vmul.f32 %v6786_v19, %v1873_v17  ;;  %v4228_v17 = vld [vmem:[%s8835_s1 + $0x270] sm:$0xff]  ;;  %v4238_v19 = vld [vmem:[%s8835_s1 + $0x2c0] sm:$0xff] }
 0x764   :  { %v6162_v33 = vpack.c.bf16 %v4238_v19, %v4235_v2  ;;  %v4285_v19 = vld [vmem:[%s8837_s2 + $0x2a8] sm:$0xff] }
 0x765   :  { %v7886_v26 = vadd.f32 %v6784_v22, %v1874_v57  ;;  %v6190_v22 = vpack.c.bf16 %v4233_v30, %v4230_v12  ;;  %v6160_v57 = vpack.c.bf16 %v4231_v48, %v4228_v17  ;;  %v4275_v12 = vld [vmem:[%s8837_s2 + $0x258] sm:$0xff]  ;;  %v4278_v17 = vld [vmem:[%s8837_s2 + $0x270] sm:$0xff]  ;;  %v4281_v48 = vld [vmem:[%s8837_s2 + $0x288] sm:$0xff] }
 0x766   :  { %v8113_v30 = vpack.c.bf16 %v4275_v12, %v4272_v8  ;;  %v8131_v2 = vpack.c.bf16 %v4281_v48, %v4278_v17 }
 0x767   :  { %1997 = vmatmul.mubr.f32.vlgmr.msra.gmra.mrb[14].mxu0 %v7886_v26  ;;  %5300 = vmatmul.mubr.f32.vlgmr.msra.gmra.mrb[22].mxu1 %v7886_v26 }
 0x768   :  { %6141 = vmatpush1.bf16.msra.mxu0 %v6140_v18  ;;  %6173 = vmatpush3.bf16.msra.mxu1 %v6170_v21  ;;  %v4216_v21 = vld [vmem:[%s8835_s1 + $0x210] sm:$0xff]  ;;  %v4234_v18 = vld [vmem:[%s8835_s1 + $0x2a0] sm:$0xff] }
 0x769   :  { %5334 = vmatprep.mubr.f32.mxu1 %v7402_v60  ;;  %6143 = vmatprep.subr.bf16.mxu0 %v6142_v34  ;;  %v6152_v1 = vpack.c.bf16 %v4219_v28, %v4216_v21  ;;  %v4237_v34 = vld [vmem:[%s8835_s1 + $0x2b8] sm:$0xff]  ;;  %v4260_v21 = vld [vmem:[%s8837_s2 + $0x1e0] sm:$0xff] }
 0x76a   :  { %6175 = vmatprep.subr.bf16.mxu1 %v6174_v56  ;;  %2246 = vmatprep.mubr.f32.mxu0 %v6878_v3  ;;  %v6164_v10 = vpack.c.bf16 %v4237_v34, %v4234_v18  ;;  %v4263_v28 = vld [vmem:[%s8837_s2 + $0x1f8] sm:$0xff]  ;;  %v4253_v18 = vld [vmem:[%s8837_s2 + $0x1a8] sm:$0xff] }
 0x76b   :  { %v8077_v38 = vpack.c.bf16 %v4263_v28, %v4260_v21  ;;  %v4283_v21 = vld [vmem:[%s8837_s2 + $0x298] sm:$0xff] }
 0x76c   :  { %6145 = vmatpush1.bf16.msra.mxu0 %v6144_v15  ;;  %6177 = vmatpush3.bf16.msra.mxu1 %v6174_v56  ;;  %v4245_v56 = vld [vmem:[%s8835_s1 + $0x2f8] sm:$0xff]  ;;  %v4240_v15 = vld [vmem:[%s8835_s1 + $0x2d0] sm:$0xff] }
 0x76d   :  { %6147 = vmatprep.subr.bf16.mxu0 %v6146_v23  ;;  %6179 = vmatprep.subr.bf16.mxu1 %v6178_v24  ;;  %v6198_v13 = vpack.c.bf16 %v4245_v56, %v4242_v55  ;;  %v4243_v23 = vld [vmem:[%s8835_s1 + $0x2e8] sm:$0xff]  ;;  %v4294_v55 = vld [vmem:[%s8837_s2 + $0x2f0] sm:$0xff] }
 0x76e   :  { %v8169_v56 = vpack.c.bf16 %v4294_v55, %v4291_v46 }
 0x770   :  { %6149 = vmatpush1.bf16.msra.mxu0 %v6148_v44  ;;  %6181 = vmatpush3.bf16.msra.mxu1 %v6178_v24  ;;  %v6168_v24 = vpack.c.bf16 %v4243_v23, %v4240_v15  ;;  %v4261_v44 = vld [vmem:[%s8837_s2 + $0x1e8] sm:$0xff]  ;;  %v4256_v15 = vld [vmem:[%s8837_s2 + $0x1c0] sm:$0xff]  ;;  %v4259_v23 = vld [vmem:[%s8837_s2 + $0x1d8] sm:$0xff] }
 0x771   :  { %6151 = vmatprep.subr.bf16.mxu0 %v6150_v7  ;;  %6183 = vmatprep.subr.bf16.mxu1 %v6182_v14  ;;  %v4264_v7 = vld [vmem:[%s8837_s2 + $0x200] sm:$0xff] }
 0x774   :  { %6153 = vmatpush1.bf16.msra.mxu0 %v6152_v1  ;;  %6185 = vmatpush3.bf16.msra.mxu1 %v6182_v14  ;;  %v8069_v14 = vpack.c.bf16 %v4264_v7, %v4261_v44  ;;  %v4266_v1 = vld [vmem:[%s8837_s2 + $0x210] sm:$0xff]  ;;  %v8217_v44 = vpack.c.bf16 %v4277_v53, %v4274_v61  ;;  %v4280_v7 = vld [vmem:[%s8837_s2 + $0x280] sm:$0xff] }
 0x775   :  { %6155 = vmatprep.subr.bf16.mxu0 %v6154_v4  ;;  %6187 = vmatprep.subr.bf16.mxu1 %v6186_v20  ;;  %v4269_v4 = vld [vmem:[%s8837_s2 + $0x228] sm:$0xff]  ;;  %v8227_v28 = vpack.c.bf16 %v4283_v21, %v4280_v7 }
 0x778   :  { %6157 = vmatpush1.bf16.msra.mxu0 %v6156_v31  ;;  %6189 = vmatpush3.bf16.msra.mxu1 %v6186_v20  ;;  %v8095_v20 = vpack.c.bf16 %v4269_v4, %v4266_v1  ;;  %v4279_v31 = vld [vmem:[%s8837_s2 + $0x278] sm:$0xff]  ;;  %v8237_v1 = vpack.c.bf16 %v4289_v25, %v4286_v47  ;;  %v4292_v4 = vld [vmem:[%s8837_s2 + $0x2e0] sm:$0xff] }
 0x779   :  { %6159 = vmatprep.subr.bf16.mxu0 %v6158_v16  ;;  %6191 = vmatprep.subr.bf16.mxu1 %v6190_v22  ;;  %v4282_v16 = vld [vmem:[%s8837_s2 + $0x290] sm:$0xff]  ;;  %v8247_v50 = vpack.c.bf16 %v4295_v32, %v4292_v4 }
 0x77c   :  { %6161 = vmatpush1.bf16.msra.mxu0 %v6160_v57  ;;  %6193 = vmatpush3.bf16.msra.mxu1 %v6190_v22  ;;  %v8123_v22 = vpack.c.bf16 %v4282_v16, %v4279_v31  ;;  %v8143_v57 = vpack.c.bf16 %v4288_v27, %v4285_v19 }
 0x77d   :  { %6163 = vmatprep.subr.bf16.mxu0 %v6162_v33  ;;  %6195 = vmatprep.subr.bf16.mxu1 %v6194_v42  ;;  %v4287_v33 = vld [vmem:[%s8837_s2 + $0x2b8] sm:$0xff] }
 0x77e   :  { %v8155_v34 = vpack.c.bf16 %v4287_v33, %v4284_v62 }
 0x780   :  { %6165 = vmatpush1.bf16.msra.mxu0 %v6164_v10  ;;  %6197 = vmatpush3.bf16.msra.mxu1 %v6194_v42  ;;  %v4250_v42 = vld [vmem:[%s8837_s2 + $0x190] sm:$0xff] }
 0x781   :  { %6167 = vmatprep.subr.bf16.mxu0 %v6166_v52  ;;  %6199 = vmatprep.subr.bf16.mxu1 %v6198_v13  ;;  %v8157_v35 = vpack.c.bf16 %v4253_v18, %v4250_v42  ;;  %v4290_v10 = vld [vmem:[%s8837_s2 + $0x2d0] sm:$0xff]  ;;  %v4293_v52 = vld [vmem:[%s8837_s2 + $0x2e8] sm:$0xff]  ;;  %v6877_v18 = vld [vmem:[%s8839_s4] ss:$0 sm:$0xff] }
 0x784   :  { %6169 = vmatpush1.bf16.msra.mxu0 %v6168_v24  ;;  %6201 = vmatpush3.bf16.msra.mxu1 %v6198_v13  ;;  %v8177_v13 = vpack.c.bf16 %v4293_v52, %v4290_v10  ;;  %v8186_v24 = vpack.c.bf16 %v4259_v23, %v4256_v15 }
 0x785   :  { %6234 = vmatprep.subr.bf16.mxu1 %v6879_v40 }
 0x787   :  { %2247 = vmatmul.mubr.f32.vlgmr.msra.gmra.mrb[16].mxu0 %v7402_v60  ;;  %5335 = vmatmul.mubr.f32.vlgmr.msra.gmra.mrb[24].mxu1 %v7446_v49  ;;  %v4249_v60 = vld [vmem:[%s8837_s2 + $0x188] sm:$0xff] }
 0x788   :  { %5337 = vmatprep.mubr.f32.mxu1 %v7489_v43  ;;  %2252 = vmatprep.mubr.f32.mxu0 %v6878_v3 }
 0x789   :  { %6236 = vmatpush3.bf16.msra.mxu1 %v8157_v35 }
 0x78a   :  { %6237 = vmatprep.subr.bf16.mxu1 %v6879_v40 }
 0x78b   :  { %2253 = vmatmul.mubr.f32.gmra.mrb[18].mxu0 %v7446_v49  ;;  %5338 = vmatmul.mubr.f32.gmra.mrb[26].mxu1 %v7702_v39  ;;  %v4252_v49 = vld [vmem:[%s8837_s2 + $0x1a0] sm:$0xff] }
 0x78c   :  { %5340 = vmatprep.mubr.f32.mxu1 %v7770_v9  ;;  %2258 = vmatprep.mubr.f32.mxu0 %v6878_v3 }
 0x78d   :  { %6239 = vmatpush3.bf16.msra.mxu1 %v8186_v24 }
 0x78e   :  { %6240 = vmatprep.subr.bf16.mxu1 %v6879_v40 }
 0x78f   :  { %2259 = vmatmul.mubr.f32.gmra.mrb[20].mxu0 %v7489_v43  ;;  %5341 = vmatmul.mubr.f32.gmra.mrb[28].mxu1 %v7814_v58  ;;  %v8033_v43 = vpack.c.bf16 %v4252_v49, %v4249_v60  ;;  %v4262_v60 = vld [vmem:[%s8837_s2 + $0x1f0] sm:$0xff]  ;;  %v4265_v49 = vld [vmem:[%s8837_s2 + $0x208] sm:$0xff] }
 0x790   :  { %5343 = vmatprep.mubr.f32.mxu1 %v7886_v26  ;;  %2264 = vmatprep.mubr.f32.mxu0 %v6878_v3 }
 0x791   :  { %6203 = vmatprep.subr.bf16.mxu0 %v8033_v43 }
 0x793   :  { %2265 = vmatmul.mubr.f32.gmra.mrb[22].mxu0 %v7702_v39  ;;  %v4248_v39 = vld [vmem:[%s8837_s2 + $0x180] sm:$0xff] }
 0x794   :  { %2270 = vmatprep.mubr.f32.mxu0 %v6878_v3 }
 0x797   :  { %2271 = vmatmul.mubr.f32.gmra.mrb[24].mxu0 %v7770_v9  ;;  %v4251_v9 = vld [vmem:[%s8837_s2 + $0x198] sm:$0xff] }
 0x798   :  { %2276 = vmatprep.mubr.f32.mxu0 %v6878_v3 }
 0x79b   :  { %2277 = vmatmul.mubr.f32.gmra.mrb[26].mxu0 %v7814_v58  ;;  %v8041_v58 = vpack.c.bf16 %v4251_v9, %v4248_v39  ;;  %v4268_v39 = vld [vmem:[%s8837_s2 + $0x220] sm:$0xff]  ;;  %v8201_v9 = vpack.c.bf16 %v4265_v49, %v4262_v60 }
 0x79c   :  { %2282 = vmatprep.mubr.f32.mxu0 %v6878_v3  ;;  %v8207_v41 = vpack.c.bf16 %v4271_v29, %v4268_v39 }
 0x79d   :  { %6205 = vmatpush1.bf16.msra.mxu0 %v8041_v58  ;;  %6242 = vmatpush3.bf16.msra.mxu1 %v8201_v9 }
 0x79e   :  { %6207 = vmatprep.subr.bf16.mxu0 %v8051_v51  ;;  %6243 = vmatprep.subr.bf16.mxu1 %v6879_v40 }
 0x79f   :  { %2283 = vmatmul.mubr.f32.gmra.mrb[28].mxu0 %v7886_v26 }
 0x7a0   :  { %2288 = vmatprep.mubr.f32.mxu0 %v6878_v3 }
 0x7a1   :  { %6209 = vmatpush1.bf16.msra.mxu0 %v8059_v54  ;;  %6245 = vmatpush3.bf16.msra.mxu1 %v8207_v41 }
 0x7a2   :  { %6211 = vmatprep.subr.bf16.mxu0 %v8069_v14  ;;  %6246 = vmatprep.subr.bf16.mxu1 %v6879_v40 }
 0x7a5   :  { %6213 = vmatpush1.bf16.msra.mxu0 %v8077_v38  ;;  %6248 = vmatpush3.bf16.msra.mxu1 %v8217_v44 }
 0x7a6   :  { %6215 = vmatprep.subr.bf16.mxu0 %v8087_v45  ;;  %6249 = vmatprep.subr.bf16.mxu1 %v6879_v40 }
 0x7a9   :  { %6217 = vmatpush1.bf16.msra.mxu0 %v8095_v20  ;;  %6251 = vmatpush3.bf16.msra.mxu1 %v8227_v28 }
 0x7aa   :  { %6219 = vmatprep.subr.bf16.mxu0 %v8105_v5  ;;  %6252 = vmatprep.subr.bf16.mxu1 %v6879_v40 }
 0x7ad   :  { %6221 = vmatpush1.bf16.msra.mxu0 %v8113_v30  ;;  %6254 = vmatpush3.bf16.msra.mxu1 %v8237_v1 }
 0x7ae   :  { %6223 = vmatprep.subr.bf16.mxu0 %v8123_v22  ;;  %6255 = vmatprep.subr.bf16.mxu1 %v6879_v40 }
 0x7b1   :  { %6225 = vmatpush1.bf16.msra.mxu0 %v8131_v2  ;;  %6257 = vmatpush3.bf16.msra.mxu1 %v8247_v50 }
 0x7b2   :  { %6227 = vmatprep.subr.bf16.mxu0 %v8143_v57  ;;  %6290 = vmatprep.subr.bf16.mxu1 %v6879_v40 }
 0x7b5   :  { %6229 = vmatpush1.bf16.msra.mxu0 %v8155_v34 }
 0x7b6   :  { %6231 = vmatprep.subr.bf16.mxu0 %v8169_v56 }
 0x7b9   :  { %6233 = vmatpush1.bf16.msra.mxu0 %v8177_v13 }
 0x7ba   :  { %6259 = vmatprep.subr.bf16.mxu0 %v8033_v43 }
 0x83a   :  { %v1998_v8 = vpop.f32.mrb[14].mxu0  ;;  %v2069_v12 = vpop.f32.mrb[22].mxu1 }
 0x83b   :  { %v6664_v31 = vadd.f32 %v1998_v8, %v7387_v0  ;;  %v2000_v16 = vpop.f32.mrb[15].mxu0  ;;  %v5301_v17 = vpop.f32.mrb[23].mxu1  ;;  %v2087_v46 = vadd.f32 %v6877_v18, %v2069_v12 }
 0x83c   :  { %v6665_v19 = vadd.f32 %v2000_v16, %v7393_v11 }
 0x83d   :  { %v4196_v48 = vmul.f32 -1.442695, %v6664_v31 }
 0x83e   :  { %v4197_v27 = vmul.f32 -1.442695, %v6665_v19 }
 0x83f   :  { %6787 = vpow2.f32 %v4196_v48 }
 0x840   :  { %6789 = vpow2.f32 %v4197_v27 }
 0x849   :  { %v6788_v62 = vpop.eup %6787 }
 0x84a   :  { %v2077_v33 = vadd.f32 1.0, %v6788_v62  ;;  %v6790_v42 = vpop.eup %6789 }
 0x84b   :  { %v2084_v52 = vadd.f32 1.0, %v6790_v42 }
 0x84c   :  { %6791 = vrcp.f32 %v2077_v33 }
 0x856   :  { %v6792_v55 = vpop.eup %6791 }
 0x857   :  { %v2088_v10 = vmul.f32 %v6792_v55, %v2087_v46 }
 0x859   :  { %v2089_v0 = vadd.f32 %v2088_v10, %v7380_v59 }
 0x85a   :  { %v8258_v15 = vpop.f32.mrb[24].mxu1 }
 0x85b   :  { %6793 = vtanh.f32 %v2089_v0  ;;  %v8260_v11 = vpop.f32.mrb[25].mxu1 }
 0x85c   :  { %6795 = vrcp.f32 %v2084_v52 }
 0x85e   :  { %v8262_v23 = vpop.f32.mrb[26].mxu1 }
 0x85f   :  { %v8264_v60 = vpop.f32.mrb[27].mxu1 }
 0x862   :  { %v8266_v49 = vpop.f32.mrb[28].mxu1 }
 0x863   :  { %v8268_v39 = vpop.f32.mrb[29].mxu1 }
 0x865   :  { %v6794_v29 = vpop.eup %6793 }
 0x866   :  { %v2091_v61 = vsub.f32 %v7886_v26, %v6794_v29  ;;  %v6796_v53 = vpop.eup %6795  ;;  %v4246_v26 = vld [vmem:[%s8838_s3 + $0x3] sm:$0x7] }
 0x867   :  { %v8323_v25 = vrot.slane %v4246_v26, %v90_v63  ;;  %v8328_v17 = vrot.slane %v4246_v26, %v94_v6  ;;  %v8334_v63 = vld [vmem:[%s8839_s4 + $0x1] ss:$0 sm:$0xff]  ;;  %v8338_v33 = vrot.slane %v4246_v26, %v98_v37 }
 0x868   :  { %v2092_v59 = vmul.f32 %v6796_v53, %v2091_v61 }
 0x869   :  { %v2362_v46 = vadd.f32 %v8260_v11, %v8338_v33 }
 0x86a   :  { %v2093_v7 = vadd.f32 %v6794_v29, %v2092_v59 }
 0x86c   :  { %2106 = vst [vmem:[%s8840_s6] sm:$0xff] %v2093_v7  ;;  %2289 = vmatmul.mubr.f32.gmra.mrb[30].mxu0 %v2093_v7  ;;  %5344 = vmatmul.mubr.f32.gmra.mrb[30].mxu1 %v2093_v7 }
 0x86d   :  { %2544 = vmatprep.mubr.f32.mxu0 %v6878_v3  ;;  %5378 = vmatprep.mubr.msk.f32.mxu1 %vm6880_vm0, %v6878_v3 }
 0x870   :  { %2545 = vmatmul.mubr.f32.vlgmr.msra.gmra.mrb[16].mxu0 %v6878_v3  ;;  %5379 = vmatmul.mubr.f32.vlgmr.msra.gmra.mrb[32].mxu1 %v6878_v3 }
 0x871   :  { %6261 = vmatpush1.bf16.msra.mxu0 %v8041_v58  ;;  %6292 = vmatpush3.bf16.msra.mxu1 %v8157_v35 }
 0x872   :  { %6263 = vmatprep.subr.bf16.mxu0 %v8051_v51  ;;  %6293 = vmatprep.subr.bf16.mxu1 %v6879_v40 }
 0x873   :  { %2764 = vmatprep.mubr.f32.mxu0 %v6878_v3  ;;  %5413 = vmatprep.mubr.msk.f32.mxu1 %vm6880_vm0, %v6878_v3 }
 0x875   :  { %6265 = vmatpush1.bf16.msra.mxu0 %v8059_v54  ;;  %6295 = vmatpush3.bf16.msra.mxu1 %v8186_v24 }
 0x876   :  { %6267 = vmatprep.subr.bf16.mxu0 %v8069_v14  ;;  %6296 = vmatprep.subr.bf16.mxu1 %v6879_v40 }
 0x879   :  { %6269 = vmatpush1.bf16.msra.mxu0 %v8077_v38  ;;  %6298 = vmatpush3.bf16.msra.mxu1 %v8201_v9 }
 0x87a   :  { %6271 = vmatprep.subr.bf16.mxu0 %v8087_v45  ;;  %6299 = vmatprep.subr.bf16.mxu1 %v6879_v40 }
 0x87d   :  { %6273 = vmatpush1.bf16.msra.mxu0 %v8095_v20  ;;  %6301 = vmatpush3.bf16.msra.mxu1 %v8207_v41 }
 0x87e   :  { %6275 = vmatprep.subr.bf16.mxu0 %v8105_v5  ;;  %6302 = vmatprep.subr.bf16.mxu1 %v6879_v40 }
 0x881   :  { %6277 = vmatpush1.bf16.msra.mxu0 %v8113_v30  ;;  %6304 = vmatpush3.bf16.msra.mxu1 %v8217_v44 }
 0x882   :  { %6279 = vmatprep.subr.bf16.mxu0 %v8123_v22  ;;  %6305 = vmatprep.subr.bf16.mxu1 %v6879_v40 }
 0x885   :  { %6281 = vmatpush1.bf16.msra.mxu0 %v8131_v2  ;;  %6307 = vmatpush3.bf16.msra.mxu1 %v8227_v28 }
 0x886   :  { %6283 = vmatprep.subr.bf16.mxu0 %v8143_v57  ;;  %6308 = vmatprep.subr.bf16.mxu1 %v6879_v40 }
 0x889   :  { %6285 = vmatpush1.bf16.msra.mxu0 %v8155_v34  ;;  %6310 = vmatpush3.bf16.msra.mxu1 %v8237_v1 }
 0x88a   :  { %6287 = vmatprep.subr.bf16.mxu0 %v8169_v56  ;;  %6311 = vmatprep.subr.bf16.mxu1 %v6879_v40 }
 0x88d   :  { %6289 = vmatpush1.bf16.msra.mxu0 %v8177_v13  ;;  %6313 = vmatpush3.bf16.msra.mxu1 %v8247_v50 }
 0x88e   :  { %6315 = vmatprep.subr.bf16.mxu0 %v8033_v43  ;;  %6346 = vmatprep.subr.bf16.mxu1 %v6879_v40 }
 0x93f   :  { %v8317_v21 = vpop.f32.mrb[30].mxu1 }
 0x940   :  { %v8319_v47 = vpop.f32.mrb[31].mxu1 }
 0x943   :  { %v2546_v4 = vpop.f32.mrb[16].mxu0  ;;  %v2617_v32 = vpop.f32.mrb[32].mxu1 }
 0x944   :  { %v6666_v8 = vadd.f32 %v2546_v4, %v8323_v25  ;;  %v2548_v12 = vpop.f32.mrb[17].mxu0  ;;  %v5380_v31 = vpop.f32.mrb[33].mxu1  ;;  %v2641_v42 = vadd.f32 %v8334_v63, %v2617_v32 }
 0x945   :  { %v6667_v48 = vadd.f32 %v2548_v12, %v8328_v17 }
 0x946   :  { %v4296_v16 = vmul.f32 -1.442695, %v6666_v8 }
 0x947   :  { %v4297_v19 = vmul.f32 -1.442695, %v6667_v48 }
 0x948   :  { %6797 = vpow2.f32 %v4296_v16 }
 0x949   :  { %6799 = vpow2.f32 %v4297_v19  ;;  %v2367_v19 = vadd.f32 %v8258_v15, %v8338_v33 }
 0x952   :  { %v6798_v27 = vpop.eup %6797 }
 0x953   :  { %v2625_v62 = vadd.f32 1.0, %v6798_v27  ;;  %v6800_v6 = vpop.eup %6799 }
 0x954   :  { %v2632_v10 = vadd.f32 1.0, %v6800_v6 }
 0x955   :  { %6801 = vrcp.f32 %v2625_v62 }
 0x95f   :  { %v6802_v18 = vpop.eup %6801 }
 0x960   :  { %v2642_v55 = vmul.f32 %v6802_v18, %v2641_v42 }
 0x962   :  { %v2643_v0 = vadd.f32 %v2642_v55, %v2362_v46 }
 0x964   :  { %6803 = vtanh.f32 %v2643_v0 }
 0x965   :  { %6805 = vrcp.f32 %v2632_v10 }
 0x96e   :  { %v6804_v52 = vpop.eup %6803 }
 0x96f   :  { %v2645_v29 = vsub.f32 0.0, %v6804_v52  ;;  %v6806_v61 = vpop.eup %6805 }
 0x971   :  { %v2646_v53 = vmul.f32 %v6806_v61, %v2645_v29 }
 0x973   :  { %v8343_v59 = vadd.f32 %v6804_v52, %v2646_v53  ;;  %v4462_v53 = vld [vmem:[%s8837_s2 + $0x1d0] sm:$0xff] }
 0x975   :  { %2648 = vst [vmem:[%s8841_s5] sm:$0xff] %v8343_v59  ;;  %2765 = vmatmul.mubr.f32.vlgmr.msra.gmra.mrb[18].mxu0 %v8343_v59  ;;  %5414 = vmatmul.mubr.f32.vlgmr.msra.gmra.mrb[34].mxu1 %v8343_v59 }
 0x976   :  { %6317 = vmatpush1.bf16.msra.mxu0 %v8041_v58  ;;  %6348 = vmatpush3.bf16.msra.mxu1 %v8157_v35 }
 0x977   :  { %6319 = vmatprep.subr.bf16.mxu0 %v8051_v51  ;;  %6349 = vmatprep.subr.bf16.mxu1 %v6879_v40 }
 0x978   :  { %2979 = vmatprep.mubr.f32.mxu0 %v6878_v3  ;;  %5448 = vmatprep.mubr.msk.f32.mxu1 %vm6880_vm0, %v6878_v3 }
 0x97a   :  { %6321 = vmatpush1.bf16.msra.mxu0 %v8059_v54  ;;  %6351 = vmatpush3.bf16.msra.mxu1 %v8186_v24 }
 0x97b   :  { %6323 = vmatprep.subr.bf16.mxu0 %v8069_v14  ;;  %6352 = vmatprep.subr.bf16.mxu1 %v6879_v40 }
 0x97e   :  { %6325 = vmatpush1.bf16.msra.mxu0 %v8077_v38  ;;  %6354 = vmatpush3.bf16.msra.mxu1 %v8201_v9 }
 0x97f   :  { %6327 = vmatprep.subr.bf16.mxu0 %v8087_v45  ;;  %6355 = vmatprep.subr.bf16.mxu1 %v6879_v40 }
 0x982   :  { %6329 = vmatpush1.bf16.msra.mxu0 %v8095_v20  ;;  %6357 = vmatpush3.bf16.msra.mxu1 %v8207_v41 }
 0x983   :  { %6331 = vmatprep.subr.bf16.mxu0 %v8105_v5  ;;  %6358 = vmatprep.subr.bf16.mxu1 %v6879_v40 }
 0x986   :  { %6333 = vmatpush1.bf16.msra.mxu0 %v8113_v30  ;;  %6360 = vmatpush3.bf16.msra.mxu1 %v8217_v44 }
 0x987   :  { %6335 = vmatprep.subr.bf16.mxu0 %v8123_v22  ;;  %6361 = vmatprep.subr.bf16.mxu1 %v6879_v40 }
 0x98a   :  { %6337 = vmatpush1.bf16.msra.mxu0 %v8131_v2  ;;  %6363 = vmatpush3.bf16.msra.mxu1 %v8227_v28 }
 0x98b   :  { %6339 = vmatprep.subr.bf16.mxu0 %v8143_v57  ;;  %6364 = vmatprep.subr.bf16.mxu1 %v6879_v40 }
 0x98e   :  { %6341 = vmatpush1.bf16.msra.mxu0 %v8155_v34  ;;  %6366 = vmatpush3.bf16.msra.mxu1 %v8237_v1 }
 0x98f   :  { %6343 = vmatprep.subr.bf16.mxu0 %v8169_v56  ;;  %6367 = vmatprep.subr.bf16.mxu1 %v6879_v40 }
 0x992   :  { %6345 = vmatpush1.bf16.msra.mxu0 %v8177_v13  ;;  %6369 = vmatpush3.bf16.msra.mxu1 %v8247_v50 }
 0x993   :  { %6371 = vmatprep.subr.bf16.mxu0 %v8033_v43  ;;  %6402 = vmatprep.subr.bf16.mxu1 %v6879_v40 }
 0xa48   :  { %v2766_v36 = vpop.f32.mrb[18].mxu0  ;;  %v2837_v37 = vpop.f32.mrb[34].mxu1 }
 0xa49   :  { %v6668_v11 = vadd.f32 %v2766_v36, %v8323_v25  ;;  %v2768_v7 = vpop.f32.mrb[19].mxu0  ;;  %v5415_v26 = vpop.f32.mrb[35].mxu1  ;;  %v2855_v43 = vadd.f32 %v8334_v63, %v2837_v37  ;;  %v4458_v36 = vld [vmem:[%s8837_s2 + $0x1b0] sm:$0xff]  ;;  %v4461_v37 = vld [vmem:[%s8837_s2 + $0x1c8] sm:$0xff] }
 0xa4a   :  { %v6669_v32 = vadd.f32 %v2768_v7, %v8328_v17  ;;  %v4465_v7 = vld [vmem:[%s8837_s2 + $0x1e8] sm:$0xff]  ;;  %v4468_v26 = vld [vmem:[%s8837_s2 + $0x200] sm:$0xff] }
 0xa4b   :  { %v4347_v4 = vmul.f32 -1.442695, %v6668_v11  ;;  %v8495_v11 = vpack.c.bf16 %v4461_v37, %v4458_v36 }
 0xa4c   :  { %v4348_v8 = vmul.f32 -1.442695, %v6669_v32  ;;  %v4464_v32 = vld [vmem:[%s8837_s2 + $0x1e0] sm:$0xff] }
 0xa4d   :  { %6807 = vpow2.f32 %v4347_v4  ;;  %v8505_v4 = vpack.c.bf16 %v4468_v26, %v4465_v7 }
 0xa4e   :  { %6809 = vpow2.f32 %v4348_v8  ;;  %v4467_v8 = vld [vmem:[%s8837_s2 + $0x1f8] sm:$0xff] }
 0xa57   :  { %v6808_v12 = vpop.eup %6807 }
 0xa58   :  { %v2845_v31 = vadd.f32 1.0, %v6808_v12  ;;  %v6810_v16 = vpop.eup %6809  ;;  %v8513_v12 = vpack.c.bf16 %v4467_v8, %v4464_v32 }
 0xa59   :  { %v2852_v42 = vadd.f32 1.0, %v6810_v16  ;;  %v4474_v16 = vld [vmem:[%s8837_s2 + $0x230] sm:$0xff] }
 0xa5a   :  { %6811 = vrcp.f32 %v2845_v31  ;;  %v4471_v31 = vld [vmem:[%s8837_s2 + $0x218] sm:$0xff] }
 0xa64   :  { %v6812_v48 = vpop.eup %6811 }
 0xa65   :  { %v2856_v27 = vmul.f32 %v6812_v48, %v2855_v43  ;;  %v8523_v43 = vpack.c.bf16 %v4474_v16, %v4471_v31  ;;  %v4470_v48 = vld [vmem:[%s8837_s2 + $0x210] sm:$0xff] }
 0xa67   :  { %v2857_v62 = vadd.f32 %v2856_v27, %v2367_v19  ;;  %v4473_v19 = vld [vmem:[%s8837_s2 + $0x228] sm:$0xff] }
 0xa68   :  { %v8531_v27 = vpack.c.bf16 %v4473_v19, %v4470_v48  ;;  %v2377_v19 = vadd.f32 %v8262_v23, %v8338_v33  ;;  %v4505_v23 = vld [vmem:[%s8837_s2 + $0x190] sm:$0xff] }
 0xa69   :  { %6813 = vtanh.f32 %v2857_v62  ;;  %v4477_v62 = vld [vmem:[%s8837_s2 + $0x248] sm:$0xff] }
 0xa6a   :  { %6815 = vrcp.f32 %v2852_v42  ;;  %v4480_v42 = vld [vmem:[%s8837_s2 + $0x260] sm:$0xff] }
 0xa73   :  { %v6814_v6 = vpop.eup %6813 }
 0xa74   :  { %v2859_v18 = vsub.f32 %v8343_v59, %v6814_v6  ;;  %v6816_v46 = vpop.eup %6815 }
 0xa76   :  { %v2860_v55 = vmul.f32 %v6816_v46, %v2859_v18  ;;  %v4476_v18 = vld [vmem:[%s8837_s2 + $0x240] sm:$0xff]  ;;  %v4479_v46 = vld [vmem:[%s8837_s2 + $0x258] sm:$0xff] }
 0xa78   :  { %v8392_v10 = vadd.f32 %v6814_v6, %v2860_v55  ;;  %v8541_v6 = vpack.c.bf16 %v4480_v42, %v4477_v62  ;;  %v4483_v55 = vld [vmem:[%s8837_s2 + $0x278] sm:$0xff] }
 0xa7a   :  { %4349 = vst [vmem:[%s8841_s5 + $0x8] sm:$0xff] %v8392_v10  ;;  %2980 = vmatmul.mubr.f32.vlgmr.msra.gmra.mrb[20].mxu0 %v8392_v10  ;;  %5449 = vmatmul.mubr.f32.vlgmr.msra.gmra.mrb[36].mxu1 %v8392_v10 }
 0xa7b   :  { %6373 = vmatpush1.bf16.msra.mxu0 %v8041_v58  ;;  %6404 = vmatpush3.bf16.msra.mxu1 %v8157_v35 }
 0xa7c   :  { %6375 = vmatprep.subr.bf16.mxu0 %v8051_v51  ;;  %6405 = vmatprep.subr.bf16.mxu1 %v6879_v40 }
 0xa7d   :  { %3194 = vmatprep.mubr.f32.mxu0 %v6878_v3  ;;  %5483 = vmatprep.mubr.msk.f32.mxu1 %vm6880_vm0, %v6878_v3 }
 0xa7f   :  { %6377 = vmatpush1.bf16.msra.mxu0 %v8059_v54  ;;  %6407 = vmatpush3.bf16.msra.mxu1 %v8186_v24 }
 0xa80   :  { %6379 = vmatprep.subr.bf16.mxu0 %v8069_v14  ;;  %6408 = vmatprep.subr.bf16.mxu1 %v6879_v40 }
 0xa83   :  { %6381 = vmatpush1.bf16.msra.mxu0 %v8077_v38  ;;  %6410 = vmatpush3.bf16.msra.mxu1 %v8201_v9 }
 0xa84   :  { %6383 = vmatprep.subr.bf16.mxu0 %v8087_v45  ;;  %6411 = vmatprep.subr.bf16.mxu1 %v6879_v40 }
 0xa87   :  { %6385 = vmatpush1.bf16.msra.mxu0 %v8095_v20  ;;  %6413 = vmatpush3.bf16.msra.mxu1 %v8207_v41 }
 0xa88   :  { %6387 = vmatprep.subr.bf16.mxu0 %v8105_v5  ;;  %6414 = vmatprep.subr.bf16.mxu1 %v6879_v40 }
 0xa8b   :  { %6389 = vmatpush1.bf16.msra.mxu0 %v8113_v30  ;;  %6416 = vmatpush3.bf16.msra.mxu1 %v8217_v44 }
 0xa8c   :  { %6391 = vmatprep.subr.bf16.mxu0 %v8123_v22  ;;  %6417 = vmatprep.subr.bf16.mxu1 %v6879_v40 }
 0xa8f   :  { %6393 = vmatpush1.bf16.msra.mxu0 %v8131_v2  ;;  %6419 = vmatpush3.bf16.msra.mxu1 %v8227_v28 }
 0xa90   :  { %6395 = vmatprep.subr.bf16.mxu0 %v8143_v57  ;;  %6420 = vmatprep.subr.bf16.mxu1 %v6879_v40 }
 0xa93   :  { %6397 = vmatpush1.bf16.msra.mxu0 %v8155_v34  ;;  %6422 = vmatpush3.bf16.msra.mxu1 %v8237_v1 }
 0xa94   :  { %6399 = vmatprep.subr.bf16.mxu0 %v8169_v56  ;;  %6423 = vmatprep.subr.bf16.mxu1 %v6879_v40  ;;  %v2372_v56 = vadd.f32 %v8264_v60, %v8338_v33  ;;  %v4459_v60 = vld [vmem:[%s8837_s2 + $0x1b8] sm:$0xff] }
 0xa95   :  { %v8487_v59 = vpack.c.bf16 %v4462_v53, %v4459_v60 }
 0xa97   :  { %6401 = vmatpush1.bf16.msra.mxu0 %v8177_v13  ;;  %6425 = vmatpush3.bf16.msra.mxu1 %v8247_v50 }
 0xa98   :  { %6458 = vmatprep.subr.bf16.mxu1 %v6879_v40 }
 0xb4d   :  { %v2981_v58 = vpop.f32.mrb[20].mxu0  ;;  %v3052_v51 = vpop.f32.mrb[36].mxu1 }
 0xb4e   :  { %v6670_v54 = vadd.f32 %v2981_v58, %v8323_v25  ;;  %v2983_v14 = vpop.f32.mrb[21].mxu0  ;;  %v5450_v38 = vpop.f32.mrb[37].mxu1  ;;  %v3070_v57 = vadd.f32 %v8334_v63, %v3052_v51  ;;  %v4486_v58 = vld [vmem:[%s8837_s2 + $0x290] sm:$0xff] }
 0xb4f   :  { %v6671_v20 = vadd.f32 %v2983_v14, %v8328_v17  ;;  %v4482_v51 = vld [vmem:[%s8837_s2 + $0x270] sm:$0xff]  ;;  %v8564_v14 = vpack.c.bf16 %v4486_v58, %v4483_v55  ;;  %v4489_v38 = vld [vmem:[%s8837_s2 + $0x2a8] sm:$0xff] }
 0xb50   :  { %v4398_v45 = vmul.f32 -1.442695, %v6670_v54  ;;  %v4485_v54 = vld [vmem:[%s8837_s2 + $0x288] sm:$0xff] }
 0xb51   :  { %v4399_v5 = vmul.f32 -1.442695, %v6671_v20  ;;  %v8573_v20 = vpack.c.bf16 %v4485_v54, %v4482_v51 }
 0xb52   :  { %6817 = vpow2.f32 %v4398_v45  ;;  %v4492_v45 = vld [vmem:[%s8837_s2 + $0x2c0] sm:$0xff] }
 0xb53   :  { %6819 = vpow2.f32 %v4399_v5  ;;  %v4490_v5 = vld [vmem:[%s8837_s2 + $0x2b0] sm:$0xff] }
 0xb5c   :  { %v6818_v30 = vpop.eup %6817 }
 0xb5d   :  { %v3060_v22 = vadd.f32 1.0, %v6818_v30  ;;  %v6820_v2 = vpop.eup %6819  ;;  %v4493_v30 = vld [vmem:[%s8837_s2 + $0x2c8] sm:$0xff] }
 0xb5e   :  { %v3067_v50 = vadd.f32 1.0, %v6820_v2  ;;  %v4488_v2 = vld [vmem:[%s8837_s2 + $0x2a0] sm:$0xff] }
 0xb5f   :  { %6821 = vrcp.f32 %v3060_v22  ;;  %v8582_v22 = vpack.c.bf16 %v4492_v45, %v4489_v38  ;;  %v4511_v45 = vld [vmem:[%s8837_s2 + $0x1c0] sm:$0xff] }
 0xb69   :  { %v6822_v34 = vpop.eup %6821 }
 0xb6a   :  { %v3071_v13 = vmul.f32 %v6822_v34, %v3070_v57  ;;  %v4491_v57 = vld [vmem:[%s8837_s2 + $0x2b8] sm:$0xff]  ;;  %v8590_v34 = vpack.c.bf16 %v4493_v30, %v4490_v5 }
 0xb6b   :  { %v4514_v5 = vld [vmem:[%s8837_s2 + $0x1d8] sm:$0xff] }
 0xb6c   :  { %v3072_v1 = vadd.f32 %v3071_v13, %v2372_v56  ;;  %v4495_v56 = vld [vmem:[%s8837_s2 + $0x2d8] sm:$0xff]  ;;  %v4498_v13 = vld [vmem:[%s8837_s2 + $0x2f0] sm:$0xff]  ;;  %v8677_v30 = vpack.c.bf16 %v4514_v5, %v4511_v45 }
 0xb6e   :  { %6823 = vtanh.f32 %v3072_v1  ;;  %v4496_v1 = vld [vmem:[%s8837_s2 + $0x2e0] sm:$0xff] }
 0xb6f   :  { %6825 = vrcp.f32 %v3067_v50  ;;  %v4499_v50 = vld [vmem:[%s8837_s2 + $0x2f8] sm:$0xff] }
 0xb78   :  { %v6824_v15 = vpop.eup %6823 }
 0xb79   :  { %v3074_v0 = vsub.f32 %v8392_v10, %v6824_v15  ;;  %v6826_v52 = vpop.eup %6825  ;;  %v8552_v10 = vpack.c.bf16 %v4479_v46, %v4476_v18 }
 0xb7b   :  { %v3075_v29 = vmul.f32 %v6826_v52, %v3074_v0  ;;  %v8608_v0 = vpack.c.bf16 %v4491_v57, %v4488_v2  ;;  %v8612_v52 = vpack.c.bf16 %v4498_v13, %v4495_v56  ;;  %v4517_v2 = vld [vmem:[%s8837_s2 + $0x1f0] sm:$0xff]  ;;  %v4520_v57 = vld [vmem:[%s8837_s2 + $0x208] sm:$0xff]  ;;  %v4523_v13 = vld [vmem:[%s8837_s2 + $0x220] sm:$0xff] }
 0xb7c   :  { %v8687_v56 = vpack.c.bf16 %v4520_v57, %v4517_v2 }
 0xb7d   :  { %v8440_v61 = vadd.f32 %v6824_v15, %v3075_v29  ;;  %v8605_v15 = vpack.c.bf16 %v4499_v50, %v4496_v1  ;;  %v4494_v29 = vld [vmem:[%s8837_s2 + $0x2d0] sm:$0xff]  ;;  %v4526_v1 = vld [vmem:[%s8837_s2 + $0x238] sm:$0xff] }
 0xb7e   :  { %v8697_v50 = vpack.c.bf16 %v4526_v1, %v4523_v13 }
 0xb7f   :  { %4400 = vst [vmem:[%s8841_s5 + $0x10] sm:$0xff] %v8440_v61  ;;  %3195 = vmatmul.mubr.f32.vlgmr.msra.gmra.mrb[22].mxu0 %v8440_v61  ;;  %5484 = vmatmul.mubr.f32.vlgmr.msra.gmra.mrb[38].mxu1 %v8440_v61 }
 0xb80   :  { %6460 = vmatpush3.bf16.msra.mxu1 %v8157_v35  ;;  %3409 = vmatprep.mubr.f32.mxu0 %v6878_v3  ;;  %v4453_v35 = vld [vmem:[%s8837_s2 + $0x188] sm:$0xff] }
 0xb81   :  { %6461 = vmatprep.subr.bf16.mxu1 %v6879_v40  ;;  %5518 = vmatprep.mubr.msk.f32.mxu1 %vm6880_vm0, %v6878_v3 }
 0xb84   :  { %6463 = vmatpush3.bf16.msra.mxu1 %v8186_v24  ;;  %v4456_v24 = vld [vmem:[%s8837_s2 + $0x1a0] sm:$0xff] }
 0xb85   :  { %6464 = vmatprep.subr.bf16.mxu1 %v6879_v40 }
 0xb88   :  { %6466 = vmatpush3.bf16.msra.mxu1 %v8201_v9  ;;  %v8469_v9 = vpack.c.bf16 %v4456_v24, %v4453_v35  ;;  %v4497_v35 = vld [vmem:[%s8837_s2 + $0x2e8] sm:$0xff] }
 0xb89   :  { %6467 = vmatprep.subr.bf16.mxu1 %v6879_v40  ;;  %v8622_v24 = vpack.c.bf16 %v4497_v35, %v4494_v29  ;;  %v4529_v29 = vld [vmem:[%s8837_s2 + $0x250] sm:$0xff]  ;;  %v4532_v35 = vld [vmem:[%s8837_s2 + $0x268] sm:$0xff] }
 0xb8a   :  { %6427 = vmatprep.subr.bf16.mxu0 %v8469_v9 }
 0xb8c   :  { %6469 = vmatpush3.bf16.msra.mxu1 %v8207_v41  ;;  %v4452_v41 = vld [vmem:[%s8837_s2 + $0x180] sm:$0xff] }
 0xb8d   :  { %6470 = vmatprep.subr.bf16.mxu1 %v6879_v40 }
 0xb90   :  { %6472 = vmatpush3.bf16.msra.mxu1 %v8217_v44  ;;  %v4455_v44 = vld [vmem:[%s8837_s2 + $0x198] sm:$0xff] }
 0xb91   :  { %6473 = vmatprep.subr.bf16.mxu1 %v6879_v40 }
 0xb94   :  { %6475 = vmatpush3.bf16.msra.mxu1 %v8227_v28  ;;  %v8477_v28 = vpack.c.bf16 %v4455_v44, %v4452_v41 }
 0xb95   :  { %6476 = vmatprep.subr.bf16.mxu1 %v6879_v40 }
 0xb96   :  { %6429 = vmatpush1.bf16.msra.mxu0 %v8477_v28 }
 0xb97   :  { %6431 = vmatprep.subr.bf16.mxu0 %v8487_v59 }
 0xb98   :  { %6478 = vmatpush3.bf16.msra.mxu1 %v8590_v34 }
 0xb99   :  { %6479 = vmatprep.subr.bf16.mxu1 %v6879_v40 }
 0xb9a   :  { %6433 = vmatpush1.bf16.msra.mxu0 %v8495_v11 }
 0xb9b   :  { %6435 = vmatprep.subr.bf16.mxu0 %v8505_v4 }
 0xb9c   :  { %6481 = vmatpush3.bf16.msra.mxu1 %v8605_v15 }
 0xb9d   :  { %6514 = vmatprep.subr.bf16.mxu1 %v6879_v40 }
 0xb9e   :  { %6437 = vmatpush1.bf16.msra.mxu0 %v8513_v12 }
 0xb9f   :  { %6439 = vmatprep.subr.bf16.mxu0 %v8523_v43 }
 0xba2   :  { %6441 = vmatpush1.bf16.msra.mxu0 %v8531_v27 }
 0xba3   :  { %6443 = vmatprep.subr.bf16.mxu0 %v8541_v6 }
 0xba6   :  { %6445 = vmatpush1.bf16.msra.mxu0 %v8552_v10 }
 0xba7   :  { %6447 = vmatprep.subr.bf16.mxu0 %v8564_v14 }
 0xbaa   :  { %6449 = vmatpush1.bf16.msra.mxu0 %v8573_v20 }
 0xbab   :  { %6451 = vmatprep.subr.bf16.mxu0 %v8582_v22 }
 0xbae   :  { %6453 = vmatpush1.bf16.msra.mxu0 %v8608_v0 }
 0xbaf   :  { %6455 = vmatprep.subr.bf16.mxu0 %v8612_v52 }
 0xbb2   :  { %6457 = vmatpush1.bf16.msra.mxu0 %v8622_v24 }
 0xbb3   :  { %6483 = vmatprep.subr.bf16.mxu0 %v8469_v9 }
 0xc52   :  { %v3196_v41 = vpop.f32.mrb[22].mxu0  ;;  %v3267_v44 = vpop.f32.mrb[38].mxu1 }
 0xc53   :  { %v6672_v60 = vadd.f32 %v3196_v41, %v8323_v25  ;;  %v3198_v53 = vpop.f32.mrb[23].mxu0  ;;  %v5485_v36 = vpop.f32.mrb[39].mxu1  ;;  %v3285_v16 = vadd.f32 %v8334_v63, %v3267_v44  ;;  %v4535_v41 = vld [vmem:[%s8837_s2 + $0x280] sm:$0xff]  ;;  %v8710_v44 = vpack.c.bf16 %v4532_v35, %v4529_v29 }
 0xc54   :  { %v6673_v7 = vadd.f32 %v3198_v53, %v8328_v17 }
 0xc55   :  { %v4449_v37 = vmul.f32 -1.442695, %v6672_v60  ;;  %v4538_v60 = vld [vmem:[%s8837_s2 + $0x298] sm:$0xff] }
 0xc56   :  { %v4450_v26 = vmul.f32 -1.442695, %v6673_v7  ;;  %v8716_v53 = vpack.c.bf16 %v4538_v60, %v4535_v41 }
 0xc57   :  { %6827 = vpow2.f32 %v4449_v37 }
 0xc58   :  { %6829 = vpow2.f32 %v4450_v26 }
 0xc61   :  { %v6828_v32 = vpop.eup %6827 }
 0xc62   :  { %v3275_v8 = vadd.f32 1.0, %v6828_v32  ;;  %v6830_v31 = vpop.eup %6829 }
 0xc63   :  { %v3282_v18 = vadd.f32 1.0, %v6830_v31 }
 0xc64   :  { %6831 = vrcp.f32 %v3275_v8 }
 0xc6e   :  { %v6832_v48 = vpop.eup %6831 }
 0xc6f   :  { %v3286_v62 = vmul.f32 %v6832_v48, %v3285_v16 }
 0xc71   :  { %v3287_v42 = vadd.f32 %v3286_v62, %v2377_v19 }
 0xc73   :  { %6833 = vtanh.f32 %v3287_v42 }
 0xc74   :  { %6835 = vrcp.f32 %v3282_v18 }
 0xc7d   :  { %v6834_v46 = vpop.eup %6833 }
 0xc7e   :  { %v3289_v55 = vsub.f32 %v8440_v61, %v6834_v46  ;;  %v6836_v58 = vpop.eup %6835  ;;  %v4508_v61 = vld [vmem:[%s8837_s2 + $0x1a8] sm:$0xff] }
 0xc7f   :  { %v8667_v38 = vpack.c.bf16 %v4508_v61, %v4505_v23 }
 0xc80   :  { %v3290_v51 = vmul.f32 %v6836_v58, %v3289_v55 }
 0xc82   :  { %v8634_v54 = vadd.f32 %v6834_v46, %v3290_v51  ;;  %v2382_v46 = vadd.f32 %v8268_v39, %v8338_v33 }
 0xc84   :  { %4451 = vst [vmem:[%s8841_s5 + $0x18] sm:$0xff] %v8634_v54  ;;  %3410 = vmatmul.mubr.f32.vlgmr.msra.gmra.mrb[24].mxu0 %v8634_v54  ;;  %5519 = vmatmul.mubr.f32.vlgmr.msra.gmra.mrb[40].mxu1 %v8634_v54 }
 0xc85   :  { %6485 = vmatpush1.bf16.msra.mxu0 %v8477_v28  ;;  %3624 = vmatprep.mubr.f32.mxu0 %v6878_v3 }
 0xc86   :  { %6487 = vmatprep.subr.bf16.mxu0 %v8487_v59  ;;  %5553 = vmatprep.mubr.msk.f32.mxu1 %vm6880_vm0, %v6878_v3 }
 0xc87   :  { %6516 = vmatpush3.bf16.msra.mxu1 %v8667_v38 }
 0xc88   :  { %6517 = vmatprep.subr.bf16.mxu1 %v6879_v40 }
 0xc89   :  { %6489 = vmatpush1.bf16.msra.mxu0 %v8495_v11 }
 0xc8a   :  { %6491 = vmatprep.subr.bf16.mxu0 %v8505_v4 }
 0xc8b   :  { %6519 = vmatpush3.bf16.msra.mxu1 %v8677_v30 }
 0xc8c   :  { %6520 = vmatprep.subr.bf16.mxu1 %v6879_v40 }
 0xc8d   :  { %6493 = vmatpush1.bf16.msra.mxu0 %v8513_v12 }
 0xc8e   :  { %6495 = vmatprep.subr.bf16.mxu0 %v8523_v43 }
 0xc8f   :  { %6522 = vmatpush3.bf16.msra.mxu1 %v8687_v56 }
 0xc90   :  { %6523 = vmatprep.subr.bf16.mxu1 %v6879_v40 }
 0xc91   :  { %6497 = vmatpush1.bf16.msra.mxu0 %v8531_v27 }
 0xc92   :  { %6499 = vmatprep.subr.bf16.mxu0 %v8541_v6 }
 0xc93   :  { %6525 = vmatpush3.bf16.msra.mxu1 %v8697_v50 }
 0xc94   :  { %6526 = vmatprep.subr.bf16.mxu1 %v6879_v40 }
 0xc95   :  { %6501 = vmatpush1.bf16.msra.mxu0 %v8552_v10 }
 0xc96   :  { %6503 = vmatprep.subr.bf16.mxu0 %v8564_v14 }
 0xc97   :  { %6528 = vmatpush3.bf16.msra.mxu1 %v8710_v44 }
 0xc98   :  { %6529 = vmatprep.subr.bf16.mxu1 %v6879_v40 }
 0xc99   :  { %6505 = vmatpush1.bf16.msra.mxu0 %v8573_v20 }
 0xc9a   :  { %6507 = vmatprep.subr.bf16.mxu0 %v8582_v22 }
 0xc9b   :  { %6531 = vmatpush3.bf16.msra.mxu1 %v8716_v53 }
 0xc9c   :  { %6532 = vmatprep.subr.bf16.mxu1 %v6879_v40 }
 0xc9d   :  { %6509 = vmatpush1.bf16.msra.mxu0 %v8608_v0 }
 0xc9e   :  { %6511 = vmatprep.subr.bf16.mxu0 %v8612_v52 }
 0xc9f   :  { %6534 = vmatpush3.bf16.msra.mxu1 %v8590_v34 }
 0xca0   :  { %6535 = vmatprep.subr.bf16.mxu1 %v6879_v40 }
 0xca1   :  { %6513 = vmatpush1.bf16.msra.mxu0 %v8622_v24 }
 0xca2   :  { %6539 = vmatprep.subr.bf16.mxu0 %v8469_v9 }
 0xca3   :  { %6537 = vmatpush3.bf16.msra.mxu1 %v8605_v15 }
 0xca4   :  { %6570 = vmatprep.subr.bf16.mxu1 %v6879_v40 }
 0xd57   :  { %v3411_v36 = vpop.f32.mrb[24].mxu0  ;;  %v3482_v37 = vpop.f32.mrb[40].mxu1 }
 0xd58   :  { %v6674_v7 = vadd.f32 %v3411_v36, %v8323_v25  ;;  %v3413_v26 = vpop.f32.mrb[25].mxu0  ;;  %v5520_v32 = vpop.f32.mrb[41].mxu1  ;;  %v3500_v42 = vadd.f32 %v8334_v63, %v3482_v37 }
 0xd59   :  { %v6675_v31 = vadd.f32 %v3413_v26, %v8328_v17  ;;  %v2387_v26 = vadd.f32 %v8266_v49, %v8338_v33 }
 0xd5a   :  { %v4500_v8 = vmul.f32 -1.442695, %v6674_v7 }
 0xd5b   :  { %v4501_v16 = vmul.f32 -1.442695, %v6675_v31 }
 0xd5c   :  { %6837 = vpow2.f32 %v4500_v8 }
 0xd5d   :  { %6839 = vpow2.f32 %v4501_v16 }
 0xd66   :  { %v6838_v48 = vpop.eup %6837 }
 0xd67   :  { %v3490_v19 = vadd.f32 1.0, %v6838_v48  ;;  %v6840_v62 = vpop.eup %6839 }
 0xd68   :  { %v3497_v51 = vadd.f32 1.0, %v6840_v62 }
 0xd69   :  { %6841 = vrcp.f32 %v3490_v19 }
 0xd73   :  { %v6842_v18 = vpop.eup %6841 }
 0xd74   :  { %v3501_v55 = vmul.f32 %v6842_v18, %v3500_v42 }
 0xd76   :  { %v3502_v58 = vadd.f32 %v3501_v55, %v2382_v46 }
 0xd78   :  { %6843 = vtanh.f32 %v3502_v58 }
 0xd79   :  { %6845 = vrcp.f32 %v3497_v51 }
 0xd82   :  { %v6844_v23 = vpop.eup %6843 }
 0xd83   :  { %v3504_v61 = vsub.f32 %v8634_v54, %v6844_v23  ;;  %v6846_v45 = vpop.eup %6845 }
 0xd85   :  { %v3505_v5 = vmul.f32 %v6846_v45, %v3504_v61 }
 0xd87   :  { %v8731_v2 = vadd.f32 %v6844_v23, %v3505_v5  ;;  %v2397_v5 = vadd.f32 %v8317_v21, %v8338_v33 }
 0xd89   :  { %4502 = vst [vmem:[%s8841_s5 + $0x20] sm:$0xff] %v8731_v2  ;;  %3625 = vmatmul.mubr.f32.vlgmr.msra.gmra.mrb[26].mxu0 %v8731_v2  ;;  %5554 = vmatmul.mubr.f32.vlgmr.msra.gmra.mrb[42].mxu1 %v8731_v2 }
 0xd8a   :  { %6541 = vmatpush1.bf16.msra.mxu0 %v8477_v28  ;;  %6572 = vmatpush3.bf16.msra.mxu1 %v8667_v38 }
 0xd8b   :  { %6543 = vmatprep.subr.bf16.mxu0 %v8487_v59  ;;  %6573 = vmatprep.subr.bf16.mxu1 %v6879_v40 }
 0xd8c   :  { %3839 = vmatprep.mubr.f32.mxu0 %v6878_v3  ;;  %5588 = vmatprep.mubr.msk.f32.mxu1 %vm6880_vm0, %v6878_v3 }
 0xd8e   :  { %6545 = vmatpush1.bf16.msra.mxu0 %v8495_v11  ;;  %6575 = vmatpush3.bf16.msra.mxu1 %v8677_v30 }
 0xd8f   :  { %6547 = vmatprep.subr.bf16.mxu0 %v8505_v4  ;;  %6576 = vmatprep.subr.bf16.mxu1 %v6879_v40 }
 0xd92   :  { %6549 = vmatpush1.bf16.msra.mxu0 %v8513_v12  ;;  %6578 = vmatpush3.bf16.msra.mxu1 %v8687_v56 }
 0xd93   :  { %6551 = vmatprep.subr.bf16.mxu0 %v8523_v43  ;;  %6579 = vmatprep.subr.bf16.mxu1 %v6879_v40 }
 0xd96   :  { %6553 = vmatpush1.bf16.msra.mxu0 %v8531_v27  ;;  %6581 = vmatpush3.bf16.msra.mxu1 %v8697_v50 }
 0xd97   :  { %6555 = vmatprep.subr.bf16.mxu0 %v8541_v6  ;;  %6582 = vmatprep.subr.bf16.mxu1 %v6879_v40 }
 0xd9a   :  { %6557 = vmatpush1.bf16.msra.mxu0 %v8552_v10  ;;  %6584 = vmatpush3.bf16.msra.mxu1 %v8710_v44 }
 0xd9b   :  { %6559 = vmatprep.subr.bf16.mxu0 %v8564_v14  ;;  %6585 = vmatprep.subr.bf16.mxu1 %v6879_v40 }
 0xd9e   :  { %6561 = vmatpush1.bf16.msra.mxu0 %v8573_v20  ;;  %6587 = vmatpush3.bf16.msra.mxu1 %v8716_v53 }
 0xd9f   :  { %6563 = vmatprep.subr.bf16.mxu0 %v8582_v22  ;;  %6588 = vmatprep.subr.bf16.mxu1 %v6879_v40 }
 0xda2   :  { %6565 = vmatpush1.bf16.msra.mxu0 %v8608_v0  ;;  %6590 = vmatpush3.bf16.msra.mxu1 %v8590_v34 }
 0xda3   :  { %6567 = vmatprep.subr.bf16.mxu0 %v8612_v52  ;;  %6591 = vmatprep.subr.bf16.mxu1 %v6879_v40 }
 0xda6   :  { %6569 = vmatpush1.bf16.msra.mxu0 %v8622_v24  ;;  %6593 = vmatpush3.bf16.msra.mxu1 %v8605_v15 }
 0xda7   :  { %6595 = vmatprep.subr.bf16.mxu0 %v8469_v9  ;;  %6626 = vmatprep.subr.bf16.mxu1 %v6879_v40 }
 0xe5c   :  { %v3626_v39 = vpop.f32.mrb[26].mxu0  ;;  %v3697_v54 = vpop.f32.mrb[42].mxu1 }
 0xe5d   :  { %v6676_v57 = vadd.f32 %v3626_v39, %v8323_v25  ;;  %v3628_v13 = vpop.f32.mrb[27].mxu0  ;;  %v5555_v1 = vpop.f32.mrb[43].mxu1  ;;  %v3715_v9 = vadd.f32 %v8334_v63, %v3697_v54 }
 0xe5e   :  { %v6677_v35 = vadd.f32 %v3628_v13, %v8328_v17 }
 0xe5f   :  { %v4551_v29 = vmul.f32 -1.442695, %v6676_v57 }
 0xe60   :  { %v4552_v41 = vmul.f32 -1.442695, %v6677_v35 }
 0xe61   :  { %6847 = vpow2.f32 %v4551_v29 }
 0xe62   :  { %6849 = vpow2.f32 %v4552_v41 }
 0xe6b   :  { %v6848_v60 = vpop.eup %6847 }
 0xe6c   :  { %v3705_v36 = vadd.f32 1.0, %v6848_v60  ;;  %v6850_v37 = vpop.eup %6849 }
 0xe6d   :  { %v3712_v31 = vadd.f32 1.0, %v6850_v37 }
 0xe6e   :  { %6851 = vrcp.f32 %v3705_v36 }
 0xe78   :  { %v6852_v7 = vpop.eup %6851 }
 0xe79   :  { %v3716_v32 = vmul.f32 %v6852_v7, %v3715_v9 }
 0xe7b   :  { %v3717_v8 = vadd.f32 %v3716_v32, %v2387_v26 }
 0xe7d   :  { %6853 = vtanh.f32 %v3717_v8 }
 0xe7e   :  { %6855 = vrcp.f32 %v3712_v31 }
 0xe87   :  { %v6854_v16 = vpop.eup %6853 }
 0xe88   :  { %v3719_v48 = vsub.f32 %v8731_v2, %v6854_v16  ;;  %v6856_v19 = vpop.eup %6855 }
 0xe8a   :  { %v3720_v62 = vmul.f32 %v6856_v19, %v3719_v48 }
 0xe8c   :  { %v3721_v42 = vadd.f32 %v6854_v16, %v3720_v62 }
 0xe8e   :  { %4553 = vst [vmem:[%s8841_s5 + $0x28] sm:$0xff] %v3721_v42  ;;  %3840 = vmatmul.mubr.f32.vlgmr.msra.gmra.mrb[28].mxu0 %v3721_v42  ;;  %5589 = vmatmul.mubr.f32.vlgmr.msra.gmra.mrb[44].mxu1 %v3721_v42 }
 0xe8f   :  { %6597 = vmatpush1.bf16.msra.mxu0 %v8477_v28  ;;  %6628 = vmatpush3.bf16.msra.mxu1 %v8667_v38 }
 0xe90   :  { %6599 = vmatprep.subr.bf16.mxu0 %v8487_v59  ;;  %6629 = vmatprep.subr.bf16.mxu1 %v6879_v40 }
 0xe91   :  { %4054 = vmatprep.mubr.f32.mxu0 %v6878_v3  ;;  %5623 = vmatprep.mubr.msk.f32.mxu1 %vm6880_vm0, %v6878_v3 }
 0xe93   :  { %6601 = vmatpush1.bf16.msra.mxu0 %v8495_v11  ;;  %6631 = vmatpush3.bf16.msra.mxu1 %v8677_v30 }
 0xe94   :  { %6603 = vmatprep.subr.bf16.mxu0 %v8505_v4  ;;  %6632 = vmatprep.subr.bf16.mxu1 %v6879_v40 }
 0xe97   :  { %6605 = vmatpush1.bf16.msra.mxu0 %v8513_v12  ;;  %6634 = vmatpush3.bf16.msra.mxu1 %v8687_v56 }
 0xe98   :  { %6607 = vmatprep.subr.bf16.mxu0 %v8523_v43  ;;  %6635 = vmatprep.subr.bf16.mxu1 %v6879_v40 }
 0xe9b   :  { %6609 = vmatpush1.bf16.msra.mxu0 %v8531_v27  ;;  %6637 = vmatpush3.bf16.msra.mxu1 %v8697_v50 }
 0xe9c   :  { %6611 = vmatprep.subr.bf16.mxu0 %v8541_v6  ;;  %6638 = vmatprep.subr.bf16.mxu1 %v6879_v40 }
 0xe9f   :  { %6613 = vmatpush1.bf16.msra.mxu0 %v8552_v10  ;;  %6640 = vmatpush3.bf16.msra.mxu1 %v8710_v44 }
 0xea0   :  { %6615 = vmatprep.subr.bf16.mxu0 %v8564_v14  ;;  %6641 = vmatprep.subr.bf16.mxu1 %v6879_v40 }
 0xea3   :  { %6617 = vmatpush1.bf16.msra.mxu0 %v8573_v20  ;;  %6643 = vmatpush3.bf16.msra.mxu1 %v8716_v53  ;;  %v2392_v20 = vadd.f32 %v8319_v47, %v8338_v33 }
 0xea4   :  { %6619 = vmatprep.subr.bf16.mxu0 %v8582_v22  ;;  %6644 = vmatprep.subr.bf16.mxu1 %v6879_v40 }
 0xea7   :  { %6621 = vmatpush1.bf16.msra.mxu0 %v8608_v0  ;;  %6646 = vmatpush3.bf16.msra.mxu1 %v8590_v34 }
 0xea8   :  { %6623 = vmatprep.subr.bf16.mxu0 %v8612_v52  ;;  %6647 = vmatprep.subr.bf16.mxu1 %v6879_v40 }
 0xeab   :  { %6625 = vmatpush1.bf16.msra.mxu0 %v8622_v24  ;;  %6649 = vmatpush3.bf16.msra.mxu1 %v8605_v15 }
 0xf61   :  { %v3841_v3 = vpop.f32.mrb[28].mxu0  ;;  %v3912_v49 = vpop.f32.mrb[44].mxu1 }
 0xf62   :  { %v6678_v28 = vadd.f32 %v3841_v3, %v8323_v25  ;;  %v3843_v59 = vpop.f32.mrb[29].mxu0  ;;  %v5590_v11 = vpop.f32.mrb[45].mxu1  ;;  %v3930_v10 = vadd.f32 %v8334_v63, %v3912_v49 }
 0xf63   :  { %v6679_v12 = vadd.f32 %v3843_v59, %v8328_v17 }
 0xf64   :  { %v4602_v4 = vmul.f32 -1.442695, %v6678_v28 }
 0xf65   :  { %v4603_v43 = vmul.f32 -1.442695, %v6679_v12 }
 0xf66   :  { %6857 = vpow2.f32 %v4602_v4 }
 0xf67   :  { %6859 = vpow2.f32 %v4603_v43 }
 0xf70   :  { %v6858_v27 = vpop.eup %6857 }
 0xf71   :  { %v3920_v6 = vadd.f32 1.0, %v6858_v27  ;;  %v6860_v40 = vpop.eup %6859 }
 0xf72   :  { %v3927_v15 = vadd.f32 1.0, %v6860_v40 }
 0xf73   :  { %6861 = vrcp.f32 %v3920_v6 }
 0xf7d   :  { %v6862_v14 = vpop.eup %6861 }
 0xf7e   :  { %v3931_v22 = vmul.f32 %v6862_v14, %v3930_v10 }
 0xf80   :  { %v3932_v34 = vadd.f32 %v3931_v22, %v2392_v20 }
 0xf82   :  { %6863 = vtanh.f32 %v3932_v34 }
 0xf83   :  { %6865 = vrcp.f32 %v3927_v15 }
 0xf8c   :  { %v6864_v0 = vpop.eup %6863 }
 0xf8d   :  { %v3934_v52 = vsub.f32 %v3721_v42, %v6864_v0  ;;  %v6866_v24 = vpop.eup %6865 }
 0xf8f   :  { %v3935_v38 = vmul.f32 %v6866_v24, %v3934_v52 }
 0xf91   :  { %v3936_v30 = vadd.f32 %v6864_v0, %v3935_v38 }
 0xf93   :  { %4604 = vst [vmem:[%s8841_s5 + $0x30] sm:$0xff] %v3936_v30  ;;  %4055 = vmatmul.mubr.f32.vlgmr.msra.gmra.mrb[30].mxu0 %v3936_v30  ;;  %5624 = vmatmul.mubr.f32.vlgmr.msra.gmra.mrb[46].mxu1 %v3936_v30 }
0x1066   :  { %v4056_v56 = vpop.f32.mrb[30].mxu0  ;;  %v4127_v50 = vpop.f32.mrb[46].mxu1 }
0x1067   :  { %v6680_v47 = vadd.f32 %v4056_v56, %v8323_v25  ;;  %v4058_v44 = vpop.f32.mrb[31].mxu0  ;;  %v5625_v53 = vpop.f32.mrb[47].mxu1  ;;  %v4145_v61 = vadd.f32 %v8334_v63, %v4127_v50 }
0x1068   :  { %v6681_v46 = vadd.f32 %v4058_v44, %v8328_v17 }
0x1069   :  { %v4653_v18 = vmul.f32 -1.442695, %v6680_v47 }
0x106a   :  { %v4654_v55 = vmul.f32 -1.442695, %v6681_v46 }
0x106b   :  { %6867 = vpow2.f32 %v4653_v18 }
0x106c   :  { %6869 = vpow2.f32 %v4654_v55 }
0x1075   :  { %v6868_v58 = vpop.eup %6867 }
0x1076   :  { %v4135_v51 = vadd.f32 1.0, %v6868_v58  ;;  %v6870_v23 = vpop.eup %6869 }
0x1077   :  { %v4142_v39 = vadd.f32 1.0, %v6870_v23 }
0x1078   :  { %6871 = vrcp.f32 %v4135_v51 }
0x1082   :  { %v6872_v45 = vpop.eup %6871 }
0x1083   :  { %v4146_v2 = vmul.f32 %v6872_v45, %v4145_v61 }
0x1085   :  { %v4147_v25 = vadd.f32 %v4146_v2, %v2397_v5 }
0x1087   :  { %6873 = vtanh.f32 %v4147_v25 }
0x1088   :  { %6875 = vrcp.f32 %v4142_v39 }
0x1091   :  { %v6874_v54 = vpop.eup %6873 }
0x1092   :  { %v4149_v57 = vsub.f32 %v3936_v30, %v6874_v54  ;;  %v6876_v17 = vpop.eup %6875 }
0x1094   :  { %v4150_v13 = vmul.f32 %v6876_v17, %v4149_v57 }
0x1096   :  { %v4151_v1 = vadd.f32 %v6874_v54, %v4150_v13 }
0x1098   :  { %4655 = vst [vmem:[%s8841_s5 + $0x38] sm:$0xff] %v4151_v1  ;;  %4657 = vst [vmem:[%s8840_s6 + $0x8] sm:$0xff] %v4151_v1 }

</bundles_post_ra>
